<compile_context>
chip_gen: v6e
topology: v6e:2x2x1
jax: 0.10.0
libtpu: 0.0.40
codegen_flags: <defaults>
</compile_context>

<pallas_src>
import jax
import jax.numpy as jnp
from jax.experimental import pallas as pl
from jax.experimental.pallas import tpu as pltpu

_HP = 128  # per-gate lane-padded block width (= one vreg of lanes)


def mxu_dot(a, b):
    """TPU MXU numerics shared by kernel and reference:
    bf16 operands, f32 accumulation."""
    return jnp.dot(a.astype(jnp.bfloat16), b.astype(jnp.bfloat16),
                   preferred_element_type=jnp.float32)


# ----------------------------------------------------------------------------
# Pallas kernel
# ----------------------------------------------------------------------------
def edn_kernel(x_deep_ref, x_seq_ref, len_ref,
               w1s_ref, wpre_ref, bpre_ref, bhn1_ref,
               whh1_ref, w2f_ref, b2f_ref, wov_ref,
               out_ref, gi_scr):
    B = x_deep_ref.shape[0]
    T = x_seq_ref.shape[0] // B
    H = whh1_ref.shape[0]            # true hidden size (gates are lane-padded)
    HP = bhn1_ref.shape[-1]          # 128-lane gate block

    lens = len_ref[...]              # (B, 1) int32
    x_deep = x_deep_ref[...]         # (B, Fd) bf16

    # Hoisted layer-1 seq-feature gates for all timesteps (one big MXU call),
    # parked in VMEM scratch so only a (B, 3*HP) slice is live per step.
    gi_scr[...] = mxu_dot(x_seq_ref[...], w1s_ref[...])            # (T*B, 3*HP)

    # Fused pre-loop x_deep projection: [layer-1 deep gates | att. query | out-deep].
    pre = mxu_dot(x_deep, wpre_ref[...]) + bpre_ref[...]           # (B, 5*HP)
    gi1_deep = pre[:, :3 * HP]                 # time-invariant layer-1 gate term
    q = jnp.tanh(pre[:, 3 * HP:4 * HP])        # attention query (zero lane-padding)
    out_deep = pre[:, 4 * HP:4 * HP + 1]       # x_deep @ W_out_deep + b_out  (B,1)

    bhn1 = bhn1_ref[...]                       # (1, HP)   layer-1 hidden n-bias
    b2f = b2f_ref[...]                         # (1, 4*HP) fused layer-2 biases

    # Lane-padded hidden states; padding lanes provably stay exactly 0.
    h1 = jnp.zeros((B, HP), jnp.float32)
    h2 = jnp.zeros((B, HP), jnp.float32)
    # Online-softmax attention accumulators (attention folded into the loop).
    m_run = jnp.full((B, 1), -jnp.inf, jnp.float32)
    l_run = jnp.zeros((B, 1), jnp.float32)
    acc = jnp.zeros((B, HP), jnp.float32)

    for t in range(T):   # static unroll: layer-1(t+1) overlaps layer-2/attn(t)
        # ---------- GRU layer 1 : single MXU call (input gates precomputed) ----
        g1 = gi_scr[pl.ds(t * B, B), :] + gi1_deep                 # (B, 3*HP)
        gh1 = mxu_dot(h1[:, :H], whh1_ref[...])                    # (B, 3*HP)
        rz1 = jax.nn.sigmoid(g1[:, :2 * HP] + gh1[:, :2 * HP])     # merged r|z
        r1 = rz1[:, :HP]
        z1 = rz1[:, HP:]
        n1 = jnp.tanh(g1[:, 2 * HP:] + r1 * (gh1[:, 2 * HP:] + bhn1))
        h1 = (1.0 - z1) * n1 + z1 * h1
        # TODO(synk): inter-layer GRU dropout (p=0.3) omitted -> eval-mode semantics.

        # ---------- GRU layer 2 : one fused MXU call ---------------------------
        # [h1_t | h2_{t-1}] @ W2 -> [r_pre | z_pre | gi_n | gh_n] (128-lane blocks;
        # input/hidden r,z contributions and their biases are pre-summed in W2/b2).
        hcat = jnp.concatenate([h1, h2], axis=-1)                  # (B, 2*HP)
        g2 = mxu_dot(hcat, w2f_ref[...]) + b2f                     # (B, 4*HP)
        rz2 = jax.nn.sigmoid(g2[:, :2 * HP])                       # merged r|z
        r2 = rz2[:, :HP]
        z2 = rz2[:, HP:]
        n2 = jnp.tanh(g2[:, 2 * HP:3 * HP] + r2 * g2[:, 3 * HP:])
        h2 = (1.0 - z2) * n2 + z2 * h2

        # ---------- attention folded into the loop (online softmax over time) --
        ctx = jnp.where(lens > t, h2, 0.0)            # pad_packed_sequence zeroing
        s = jnp.sum(ctx * q, axis=-1, keepdims=True)               # (B, 1)
        m_new = jnp.maximum(m_run, s)
        alpha = jnp.exp(m_run - m_new)
        p = jnp.exp(s - m_new)
        l_run = alpha * l_run + p
        acc = alpha * acc + p * ctx
        m_run = m_new

    values = acc / l_run                                            # (B, HP)
    out_ref[...] = mxu_dot(values, wov_ref[...]) + out_deep         # (B, 1)


# ----------------------------------------------------------------------------
# Wrapper: weight restacking (gate blocks lane-padded to 128) + pallas_call
# ----------------------------------------------------------------------------
def _pad_cols(w, width=_HP):
    """(rows, H<=width) -> (rows, width), zero-padded along lanes."""
    return jnp.pad(w, ((0, 0), (0, width - w.shape[-1])))


def edn_forward(x_deep, x_seq, lengths, params):
    T, B, Fs = x_seq.shape
    Fd = x_deep.shape[1]
    H = params["whh1"].shape[-1]
    HP = _HP
    f32, bf16 = jnp.float32, jnp.bfloat16

    wih1, whh1 = params["wih1"], params["whh1"]
    bih1, bhh1 = params["bih1"], params["bhh1"]
    wih2, whh2 = params["wih2"], params["whh2"]
    bih2, bhh2 = params["bih2"], params["bhh2"]

    # TODO(synk): org_rnn_input is undefined in the source file; assumed DeepTTE
    # semantics (broadcast global features over time, concat with seq features),
    # realized by splitting Wih_l0 into a seq-feature block and a deep block.

    # Layer-1 gate weights (r,z,n), each gate zero-padded to its own 128-lane block.
    w1s = jnp.concatenate([_pad_cols(wih1[g, :Fs, :]) for g in range(3)], axis=-1)  # (Fs, 3*HP)
    w1d = jnp.concatenate([_pad_cols(wih1[g, Fs:, :]) for g in range(3)], axis=-1)  # (Fd, 3*HP)
    whh1s = jnp.concatenate([_pad_cols(whh1[g]) for g in range(3)], axis=-1)        # (H, 3*HP)
    bgi1 = jnp.concatenate([_pad_cols(bih1[0] + bhh1[0]),
                            _pad_cols(bih1[1] + bhh1[1]),
                            _pad_cols(bih1[2])], axis=-1)                           # (1, 3*HP)
    bhn1 = _pad_cols(bhh1[2])                                                       # (1, HP)

    # Fused layer-2 weight: rows [0:H] multiply h1_t, rows [HP:HP+H] multiply
    # h2_{t-1}; output blocks [r_pre | z_pre | gi_n | gh_n], lane-padded to 128.
    zblk = jnp.zeros((H, HP), f32)
    w2_top = jnp.concatenate([_pad_cols(wih2[0]), _pad_cols(wih2[1]),
                              _pad_cols(wih2[2]), zblk], axis=-1)                   # (H, 4*HP)
    w2_bot = jnp.concatenate([_pad_cols(whh2[0]), _pad_cols(whh2[1]),
                              zblk, _pad_cols(whh2[2])], axis=-1)                   # (H, 4*HP)
    w2f = jnp.concatenate([jnp.pad(w2_top, ((0, HP - H), (0, 0))),
                           jnp.pad(w2_bot, ((0, HP - H), (0, 0)))], axis=0)         # (2*HP, 4*HP)
    b2f = jnp.concatenate([_pad_cols(bih2[0] + bhh2[0]),
                           _pad_cols(bih2[1] + bhh2[1]),
                           _pad_cols(bih2[2]), _pad_cols(bhh2[2])], axis=-1)        # (1, 4*HP)

    # Fused pre-loop x_deep projection: [Wih1_deep gates | W_attention | W_out_deep].
    wpre = jnp.concatenate([w1d, _pad_cols(params["wa"]), _pad_cols(params["wod"])],
                           axis=-1)                                                 # (Fd, 5*HP)
    bpre = jnp.concatenate([bgi1, _pad_cols(params["ba"]), _pad_cols(params["bo"])],
                           axis=-1)                                                 # (1, 5*HP)

    wov = jnp.pad(params["wov"], ((0, HP - H), (0, 0)))                             # (HP, 1)

    x_seq_flat = x_seq.reshape(T * B, Fs)          # time-major flatten
    len_col = lengths.astype(jnp.int32).reshape(B, 1)

    vmem = pl.BlockSpec(memory_space=pltpu.MemorySpace.VMEM)
    inputs = (x_deep.astype(bf16), x_seq_flat.astype(bf16), len_col,
              w1s.astype(bf16), wpre.astype(bf16), bpre.astype(f32), bhn1.astype(f32),
              whh1s.astype(bf16), w2f.astype(bf16), b2f.astype(f32), wov.astype(bf16))

    return pl.pallas_call(
        edn_kernel,
        out_shape=jax.ShapeDtypeStruct((B, 1), jnp.float32),
        in_specs=[vmem] * len(inputs),
        out_specs=vmem,
        scratch_shapes=[
            pltpu.VMEM((T * B, 3 * HP), jnp.float32),  # hoisted layer-1 input gates
        ],
    )(*inputs)


# ----------------------------------------------------------------------------
# Pure-JAX reference (mirrors the PyTorch forward pass; matmuls use the same
# TPU MXU numerics as the kernel: bf16 operands, f32 accumulation).
# ----------------------------------------------------------------------------
def _gru_step(x, h, Wih, Whh, bih, bhh):
    """One PyTorch-convention GRU cell step. Gate order: r, z, n."""
    r = jax.nn.sigmoid(mxu_dot(x, Wih[0]) + bih[0] + mxu_dot(h, Whh[0]) + bhh[0])
    z = jax.nn.sigmoid(mxu_dot(x, Wih[1]) + bih[1] + mxu_dot(h, Whh[1]) + bhh[1])
    n = jnp.tanh(mxu_dot(x, Wih[2]) + bih[2] + r * (mxu_dot(h, Whh[2]) + bhh[2]))
    return (1.0 - z) * n + z * h


def ref_forward(x_deep, x_seq, lengths, params):
    T, B, Fs = x_seq.shape
    Fd = x_deep.shape[1]
    H = params["whh1"].shape[-1]
    xcat = jnp.concatenate(
        [x_seq, jnp.broadcast_to(x_deep[None, :, :], (T, B, Fd))], axis=-1)
    h1 = jnp.zeros((B, H), jnp.float32)
    h2 = jnp.zeros((B, H), jnp.float32)
    outs = []
    for t in range(T):
        h1 = _gru_step(xcat[t], h1, params["wih1"], params["whh1"],
                       params["bih1"], params["bhh1"])
        h2 = _gru_step(h1, h2, params["wih2"], params["whh2"],
                       params["bih2"], params["bhh2"])
        outs.append(jnp.where((lengths > t)[:, None], h2, 0.0))
    ctx = jnp.stack(outs, axis=0)                               # (T, B, H)
    q = jnp.tanh(mxu_dot(x_deep, params["wa"]) + params["ba"])  # (B, H)
    scores = jnp.sum(ctx * q[None, :, :], axis=-1)              # (T, B)
    w = jax.nn.softmax(scores, axis=0)                          # softmax over time
    values = jnp.sum(w[:, :, None] * ctx, axis=0)               # (B, H)
    return mxu_dot(values, params["wov"]) + mxu_dot(x_deep, params["wod"]) + params["bo"]


def init_params(key, Fd, Fs, H):
    """Deterministic synthetic parameters (shapes follow the module's __init__)."""
    Fin = Fs + Fd
    ks = jax.random.split(key, 13)

    def w(k, shape, scale=0.2):
        return scale * jax.random.normal(k, shape, jnp.float32)

    return dict(
        # GRU layer 0: weight_ih_l0 (3H, Fin), weight_hh_l0 (3H, H) -> stacked/transposed
        wih1=w(ks[0], (3, Fin, H)), whh1=w(ks[1], (3, H, H)),
        bih1=w(ks[2], (3, 1, H), 0.05), bhh1=w(ks[3], (3, 1, H), 0.05),
        # GRU layer 1: weight_ih_l1 (3H, H), weight_hh_l1 (3H, H)
        wih2=w(ks[4], (3, H, H)), whh2=w(ks[5], (3, H, H)),
        bih2=w(ks[6], (3, 1, H), 0.05), bhh2=w(ks[7], (3, 1, H), 0.05),
        # attention Linear(out_feature_d -> hidden_unit_s)
        wa=w(ks[8], (Fd, H)), ba=w(ks[9], (1, H), 0.05),
        # outnet Linear(hidden_unit_s + out_feature_d -> 1), split into [values | deep]
        wov=w(ks[10], (H, 1)), wod=w(ks[11], (Fd, 1)), bo=w(ks[12], (1, 1), 0.05),
    )


if __name__ == "__main__":
    # small shapes: in_feature_d = out_feature_d = 8, in_feature_s = 8,
    # hidden_unit_s = 32, seq = 8, batch = 8 (hidden_unit_d unused by deepnet)
    B, T, Fd, Fs, H = 8, 8, 8, 8, 32

    key = jax.random.PRNGKey(0)
    k_deep, k_seq, k_par = jax.random.split(key, 3)
    x_deep = jax.random.normal(k_deep, (B, Fd), jnp.float32)
    x_seq = jax.random.normal(k_seq, (T, B, Fs), jnp.float32)
    lengths = jnp.array([8, 7, 6, 5, 5, 4, 3, 2], dtype=jnp.int32)

    params = init_params(k_par, Fd, Fs, H)

    out = jax.block_until_ready(edn_forward(x_deep, x_seq, lengths, params))
    ref = jax.block_until_ready(ref_forward(x_deep, x_seq, lengths, params))

    assert out.shape == (B, 1), out.shape
    # Tolerance sized for bf16 MXU operands (shared by kernel and reference);
    # remaining differences come only from accumulation-order/restructuring noise.
    assert jnp.allclose(out, ref, atol=5e-3, rtol=5e-3), (out, ref)
    print("KERNEL_OK")
</pallas_src>

<mosaic_0001>
module attributes {stable_mosaic.version = 11 : i64} {
  func.func @edn_kernel(%arg0: memref<8x8xbf16, #tpu.memory_space<vmem>>, %arg1: memref<64x8xbf16, #tpu.memory_space<vmem>>, %arg2: memref<8x1xi32, #tpu.memory_space<vmem>>, %arg3: memref<8x384xbf16, #tpu.memory_space<vmem>>, %arg4: memref<8x640xbf16, #tpu.memory_space<vmem>>, %arg5: memref<1x640xf32, #tpu.memory_space<vmem>>, %arg6: memref<1x128xf32, #tpu.memory_space<vmem>>, %arg7: memref<32x384xbf16, #tpu.memory_space<vmem>>, %arg8: memref<256x512xbf16, #tpu.memory_space<vmem>>, %arg9: memref<1x512xf32, #tpu.memory_space<vmem>>, %arg10: memref<128x1xbf16, #tpu.memory_space<vmem>>, %arg11: memref<8x1xf32, #tpu.memory_space<vmem>>, %arg12: memref<64x384xf32, #tpu.memory_space<vmem>>) attributes {dimension_semantics = [], scalar_prefetch = 0 : i64, scratch_operands = 1 : i64, tpu.core_type = #tpu.core_type<tc>} {
    %c0 = arith.constant 0 : index
    %c0_0 = arith.constant 0 : index
    %0 = vector.load %arg2[%c0, %c0_0] : memref<8x1xi32, #tpu.memory_space<vmem>>, vector<8x1xi32>
    %c0_1 = arith.constant 0 : index
    %c0_2 = arith.constant 0 : index
    %1 = vector.load %arg0[%c0_1, %c0_2] : memref<8x8xbf16, #tpu.memory_space<vmem>>, vector<8x8xbf16>
    %c0_3 = arith.constant 0 : index
    %c0_4 = arith.constant 0 : index
    %2 = vector.load %arg1[%c0_3, %c0_4] : memref<64x8xbf16, #tpu.memory_space<vmem>>, vector<64x8xbf16>
    %c0_5 = arith.constant 0 : index
    %c0_6 = arith.constant 0 : index
    %3 = vector.load %arg3[%c0_5, %c0_6] : memref<8x384xbf16, #tpu.memory_space<vmem>>, vector<8x384xbf16>
    %cst = arith.constant dense<0.000000e+00> : vector<64x384xf32>
    %4 = tpu.matmul %2, %3, %cst {dimension_numbers = #tpu.dot_dimension_numbers<[1], [0], [0], [1], [0, 0, 1, 1], [], []>} : vector<64x8xbf16>, vector<8x384xbf16>, vector<64x384xf32> -> vector<64x384xf32>
    %c0_7 = arith.constant 0 : index
    %c0_8 = arith.constant 0 : index
    %5 = vector.load %arg12[%c0_7, %c0_8] : memref<64x384xf32, #tpu.memory_space<vmem>>, vector<64x384xf32>
    tpu.vector_store %arg12[%c0_7, %c0_8], %4 {strides = array<i32>} : memref<64x384xf32, #tpu.memory_space<vmem>>, vector<64x384xf32>,
    %c0_9 = arith.constant 0 : index
    %c0_10 = arith.constant 0 : index
    %6 = vector.load %arg4[%c0_9, %c0_10] : memref<8x640xbf16, #tpu.memory_space<vmem>>, vector<8x640xbf16>
    %cst_11 = arith.constant dense<0.000000e+00> : vector<8x640xf32>
    %7 = tpu.matmul %1, %6, %cst_11 {dimension_numbers = #tpu.dot_dimension_numbers<[1], [0], [0], [1], [0, 0, 1, 1], [], []>} : vector<8x8xbf16>, vector<8x640xbf16>, vector<8x640xf32> -> vector<8x640xf32>
    %c0_12 = arith.constant 0 : index
    %c0_13 = arith.constant 0 : index
    %8 = vector.load %arg5[%c0_12, %c0_13] : memref<1x640xf32, #tpu.memory_space<vmem>>, vector<1x640xf32>
    %9 = vector.broadcast %8 : vector<1x640xf32> to vector<8x640xf32>
    %10 = arith.addf %7, %9 : vector<8x640xf32>
    %11 = vector.extract_strided_slice %10 {offsets = [0, 0], sizes = [8, 384], strides = [1, 1]} : vector<8x640xf32> to vector<8x384xf32>
    %12 = vector.extract_strided_slice %10 {offsets = [0, 384], sizes = [8, 128], strides = [1, 1]} : vector<8x640xf32> to vector<8x128xf32>
    %13 = math.tanh %12 : vector<8x128xf32>
    %14 = vector.extract_strided_slice %10 {offsets = [0, 512], sizes = [8, 1], strides = [1, 1]} : vector<8x640xf32> to vector<8x1xf32>
    %c0_14 = arith.constant 0 : index
    %c0_15 = arith.constant 0 : index
    %15 = vector.load %arg6[%c0_14, %c0_15] : memref<1x128xf32, #tpu.memory_space<vmem>>, vector<1x128xf32>
    %c0_16 = arith.constant 0 : index
    %c0_17 = arith.constant 0 : index
    %16 = vector.load %arg9[%c0_16, %c0_17] : memref<1x512xf32, #tpu.memory_space<vmem>>, vector<1x512xf32>
    %cst_18 = arith.constant 0.000000e+00 : f32
    %17 = vector.broadcast %cst_18 : f32 to vector<8x128xf32>
    %cst_19 = arith.constant 0.000000e+00 : f32
    %18 = vector.broadcast %cst_19 : f32 to vector<8x128xf32>
    %cst_20 = arith.constant 0xFF800000 : f32
    %19 = vector.broadcast %cst_20 : f32 to vector<8x1xf32>
    %cst_21 = arith.constant 0.000000e+00 : f32
    %20 = vector.broadcast %cst_21 : f32 to vector<8x1xf32>
    %cst_22 = arith.constant 0.000000e+00 : f32
    %21 = vector.broadcast %cst_22 : f32 to vector<8x128xf32>
    %c0_23 = arith.constant 0 : index
    %c0_24 = arith.constant 0 : index
    %22 = vector.load %arg12[%c0_23, %c0_24] : memref<64x384xf32, #tpu.memory_space<vmem>>, vector<8x384xf32>
    %23 = arith.addf %22, %11 : vector<8x384xf32>
    %24 = vector.extract_strided_slice %17 {offsets = [0, 0], sizes = [8, 32], strides = [1, 1]} : vector<8x128xf32> to vector<8x32xf32>
    %c0_25 = arith.constant 0 : index
    %c0_26 = arith.constant 0 : index
    %25 = vector.load %arg7[%c0_25, %c0_26] : memref<32x384xbf16, #tpu.memory_space<vmem>>, vector<32x384xbf16>
    %26 = arith.truncf %24 : vector<8x32xf32> to vector<8x32xbf16>
    %cst_27 = arith.constant dense<0.000000e+00> : vector<8x384xf32>
    %27 = tpu.matmul %26, %25, %cst_27 {dimension_numbers = #tpu.dot_dimension_numbers<[1], [0], [0], [1], [0, 0, 1, 1], [], []>} : vector<8x32xbf16>, vector<32x384xbf16>, vector<8x384xf32> -> vector<8x384xf32>
    %28 = vector.extract_strided_slice %23 {offsets = [0, 0], sizes = [8, 256], strides = [1, 1]} : vector<8x384xf32> to vector<8x256xf32>
    %29 = vector.extract_strided_slice %27 {offsets = [0, 0], sizes = [8, 256], strides = [1, 1]} : vector<8x384xf32> to vector<8x256xf32>
    %30 = arith.addf %28, %29 : vector<8x256xf32>
    %31 = arith.negf %30 : vector<8x256xf32>
    %32 = math.exp %31 : vector<8x256xf32>
    %cst_28 = arith.constant 1.000000e+00 : f32
    %33 = vector.broadcast %cst_28 : f32 to vector<8x256xf32>
    %34 = arith.addf %33, %32 : vector<8x256xf32>
    %35 = arith.divf %33, %34 : vector<8x256xf32>
    %36 = vector.extract_strided_slice %35 {offsets = [0, 0], sizes = [8, 128], strides = [1, 1]} : vector<8x256xf32> to vector<8x128xf32>
    %37 = vector.extract_strided_slice %35 {offsets = [0, 128], sizes = [8, 128], strides = [1, 1]} : vector<8x256xf32> to vector<8x128xf32>
    %38 = vector.extract_strided_slice %23 {offsets = [0, 256], sizes = [8, 128], strides = [1, 1]} : vector<8x384xf32> to vector<8x128xf32>
    %39 = vector.extract_strided_slice %27 {offsets = [0, 256], sizes = [8, 128], strides = [1, 1]} : vector<8x384xf32> to vector<8x128xf32>
    %40 = vector.broadcast %15 : vector<1x128xf32> to vector<8x128xf32>
    %41 = arith.addf %39, %40 : vector<8x128xf32>
    %42 = arith.mulf %36, %41 : vector<8x128xf32>
    %43 = arith.addf %38, %42 : vector<8x128xf32>
    %44 = math.tanh %43 : vector<8x128xf32>
    %cst_29 = arith.constant 1.000000e+00 : f32
    %45 = vector.broadcast %cst_29 : f32 to vector<8x128xf32>
    %46 = arith.subf %45, %37 : vector<8x128xf32>
    %47 = arith.mulf %46, %44 : vector<8x128xf32>
    %48 = arith.mulf %37, %17 : vector<8x128xf32>
    %49 = arith.addf %47, %48 : vector<8x128xf32>
    %50 = tpu.concatenate %49, %18 in 1 : vector<8x128xf32>, vector<8x128xf32> -> vector<8x256xf32>
    %c0_30 = arith.constant 0 : index
    %c0_31 = arith.constant 0 : index
    %51 = vector.load %arg8[%c0_30, %c0_31] : memref<256x512xbf16, #tpu.memory_space<vmem>>, vector<256x512xbf16>
    %52 = arith.truncf %50 : vector<8x256xf32> to vector<8x256xbf16>
    %cst_32 = arith.constant dense<0.000000e+00> : vector<8x512xf32>
    %53 = tpu.matmul %52, %51, %cst_32 {dimension_numbers = #tpu.dot_dimension_numbers<[1], [0], [0], [1], [0, 0, 1, 1], [], []>} : vector<8x256xbf16>, vector<256x512xbf16>, vector<8x512xf32> -> vector<8x512xf32>
    %54 = vector.broadcast %16 : vector<1x512xf32> to vector<8x512xf32>
    %55 = arith.addf %53, %54 : vector<8x512xf32>
    %56 = vector.extract_strided_slice %55 {offsets = [0, 0], sizes = [8, 256], strides = [1, 1]} : vector<8x512xf32> to vector<8x256xf32>
    %57 = arith.negf %56 : vector<8x256xf32>
    %58 = math.exp %57 : vector<8x256xf32>
    %cst_33 = arith.constant 1.000000e+00 : f32
    %59 = vector.broadcast %cst_33 : f32 to vector<8x256xf32>
    %60 = arith.addf %59, %58 : vector<8x256xf32>
    %61 = arith.divf %59, %60 : vector<8x256xf32>
    %62 = vector.extract_strided_slice %61 {offsets = [0, 0], sizes = [8, 128], strides = [1, 1]} : vector<8x256xf32> to vector<8x128xf32>
    %63 = vector.extract_strided_slice %61 {offsets = [0, 128], sizes = [8, 128], strides = [1, 1]} : vector<8x256xf32> to vector<8x128xf32>
    %64 = vector.extract_strided_slice %55 {offsets = [0, 256], sizes = [8, 128], strides = [1, 1]} : vector<8x512xf32> to vector<8x128xf32>
    %65 = vector.extract_strided_slice %55 {offsets = [0, 384], sizes = [8, 128], strides = [1, 1]} : vector<8x512xf32> to vector<8x128xf32>
    %66 = arith.mulf %62, %65 : vector<8x128xf32>
    %67 = arith.addf %64, %66 : vector<8x128xf32>
    %68 = math.tanh %67 : vector<8x128xf32>
    %cst_34 = arith.constant 1.000000e+00 : f32
    %69 = vector.broadcast %cst_34 : f32 to vector<8x128xf32>
    %70 = arith.subf %69, %63 : vector<8x128xf32>
    %71 = arith.mulf %70, %68 : vector<8x128xf32>
    %72 = arith.mulf %63, %18 : vector<8x128xf32>
    %73 = arith.addf %71, %72 : vector<8x128xf32>
    %c0_i32 = arith.constant 0 : i32
    %74 = vector.broadcast %c0_i32 : i32 to vector<8x1xi32>
    %75 = arith.cmpi sgt, %0, %74 : vector<8x1xi32>
    %cst_35 = arith.constant 0.000000e+00 : f32
    %76 = vector.shape_cast %75 : vector<8x1xi1> to vector<8x1xi1>
    %77 = vector.broadcast %76 : vector<8x1xi1> to vector<8x128xi1>
    %78 = vector.broadcast %cst_35 : f32 to vector<8x128xf32>
    %79 = arith.select %77, %73, %78 : vector<8x128xi1>, vector<8x128xf32>
    %80 = arith.mulf %79, %13 : vector<8x128xf32>
    %cst_36 = arith.constant dense<0.000000e+00> : vector<8xf32>
    %81 = vector.multi_reduction <add>, %80, %cst_36 [1] : vector<8x128xf32> to vector<8xf32>
    %82 = vector.shape_cast %81 : vector<8xf32> to vector<8x1xf32>
    %83 = arith.maximumf %19, %82 : vector<8x1xf32>
    %84 = arith.subf %19, %83 : vector<8x1xf32>
    %85 = math.exp %84 : vector<8x1xf32>
    %86 = arith.subf %82, %83 : vector<8x1xf32>
    %87 = math.exp %86 : vector<8x1xf32>
    %88 = arith.mulf %85, %20 : vector<8x1xf32>
    %89 = arith.addf %88, %87 : vector<8x1xf32>
    %90 = vector.broadcast %85 : vector<8x1xf32> to vector<8x128xf32>
    %91 = arith.mulf %90, %21 : vector<8x128xf32>
    %92 = vector.broadcast %87 : vector<8x1xf32> to vector<8x128xf32>
    %93 = arith.mulf %92, %79 : vector<8x128xf32>
    %94 = arith.addf %91, %93 : vector<8x128xf32>
    %c8 = arith.constant 8 : index
    %c0_37 = arith.constant 0 : index
    %95 = vector.load %arg12[%c8, %c0_37] : memref<64x384xf32, #tpu.memory_space<vmem>>, vector<8x384xf32>
    %96 = arith.addf %95, %11 : vector<8x384xf32>
    %97 = vector.extract_strided_slice %49 {offsets = [0, 0], sizes = [8, 32], strides = [1, 1]} : vector<8x128xf32> to vector<8x32xf32>
    %c0_38 = arith.constant 0 : index
    %c0_39 = arith.constant 0 : index
    %98 = vector.load %arg7[%c0_38, %c0_39] : memref<32x384xbf16, #tpu.memory_space<vmem>>, vector<32x384xbf16>
    %99 = arith.truncf %97 : vector<8x32xf32> to vector<8x32xbf16>
    %cst_40 = arith.constant dense<0.000000e+00> : vector<8x384xf32>
    %100 = tpu.matmul %99, %98, %cst_40 {dimension_numbers = #tpu.dot_dimension_numbers<[1], [0], [0], [1], [0, 0, 1, 1], [], []>} : vector<8x32xbf16>, vector<32x384xbf16>, vector<8x384xf32> -> vector<8x384xf32>
    %101 = vector.extract_strided_slice %96 {offsets = [0, 0], sizes = [8, 256], strides = [1, 1]} : vector<8x384xf32> to vector<8x256xf32>
    %102 = vector.extract_strided_slice %100 {offsets = [0, 0], sizes = [8, 256], strides = [1, 1]} : vector<8x384xf32> to vector<8x256xf32>
    %103 = arith.addf %101, %102 : vector<8x256xf32>
    %104 = arith.negf %103 : vector<8x256xf32>
    %105 = math.exp %104 : vector<8x256xf32>
    %cst_41 = arith.constant 1.000000e+00 : f32
    %106 = vector.broadcast %cst_41 : f32 to vector<8x256xf32>
    %107 = arith.addf %106, %105 : vector<8x256xf32>
    %108 = arith.divf %106, %107 : vector<8x256xf32>
    %109 = vector.extract_strided_slice %108 {offsets = [0, 0], sizes = [8, 128], strides = [1, 1]} : vector<8x256xf32> to vector<8x128xf32>
    %110 = vector.extract_strided_slice %108 {offsets = [0, 128], sizes = [8, 128], strides = [1, 1]} : vector<8x256xf32> to vector<8x128xf32>
    %111 = vector.extract_strided_slice %96 {offsets = [0, 256], sizes = [8, 128], strides = [1, 1]} : vector<8x384xf32> to vector<8x128xf32>
    %112 = vector.extract_strided_slice %100 {offsets = [0, 256], sizes = [8, 128], strides = [1, 1]} : vector<8x384xf32> to vector<8x128xf32>
    %113 = vector.broadcast %15 : vector<1x128xf32> to vector<8x128xf32>
    %114 = arith.addf %112, %113 : vector<8x128xf32>
    %115 = arith.mulf %109, %114 : vector<8x128xf32>
    %116 = arith.addf %111, %115 : vector<8x128xf32>
    %117 = math.tanh %116 : vector<8x128xf32>
    %cst_42 = arith.constant 1.000000e+00 : f32
    %118 = vector.broadcast %cst_42 : f32 to vector<8x128xf32>
    %119 = arith.subf %118, %110 : vector<8x128xf32>
    %120 = arith.mulf %119, %117 : vector<8x128xf32>
    %121 = arith.mulf %110, %49 : vector<8x128xf32>
    %122 = arith.addf %120, %121 : vector<8x128xf32>
    %123 = tpu.concatenate %122, %73 in 1 : vector<8x128xf32>, vector<8x128xf32> -> vector<8x256xf32>
    %c0_43 = arith.constant 0 : index
    %c0_44 = arith.constant 0 : index
    %124 = vector.load %arg8[%c0_43, %c0_44] : memref<256x512xbf16, #tpu.memory_space<vmem>>, vector<256x512xbf16>
    %125 = arith.truncf %123 : vector<8x256xf32> to vector<8x256xbf16>
    %cst_45 = arith.constant dense<0.000000e+00> : vector<8x512xf32>
    %126 = tpu.matmul %125, %124, %cst_45 {dimension_numbers = #tpu.dot_dimension_numbers<[1], [0], [0], [1], [0, 0, 1, 1], [], []>} : vector<8x256xbf16>, vector<256x512xbf16>, vector<8x512xf32> -> vector<8x512xf32>
    %127 = vector.broadcast %16 : vector<1x512xf32> to vector<8x512xf32>
    %128 = arith.addf %126, %127 : vector<8x512xf32>
    %129 = vector.extract_strided_slice %128 {offsets = [0, 0], sizes = [8, 256], strides = [1, 1]} : vector<8x512xf32> to vector<8x256xf32>
    %130 = arith.negf %129 : vector<8x256xf32>
    %131 = math.exp %130 : vector<8x256xf32>
    %cst_46 = arith.constant 1.000000e+00 : f32
    %132 = vector.broadcast %cst_46 : f32 to vector<8x256xf32>
    %133 = arith.addf %132, %131 : vector<8x256xf32>
    %134 = arith.divf %132, %133 : vector<8x256xf32>
    %135 = vector.extract_strided_slice %134 {offsets = [0, 0], sizes = [8, 128], strides = [1, 1]} : vector<8x256xf32> to vector<8x128xf32>
    %136 = vector.extract_strided_slice %134 {offsets = [0, 128], sizes = [8, 128], strides = [1, 1]} : vector<8x256xf32> to vector<8x128xf32>
    %137 = vector.extract_strided_slice %128 {offsets = [0, 256], sizes = [8, 128], strides = [1, 1]} : vector<8x512xf32> to vector<8x128xf32>
    %138 = vector.extract_strided_slice %128 {offsets = [0, 384], sizes = [8, 128], strides = [1, 1]} : vector<8x512xf32> to vector<8x128xf32>
    %139 = arith.mulf %135, %138 : vector<8x128xf32>
    %140 = arith.addf %137, %139 : vector<8x128xf32>
    %141 = math.tanh %140 : vector<8x128xf32>
    %cst_47 = arith.constant 1.000000e+00 : f32
    %142 = vector.broadcast %cst_47 : f32 to vector<8x128xf32>
    %143 = arith.subf %142, %136 : vector<8x128xf32>
    %144 = arith.mulf %143, %141 : vector<8x128xf32>
    %145 = arith.mulf %136, %73 : vector<8x128xf32>
    %146 = arith.addf %144, %145 : vector<8x128xf32>
    %c1_i32 = arith.constant 1 : i32
    %147 = vector.broadcast %c1_i32 : i32 to vector<8x1xi32>
    %148 = arith.cmpi sgt, %0, %147 : vector<8x1xi32>
    %cst_48 = arith.constant 0.000000e+00 : f32
    %149 = vector.shape_cast %148 : vector<8x1xi1> to vector<8x1xi1>
    %150 = vector.broadcast %149 : vector<8x1xi1> to vector<8x128xi1>
    %151 = vector.broadcast %cst_48 : f32 to vector<8x128xf32>
    %152 = arith.select %150, %146, %151 : vector<8x128xi1>, vector<8x128xf32>
    %153 = arith.mulf %152, %13 : vector<8x128xf32>
    %cst_49 = arith.constant dense<0.000000e+00> : vector<8xf32>
    %154 = vector.multi_reduction <add>, %153, %cst_49 [1] : vector<8x128xf32> to vector<8xf32>
    %155 = vector.shape_cast %154 : vector<8xf32> to vector<8x1xf32>
    %156 = arith.maximumf %83, %155 : vector<8x1xf32>
    %157 = arith.subf %83, %156 : vector<8x1xf32>
    %158 = math.exp %157 : vector<8x1xf32>
    %159 = arith.subf %155, %156 : vector<8x1xf32>
    %160 = math.exp %159 : vector<8x1xf32>
    %161 = arith.mulf %158, %89 : vector<8x1xf32>
    %162 = arith.addf %161, %160 : vector<8x1xf32>
    %163 = vector.broadcast %158 : vector<8x1xf32> to vector<8x128xf32>
    %164 = arith.mulf %163, %94 : vector<8x128xf32>
    %165 = vector.broadcast %160 : vector<8x1xf32> to vector<8x128xf32>
    %166 = arith.mulf %165, %152 : vector<8x128xf32>
    %167 = arith.addf %164, %166 : vector<8x128xf32>
    %c16 = arith.constant 16 : index
    %c0_50 = arith.constant 0 : index
    %168 = vector.load %arg12[%c16, %c0_50] : memref<64x384xf32, #tpu.memory_space<vmem>>, vector<8x384xf32>
    %169 = arith.addf %168, %11 : vector<8x384xf32>
    %170 = vector.extract_strided_slice %122 {offsets = [0, 0], sizes = [8, 32], strides = [1, 1]} : vector<8x128xf32> to vector<8x32xf32>
    %c0_51 = arith.constant 0 : index
    %c0_52 = arith.constant 0 : index
    %171 = vector.load %arg7[%c0_51, %c0_52] : memref<32x384xbf16, #tpu.memory_space<vmem>>, vector<32x384xbf16>
    %172 = arith.truncf %170 : vector<8x32xf32> to vector<8x32xbf16>
    %cst_53 = arith.constant dense<0.000000e+00> : vector<8x384xf32>
    %173 = tpu.matmul %172, %171, %cst_53 {dimension_numbers = #tpu.dot_dimension_numbers<[1], [0], [0], [1], [0, 0, 1, 1], [], []>} : vector<8x32xbf16>, vector<32x384xbf16>, vector<8x384xf32> -> vector<8x384xf32>
    %174 = vector.extract_strided_slice %169 {offsets = [0, 0], sizes = [8, 256], strides = [1, 1]} : vector<8x384xf32> to vector<8x256xf32>
    %175 = vector.extract_strided_slice %173 {offsets = [0, 0], sizes = [8, 256], strides = [1, 1]} : vector<8x384xf32> to vector<8x256xf32>
    %176 = arith.addf %174, %175 : vector<8x256xf32>
    %177 = arith.negf %176 : vector<8x256xf32>
    %178 = math.exp %177 : vector<8x256xf32>
    %cst_54 = arith.constant 1.000000e+00 : f32
    %179 = vector.broadcast %cst_54 : f32 to vector<8x256xf32>
    %180 = arith.addf %179, %178 : vector<8x256xf32>
    %181 = arith.divf %179, %180 : vector<8x256xf32>
    %182 = vector.extract_strided_slice %181 {offsets = [0, 0], sizes = [8, 128], strides = [1, 1]} : vector<8x256xf32> to vector<8x128xf32>
    %183 = vector.extract_strided_slice %181 {offsets = [0, 128], sizes = [8, 128], strides = [1, 1]} : vector<8x256xf32> to vector<8x128xf32>
    %184 = vector.extract_strided_slice %169 {offsets = [0, 256], sizes = [8, 128], strides = [1, 1]} : vector<8x384xf32> to vector<8x128xf32>
    %185 = vector.extract_strided_slice %173 {offsets = [0, 256], sizes = [8, 128], strides = [1, 1]} : vector<8x384xf32> to vector<8x128xf32>
    %186 = vector.broadcast %15 : vector<1x128xf32> to vector<8x128xf32>
    %187 = arith.addf %185, %186 : vector<8x128xf32>
    %188 = arith.mulf %182, %187 : vector<8x128xf32>
    %189 = arith.addf %184, %188 : vector<8x128xf32>
    %190 = math.tanh %189 : vector<8x128xf32>
    %cst_55 = arith.constant 1.000000e+00 : f32
    %191 = vector.broadcast %cst_55 : f32 to vector<8x128xf32>
    %192 = arith.subf %191, %183 : vector<8x128xf32>
    %193 = arith.mulf %192, %190 : vector<8x128xf32>
    %194 = arith.mulf %183, %122 : vector<8x128xf32>
    %195 = arith.addf %193, %194 : vector<8x128xf32>
    %196 = tpu.concatenate %195, %146 in 1 : vector<8x128xf32>, vector<8x128xf32> -> vector<8x256xf32>
    %c0_56 = arith.constant 0 : index
    %c0_57 = arith.constant 0 : index
    %197 = vector.load %arg8[%c0_56, %c0_57] : memref<256x512xbf16, #tpu.memory_space<vmem>>, vector<256x512xbf16>
    %198 = arith.truncf %196 : vector<8x256xf32> to vector<8x256xbf16>
    %cst_58 = arith.constant dense<0.000000e+00> : vector<8x512xf32>
    %199 = tpu.matmul %198, %197, %cst_58 {dimension_numbers = #tpu.dot_dimension_numbers<[1], [0], [0], [1], [0, 0, 1, 1], [], []>} : vector<8x256xbf16>, vector<256x512xbf16>, vector<8x512xf32> -> vector<8x512xf32>
    %200 = vector.broadcast %16 : vector<1x512xf32> to vector<8x512xf32>
    %201 = arith.addf %199, %200 : vector<8x512xf32>
    %202 = vector.extract_strided_slice %201 {offsets = [0, 0], sizes = [8, 256], strides = [1, 1]} : vector<8x512xf32> to vector<8x256xf32>
    %203 = arith.negf %202 : vector<8x256xf32>
    %204 = math.exp %203 : vector<8x256xf32>
    %cst_59 = arith.constant 1.000000e+00 : f32
    %205 = vector.broadcast %cst_59 : f32 to vector<8x256xf32>
    %206 = arith.addf %205, %204 : vector<8x256xf32>
    %207 = arith.divf %205, %206 : vector<8x256xf32>
    %208 = vector.extract_strided_slice %207 {offsets = [0, 0], sizes = [8, 128], strides = [1, 1]} : vector<8x256xf32> to vector<8x128xf32>
    %209 = vector.extract_strided_slice %207 {offsets = [0, 128], sizes = [8, 128], strides = [1, 1]} : vector<8x256xf32> to vector<8x128xf32>
    %210 = vector.extract_strided_slice %201 {offsets = [0, 256], sizes = [8, 128], strides = [1, 1]} : vector<8x512xf32> to vector<8x128xf32>
    %211 = vector.extract_strided_slice %201 {offsets = [0, 384], sizes = [8, 128], strides = [1, 1]} : vector<8x512xf32> to vector<8x128xf32>
    %212 = arith.mulf %208, %211 : vector<8x128xf32>
    %213 = arith.addf %210, %212 : vector<8x128xf32>
    %214 = math.tanh %213 : vector<8x128xf32>
    %cst_60 = arith.constant 1.000000e+00 : f32
    %215 = vector.broadcast %cst_60 : f32 to vector<8x128xf32>
    %216 = arith.subf %215, %209 : vector<8x128xf32>
    %217 = arith.mulf %216, %214 : vector<8x128xf32>
    %218 = arith.mulf %209, %146 : vector<8x128xf32>
    %219 = arith.addf %217, %218 : vector<8x128xf32>
    %c2_i32 = arith.constant 2 : i32
    %220 = vector.broadcast %c2_i32 : i32 to vector<8x1xi32>
    %221 = arith.cmpi sgt, %0, %220 : vector<8x1xi32>
    %cst_61 = arith.constant 0.000000e+00 : f32
    %222 = vector.shape_cast %221 : vector<8x1xi1> to vector<8x1xi1>
    %223 = vector.broadcast %222 : vector<8x1xi1> to vector<8x128xi1>
    %224 = vector.broadcast %cst_61 : f32 to vector<8x128xf32>
    %225 = arith.select %223, %219, %224 : vector<8x128xi1>, vector<8x128xf32>
    %226 = arith.mulf %225, %13 : vector<8x128xf32>
    %cst_62 = arith.constant dense<0.000000e+00> : vector<8xf32>
    %227 = vector.multi_reduction <add>, %226, %cst_62 [1] : vector<8x128xf32> to vector<8xf32>
    %228 = vector.shape_cast %227 : vector<8xf32> to vector<8x1xf32>
    %229 = arith.maximumf %156, %228 : vector<8x1xf32>
    %230 = arith.subf %156, %229 : vector<8x1xf32>
    %231 = math.exp %230 : vector<8x1xf32>
    %232 = arith.subf %228, %229 : vector<8x1xf32>
    %233 = math.exp %232 : vector<8x1xf32>
    %234 = arith.mulf %231, %162 : vector<8x1xf32>
    %235 = arith.addf %234, %233 : vector<8x1xf32>
    %236 = vector.broadcast %231 : vector<8x1xf32> to vector<8x128xf32>
    %237 = arith.mulf %236, %167 : vector<8x128xf32>
    %238 = vector.broadcast %233 : vector<8x1xf32> to vector<8x128xf32>
    %239 = arith.mulf %238, %225 : vector<8x128xf32>
    %240 = arith.addf %237, %239 : vector<8x128xf32>
    %c24 = arith.constant 24 : index
    %c0_63 = arith.constant 0 : index
    %241 = vector.load %arg12[%c24, %c0_63] : memref<64x384xf32, #tpu.memory_space<vmem>>, vector<8x384xf32>
    %242 = arith.addf %241, %11 : vector<8x384xf32>
    %243 = vector.extract_strided_slice %195 {offsets = [0, 0], sizes = [8, 32], strides = [1, 1]} : vector<8x128xf32> to vector<8x32xf32>
    %c0_64 = arith.constant 0 : index
    %c0_65 = arith.constant 0 : index
    %244 = vector.load %arg7[%c0_64, %c0_65] : memref<32x384xbf16, #tpu.memory_space<vmem>>, vector<32x384xbf16>
    %245 = arith.truncf %243 : vector<8x32xf32> to vector<8x32xbf16>
    %cst_66 = arith.constant dense<0.000000e+00> : vector<8x384xf32>
    %246 = tpu.matmul %245, %244, %cst_66 {dimension_numbers = #tpu.dot_dimension_numbers<[1], [0], [0], [1], [0, 0, 1, 1], [], []>} : vector<8x32xbf16>, vector<32x384xbf16>, vector<8x384xf32> -> vector<8x384xf32>
    %247 = vector.extract_strided_slice %242 {offsets = [0, 0], sizes = [8, 256], strides = [1, 1]} : vector<8x384xf32> to vector<8x256xf32>
    %248 = vector.extract_strided_slice %246 {offsets = [0, 0], sizes = [8, 256], strides = [1, 1]} : vector<8x384xf32> to vector<8x256xf32>
    %249 = arith.addf %247, %248 : vector<8x256xf32>
    %250 = arith.negf %249 : vector<8x256xf32>
    %251 = math.exp %250 : vector<8x256xf32>
    %cst_67 = arith.constant 1.000000e+00 : f32
    %252 = vector.broadcast %cst_67 : f32 to vector<8x256xf32>
    %253 = arith.addf %252, %251 : vector<8x256xf32>
    %254 = arith.divf %252, %253 : vector<8x256xf32>
    %255 = vector.extract_strided_slice %254 {offsets = [0, 0], sizes = [8, 128], strides = [1, 1]} : vector<8x256xf32> to vector<8x128xf32>
    %256 = vector.extract_strided_slice %254 {offsets = [0, 128], sizes = [8, 128], strides = [1, 1]} : vector<8x256xf32> to vector<8x128xf32>
    %257 = vector.extract_strided_slice %242 {offsets = [0, 256], sizes = [8, 128], strides = [1, 1]} : vector<8x384xf32> to vector<8x128xf32>
    %258 = vector.extract_strided_slice %246 {offsets = [0, 256], sizes = [8, 128], strides = [1, 1]} : vector<8x384xf32> to vector<8x128xf32>
    %259 = vector.broadcast %15 : vector<1x128xf32> to vector<8x128xf32>
    %260 = arith.addf %258, %259 : vector<8x128xf32>
    %261 = arith.mulf %255, %260 : vector<8x128xf32>
    %262 = arith.addf %257, %261 : vector<8x128xf32>
    %263 = math.tanh %262 : vector<8x128xf32>
    %cst_68 = arith.constant 1.000000e+00 : f32
    %264 = vector.broadcast %cst_68 : f32 to vector<8x128xf32>
    %265 = arith.subf %264, %256 : vector<8x128xf32>
    %266 = arith.mulf %265, %263 : vector<8x128xf32>
    %267 = arith.mulf %256, %195 : vector<8x128xf32>
    %268 = arith.addf %266, %267 : vector<8x128xf32>
    %269 = tpu.concatenate %268, %219 in 1 : vector<8x128xf32>, vector<8x128xf32> -> vector<8x256xf32>
    %c0_69 = arith.constant 0 : index
    %c0_70 = arith.constant 0 : index
    %270 = vector.load %arg8[%c0_69, %c0_70] : memref<256x512xbf16, #tpu.memory_space<vmem>>, vector<256x512xbf16>
    %271 = arith.truncf %269 : vector<8x256xf32> to vector<8x256xbf16>
    %cst_71 = arith.constant dense<0.000000e+00> : vector<8x512xf32>
    %272 = tpu.matmul %271, %270, %cst_71 {dimension_numbers = #tpu.dot_dimension_numbers<[1], [0], [0], [1], [0, 0, 1, 1], [], []>} : vector<8x256xbf16>, vector<256x512xbf16>, vector<8x512xf32> -> vector<8x512xf32>
    %273 = vector.broadcast %16 : vector<1x512xf32> to vector<8x512xf32>
    %274 = arith.addf %272, %273 : vector<8x512xf32>
    %275 = vector.extract_strided_slice %274 {offsets = [0, 0], sizes = [8, 256], strides = [1, 1]} : vector<8x512xf32> to vector<8x256xf32>
    %276 = arith.negf %275 : vector<8x256xf32>
    %277 = math.exp %276 : vector<8x256xf32>
    %cst_72 = arith.constant 1.000000e+00 : f32
    %278 = vector.broadcast %cst_72 : f32 to vector<8x256xf32>
    %279 = arith.addf %278, %277 : vector<8x256xf32>
    %280 = arith.divf %278, %279 : vector<8x256xf32>
    %281 = vector.extract_strided_slice %280 {offsets = [0, 0], sizes = [8, 128], strides = [1, 1]} : vector<8x256xf32> to vector<8x128xf32>
    %282 = vector.extract_strided_slice %280 {offsets = [0, 128], sizes = [8, 128], strides = [1, 1]} : vector<8x256xf32> to vector<8x128xf32>
    %283 = vector.extract_strided_slice %274 {offsets = [0, 256], sizes = [8, 128], strides = [1, 1]} : vector<8x512xf32> to vector<8x128xf32>
    %284 = vector.extract_strided_slice %274 {offsets = [0, 384], sizes = [8, 128], strides = [1, 1]} : vector<8x512xf32> to vector<8x128xf32>
    %285 = arith.mulf %281, %284 : vector<8x128xf32>
    %286 = arith.addf %283, %285 : vector<8x128xf32>
    %287 = math.tanh %286 : vector<8x128xf32>
    %cst_73 = arith.constant 1.000000e+00 : f32
    %288 = vector.broadcast %cst_73 : f32 to vector<8x128xf32>
    %289 = arith.subf %288, %282 : vector<8x128xf32>
    %290 = arith.mulf %289, %287 : vector<8x128xf32>
    %291 = arith.mulf %282, %219 : vector<8x128xf32>
    %292 = arith.addf %290, %291 : vector<8x128xf32>
    %c3_i32 = arith.constant 3 : i32
    %293 = vector.broadcast %c3_i32 : i32 to vector<8x1xi32>
    %294 = arith.cmpi sgt, %0, %293 : vector<8x1xi32>
    %cst_74 = arith.constant 0.000000e+00 : f32
    %295 = vector.shape_cast %294 : vector<8x1xi1> to vector<8x1xi1>
    %296 = vector.broadcast %295 : vector<8x1xi1> to vector<8x128xi1>
    %297 = vector.broadcast %cst_74 : f32 to vector<8x128xf32>
    %298 = arith.select %296, %292, %297 : vector<8x128xi1>, vector<8x128xf32>
    %299 = arith.mulf %298, %13 : vector<8x128xf32>
    %cst_75 = arith.constant dense<0.000000e+00> : vector<8xf32>
    %300 = vector.multi_reduction <add>, %299, %cst_75 [1] : vector<8x128xf32> to vector<8xf32>
    %301 = vector.shape_cast %300 : vector<8xf32> to vector<8x1xf32>
    %302 = arith.maximumf %229, %301 : vector<8x1xf32>
    %303 = arith.subf %229, %302 : vector<8x1xf32>
    %304 = math.exp %303 : vector<8x1xf32>
    %305 = arith.subf %301, %302 : vector<8x1xf32>
    %306 = math.exp %305 : vector<8x1xf32>
    %307 = arith.mulf %304, %235 : vector<8x1xf32>
    %308 = arith.addf %307, %306 : vector<8x1xf32>
    %309 = vector.broadcast %304 : vector<8x1xf32> to vector<8x128xf32>
    %310 = arith.mulf %309, %240 : vector<8x128xf32>
    %311 = vector.broadcast %306 : vector<8x1xf32> to vector<8x128xf32>
    %312 = arith.mulf %311, %298 : vector<8x128xf32>
    %313 = arith.addf %310, %312 : vector<8x128xf32>
    %c32 = arith.constant 32 : index
    %c0_76 = arith.constant 0 : index
    %314 = vector.load %arg12[%c32, %c0_76] : memref<64x384xf32, #tpu.memory_space<vmem>>, vector<8x384xf32>
    %315 = arith.addf %314, %11 : vector<8x384xf32>
    %316 = vector.extract_strided_slice %268 {offsets = [0, 0], sizes = [8, 32], strides = [1, 1]} : vector<8x128xf32> to vector<8x32xf32>
    %c0_77 = arith.constant 0 : index
    %c0_78 = arith.constant 0 : index
    %317 = vector.load %arg7[%c0_77, %c0_78] : memref<32x384xbf16, #tpu.memory_space<vmem>>, vector<32x384xbf16>
    %318 = arith.truncf %316 : vector<8x32xf32> to vector<8x32xbf16>
    %cst_79 = arith.constant dense<0.000000e+00> : vector<8x384xf32>
    %319 = tpu.matmul %318, %317, %cst_79 {dimension_numbers = #tpu.dot_dimension_numbers<[1], [0], [0], [1], [0, 0, 1, 1], [], []>} : vector<8x32xbf16>, vector<32x384xbf16>, vector<8x384xf32> -> vector<8x384xf32>
    %320 = vector.extract_strided_slice %315 {offsets = [0, 0], sizes = [8, 256], strides = [1, 1]} : vector<8x384xf32> to vector<8x256xf32>
    %321 = vector.extract_strided_slice %319 {offsets = [0, 0], sizes = [8, 256], strides = [1, 1]} : vector<8x384xf32> to vector<8x256xf32>
    %322 = arith.addf %320, %321 : vector<8x256xf32>
    %323 = arith.negf %322 : vector<8x256xf32>
    %324 = math.exp %323 : vector<8x256xf32>
    %cst_80 = arith.constant 1.000000e+00 : f32
    %325 = vector.broadcast %cst_80 : f32 to vector<8x256xf32>
    %326 = arith.addf %325, %324 : vector<8x256xf32>
    %327 = arith.divf %325, %326 : vector<8x256xf32>
    %328 = vector.extract_strided_slice %327 {offsets = [0, 0], sizes = [8, 128], strides = [1, 1]} : vector<8x256xf32> to vector<8x128xf32>
    %329 = vector.extract_strided_slice %327 {offsets = [0, 128], sizes = [8, 128], strides = [1, 1]} : vector<8x256xf32> to vector<8x128xf32>
    %330 = vector.extract_strided_slice %315 {offsets = [0, 256], sizes = [8, 128], strides = [1, 1]} : vector<8x384xf32> to vector<8x128xf32>
    %331 = vector.extract_strided_slice %319 {offsets = [0, 256], sizes = [8, 128], strides = [1, 1]} : vector<8x384xf32> to vector<8x128xf32>
    %332 = vector.broadcast %15 : vector<1x128xf32> to vector<8x128xf32>
    %333 = arith.addf %331, %332 : vector<8x128xf32>
    %334 = arith.mulf %328, %333 : vector<8x128xf32>
    %335 = arith.addf %330, %334 : vector<8x128xf32>
    %336 = math.tanh %335 : vector<8x128xf32>
    %cst_81 = arith.constant 1.000000e+00 : f32
    %337 = vector.broadcast %cst_81 : f32 to vector<8x128xf32>
    %338 = arith.subf %337, %329 : vector<8x128xf32>
    %339 = arith.mulf %338, %336 : vector<8x128xf32>
    %340 = arith.mulf %329, %268 : vector<8x128xf32>
    %341 = arith.addf %339, %340 : vector<8x128xf32>
    %342 = tpu.concatenate %341, %292 in 1 : vector<8x128xf32>, vector<8x128xf32> -> vector<8x256xf32>
    %c0_82 = arith.constant 0 : index
    %c0_83 = arith.constant 0 : index
    %343 = vector.load %arg8[%c0_82, %c0_83] : memref<256x512xbf16, #tpu.memory_space<vmem>>, vector<256x512xbf16>
    %344 = arith.truncf %342 : vector<8x256xf32> to vector<8x256xbf16>
    %cst_84 = arith.constant dense<0.000000e+00> : vector<8x512xf32>
    %345 = tpu.matmul %344, %343, %cst_84 {dimension_numbers = #tpu.dot_dimension_numbers<[1], [0], [0], [1], [0, 0, 1, 1], [], []>} : vector<8x256xbf16>, vector<256x512xbf16>, vector<8x512xf32> -> vector<8x512xf32>
    %346 = vector.broadcast %16 : vector<1x512xf32> to vector<8x512xf32>
    %347 = arith.addf %345, %346 : vector<8x512xf32>
    %348 = vector.extract_strided_slice %347 {offsets = [0, 0], sizes = [8, 256], strides = [1, 1]} : vector<8x512xf32> to vector<8x256xf32>
    %349 = arith.negf %348 : vector<8x256xf32>
    %350 = math.exp %349 : vector<8x256xf32>
    %cst_85 = arith.constant 1.000000e+00 : f32
    %351 = vector.broadcast %cst_85 : f32 to vector<8x256xf32>
    %352 = arith.addf %351, %350 : vector<8x256xf32>
    %353 = arith.divf %351, %352 : vector<8x256xf32>
    %354 = vector.extract_strided_slice %353 {offsets = [0, 0], sizes = [8, 128], strides = [1, 1]} : vector<8x256xf32> to vector<8x128xf32>
    %355 = vector.extract_strided_slice %353 {offsets = [0, 128], sizes = [8, 128], strides = [1, 1]} : vector<8x256xf32> to vector<8x128xf32>
    %356 = vector.extract_strided_slice %347 {offsets = [0, 256], sizes = [8, 128], strides = [1, 1]} : vector<8x512xf32> to vector<8x128xf32>
    %357 = vector.extract_strided_slice %347 {offsets = [0, 384], sizes = [8, 128], strides = [1, 1]} : vector<8x512xf32> to vector<8x128xf32>
    %358 = arith.mulf %354, %357 : vector<8x128xf32>
    %359 = arith.addf %356, %358 : vector<8x128xf32>
    %360 = math.tanh %359 : vector<8x128xf32>
    %cst_86 = arith.constant 1.000000e+00 : f32
    %361 = vector.broadcast %cst_86 : f32 to vector<8x128xf32>
    %362 = arith.subf %361, %355 : vector<8x128xf32>
    %363 = arith.mulf %362, %360 : vector<8x128xf32>
    %364 = arith.mulf %355, %292 : vector<8x128xf32>
    %365 = arith.addf %363, %364 : vector<8x128xf32>
    %c4_i32 = arith.constant 4 : i32
    %366 = vector.broadcast %c4_i32 : i32 to vector<8x1xi32>
    %367 = arith.cmpi sgt, %0, %366 : vector<8x1xi32>
    %cst_87 = arith.constant 0.000000e+00 : f32
    %368 = vector.shape_cast %367 : vector<8x1xi1> to vector<8x1xi1>
    %369 = vector.broadcast %368 : vector<8x1xi1> to vector<8x128xi1>
    %370 = vector.broadcast %cst_87 : f32 to vector<8x128xf32>
    %371 = arith.select %369, %365, %370 : vector<8x128xi1>, vector<8x128xf32>
    %372 = arith.mulf %371, %13 : vector<8x128xf32>
    %cst_88 = arith.constant dense<0.000000e+00> : vector<8xf32>
    %373 = vector.multi_reduction <add>, %372, %cst_88 [1] : vector<8x128xf32> to vector<8xf32>
    %374 = vector.shape_cast %373 : vector<8xf32> to vector<8x1xf32>
    %375 = arith.maximumf %302, %374 : vector<8x1xf32>
    %376 = arith.subf %302, %375 : vector<8x1xf32>
    %377 = math.exp %376 : vector<8x1xf32>
    %378 = arith.subf %374, %375 : vector<8x1xf32>
    %379 = math.exp %378 : vector<8x1xf32>
    %380 = arith.mulf %377, %308 : vector<8x1xf32>
    %381 = arith.addf %380, %379 : vector<8x1xf32>
    %382 = vector.broadcast %377 : vector<8x1xf32> to vector<8x128xf32>
    %383 = arith.mulf %382, %313 : vector<8x128xf32>
    %384 = vector.broadcast %379 : vector<8x1xf32> to vector<8x128xf32>
    %385 = arith.mulf %384, %371 : vector<8x128xf32>
    %386 = arith.addf %383, %385 : vector<8x128xf32>
    %c40 = arith.constant 40 : index
    %c0_89 = arith.constant 0 : index
    %387 = vector.load %arg12[%c40, %c0_89] : memref<64x384xf32, #tpu.memory_space<vmem>>, vector<8x384xf32>
    %388 = arith.addf %387, %11 : vector<8x384xf32>
    %389 = vector.extract_strided_slice %341 {offsets = [0, 0], sizes = [8, 32], strides = [1, 1]} : vector<8x128xf32> to vector<8x32xf32>
    %c0_90 = arith.constant 0 : index
    %c0_91 = arith.constant 0 : index
    %390 = vector.load %arg7[%c0_90, %c0_91] : memref<32x384xbf16, #tpu.memory_space<vmem>>, vector<32x384xbf16>
    %391 = arith.truncf %389 : vector<8x32xf32> to vector<8x32xbf16>
    %cst_92 = arith.constant dense<0.000000e+00> : vector<8x384xf32>
    %392 = tpu.matmul %391, %390, %cst_92 {dimension_numbers = #tpu.dot_dimension_numbers<[1], [0], [0], [1], [0, 0, 1, 1], [], []>} : vector<8x32xbf16>, vector<32x384xbf16>, vector<8x384xf32> -> vector<8x384xf32>
    %393 = vector.extract_strided_slice %388 {offsets = [0, 0], sizes = [8, 256], strides = [1, 1]} : vector<8x384xf32> to vector<8x256xf32>
    %394 = vector.extract_strided_slice %392 {offsets = [0, 0], sizes = [8, 256], strides = [1, 1]} : vector<8x384xf32> to vector<8x256xf32>
    %395 = arith.addf %393, %394 : vector<8x256xf32>
    %396 = arith.negf %395 : vector<8x256xf32>
    %397 = math.exp %396 : vector<8x256xf32>
    %cst_93 = arith.constant 1.000000e+00 : f32
    %398 = vector.broadcast %cst_93 : f32 to vector<8x256xf32>
    %399 = arith.addf %398, %397 : vector<8x256xf32>
    %400 = arith.divf %398, %399 : vector<8x256xf32>
    %401 = vector.extract_strided_slice %400 {offsets = [0, 0], sizes = [8, 128], strides = [1, 1]} : vector<8x256xf32> to vector<8x128xf32>
    %402 = vector.extract_strided_slice %400 {offsets = [0, 128], sizes = [8, 128], strides = [1, 1]} : vector<8x256xf32> to vector<8x128xf32>
    %403 = vector.extract_strided_slice %388 {offsets = [0, 256], sizes = [8, 128], strides = [1, 1]} : vector<8x384xf32> to vector<8x128xf32>
    %404 = vector.extract_strided_slice %392 {offsets = [0, 256], sizes = [8, 128], strides = [1, 1]} : vector<8x384xf32> to vector<8x128xf32>
    %405 = vector.broadcast %15 : vector<1x128xf32> to vector<8x128xf32>
    %406 = arith.addf %404, %405 : vector<8x128xf32>
    %407 = arith.mulf %401, %406 : vector<8x128xf32>
    %408 = arith.addf %403, %407 : vector<8x128xf32>
    %409 = math.tanh %408 : vector<8x128xf32>
    %cst_94 = arith.constant 1.000000e+00 : f32
    %410 = vector.broadcast %cst_94 : f32 to vector<8x128xf32>
    %411 = arith.subf %410, %402 : vector<8x128xf32>
    %412 = arith.mulf %411, %409 : vector<8x128xf32>
    %413 = arith.mulf %402, %341 : vector<8x128xf32>
    %414 = arith.addf %412, %413 : vector<8x128xf32>
    %415 = tpu.concatenate %414, %365 in 1 : vector<8x128xf32>, vector<8x128xf32> -> vector<8x256xf32>
    %c0_95 = arith.constant 0 : index
    %c0_96 = arith.constant 0 : index
    %416 = vector.load %arg8[%c0_95, %c0_96] : memref<256x512xbf16, #tpu.memory_space<vmem>>, vector<256x512xbf16>
    %417 = arith.truncf %415 : vector<8x256xf32> to vector<8x256xbf16>
    %cst_97 = arith.constant dense<0.000000e+00> : vector<8x512xf32>
    %418 = tpu.matmul %417, %416, %cst_97 {dimension_numbers = #tpu.dot_dimension_numbers<[1], [0], [0], [1], [0, 0, 1, 1], [], []>} : vector<8x256xbf16>, vector<256x512xbf16>, vector<8x512xf32> -> vector<8x512xf32>
    %419 = vector.broadcast %16 : vector<1x512xf32> to vector<8x512xf32>
    %420 = arith.addf %418, %419 : vector<8x512xf32>
    %421 = vector.extract_strided_slice %420 {offsets = [0, 0], sizes = [8, 256], strides = [1, 1]} : vector<8x512xf32> to vector<8x256xf32>
    %422 = arith.negf %421 : vector<8x256xf32>
    %423 = math.exp %422 : vector<8x256xf32>
    %cst_98 = arith.constant 1.000000e+00 : f32
    %424 = vector.broadcast %cst_98 : f32 to vector<8x256xf32>
    %425 = arith.addf %424, %423 : vector<8x256xf32>
    %426 = arith.divf %424, %425 : vector<8x256xf32>
    %427 = vector.extract_strided_slice %426 {offsets = [0, 0], sizes = [8, 128], strides = [1, 1]} : vector<8x256xf32> to vector<8x128xf32>
    %428 = vector.extract_strided_slice %426 {offsets = [0, 128], sizes = [8, 128], strides = [1, 1]} : vector<8x256xf32> to vector<8x128xf32>
    %429 = vector.extract_strided_slice %420 {offsets = [0, 256], sizes = [8, 128], strides = [1, 1]} : vector<8x512xf32> to vector<8x128xf32>
    %430 = vector.extract_strided_slice %420 {offsets = [0, 384], sizes = [8, 128], strides = [1, 1]} : vector<8x512xf32> to vector<8x128xf32>
    %431 = arith.mulf %427, %430 : vector<8x128xf32>
    %432 = arith.addf %429, %431 : vector<8x128xf32>
    %433 = math.tanh %432 : vector<8x128xf32>
    %cst_99 = arith.constant 1.000000e+00 : f32
    %434 = vector.broadcast %cst_99 : f32 to vector<8x128xf32>
    %435 = arith.subf %434, %428 : vector<8x128xf32>
    %436 = arith.mulf %435, %433 : vector<8x128xf32>
    %437 = arith.mulf %428, %365 : vector<8x128xf32>
    %438 = arith.addf %436, %437 : vector<8x128xf32>
    %c5_i32 = arith.constant 5 : i32
    %439 = vector.broadcast %c5_i32 : i32 to vector<8x1xi32>
    %440 = arith.cmpi sgt, %0, %439 : vector<8x1xi32>
    %cst_100 = arith.constant 0.000000e+00 : f32
    %441 = vector.shape_cast %440 : vector<8x1xi1> to vector<8x1xi1>
    %442 = vector.broadcast %441 : vector<8x1xi1> to vector<8x128xi1>
    %443 = vector.broadcast %cst_100 : f32 to vector<8x128xf32>
    %444 = arith.select %442, %438, %443 : vector<8x128xi1>, vector<8x128xf32>
    %445 = arith.mulf %444, %13 : vector<8x128xf32>
    %cst_101 = arith.constant dense<0.000000e+00> : vector<8xf32>
    %446 = vector.multi_reduction <add>, %445, %cst_101 [1] : vector<8x128xf32> to vector<8xf32>
    %447 = vector.shape_cast %446 : vector<8xf32> to vector<8x1xf32>
    %448 = arith.maximumf %375, %447 : vector<8x1xf32>
    %449 = arith.subf %375, %448 : vector<8x1xf32>
    %450 = math.exp %449 : vector<8x1xf32>
    %451 = arith.subf %447, %448 : vector<8x1xf32>
    %452 = math.exp %451 : vector<8x1xf32>
    %453 = arith.mulf %450, %381 : vector<8x1xf32>
    %454 = arith.addf %453, %452 : vector<8x1xf32>
    %455 = vector.broadcast %450 : vector<8x1xf32> to vector<8x128xf32>
    %456 = arith.mulf %455, %386 : vector<8x128xf32>
    %457 = vector.broadcast %452 : vector<8x1xf32> to vector<8x128xf32>
    %458 = arith.mulf %457, %444 : vector<8x128xf32>
    %459 = arith.addf %456, %458 : vector<8x128xf32>
    %c48 = arith.constant 48 : index
    %c0_102 = arith.constant 0 : index
    %460 = vector.load %arg12[%c48, %c0_102] : memref<64x384xf32, #tpu.memory_space<vmem>>, vector<8x384xf32>
    %461 = arith.addf %460, %11 : vector<8x384xf32>
    %462 = vector.extract_strided_slice %414 {offsets = [0, 0], sizes = [8, 32], strides = [1, 1]} : vector<8x128xf32> to vector<8x32xf32>
    %c0_103 = arith.constant 0 : index
    %c0_104 = arith.constant 0 : index
    %463 = vector.load %arg7[%c0_103, %c0_104] : memref<32x384xbf16, #tpu.memory_space<vmem>>, vector<32x384xbf16>
    %464 = arith.truncf %462 : vector<8x32xf32> to vector<8x32xbf16>
    %cst_105 = arith.constant dense<0.000000e+00> : vector<8x384xf32>
    %465 = tpu.matmul %464, %463, %cst_105 {dimension_numbers = #tpu.dot_dimension_numbers<[1], [0], [0], [1], [0, 0, 1, 1], [], []>} : vector<8x32xbf16>, vector<32x384xbf16>, vector<8x384xf32> -> vector<8x384xf32>
    %466 = vector.extract_strided_slice %461 {offsets = [0, 0], sizes = [8, 256], strides = [1, 1]} : vector<8x384xf32> to vector<8x256xf32>
    %467 = vector.extract_strided_slice %465 {offsets = [0, 0], sizes = [8, 256], strides = [1, 1]} : vector<8x384xf32> to vector<8x256xf32>
    %468 = arith.addf %466, %467 : vector<8x256xf32>
    %469 = arith.negf %468 : vector<8x256xf32>
    %470 = math.exp %469 : vector<8x256xf32>
    %cst_106 = arith.constant 1.000000e+00 : f32
    %471 = vector.broadcast %cst_106 : f32 to vector<8x256xf32>
    %472 = arith.addf %471, %470 : vector<8x256xf32>
    %473 = arith.divf %471, %472 : vector<8x256xf32>
    %474 = vector.extract_strided_slice %473 {offsets = [0, 0], sizes = [8, 128], strides = [1, 1]} : vector<8x256xf32> to vector<8x128xf32>
    %475 = vector.extract_strided_slice %473 {offsets = [0, 128], sizes = [8, 128], strides = [1, 1]} : vector<8x256xf32> to vector<8x128xf32>
    %476 = vector.extract_strided_slice %461 {offsets = [0, 256], sizes = [8, 128], strides = [1, 1]} : vector<8x384xf32> to vector<8x128xf32>
    %477 = vector.extract_strided_slice %465 {offsets = [0, 256], sizes = [8, 128], strides = [1, 1]} : vector<8x384xf32> to vector<8x128xf32>
    %478 = vector.broadcast %15 : vector<1x128xf32> to vector<8x128xf32>
    %479 = arith.addf %477, %478 : vector<8x128xf32>
    %480 = arith.mulf %474, %479 : vector<8x128xf32>
    %481 = arith.addf %476, %480 : vector<8x128xf32>
    %482 = math.tanh %481 : vector<8x128xf32>
    %cst_107 = arith.constant 1.000000e+00 : f32
    %483 = vector.broadcast %cst_107 : f32 to vector<8x128xf32>
    %484 = arith.subf %483, %475 : vector<8x128xf32>
    %485 = arith.mulf %484, %482 : vector<8x128xf32>
    %486 = arith.mulf %475, %414 : vector<8x128xf32>
    %487 = arith.addf %485, %486 : vector<8x128xf32>
    %488 = tpu.concatenate %487, %438 in 1 : vector<8x128xf32>, vector<8x128xf32> -> vector<8x256xf32>
    %c0_108 = arith.constant 0 : index
    %c0_109 = arith.constant 0 : index
    %489 = vector.load %arg8[%c0_108, %c0_109] : memref<256x512xbf16, #tpu.memory_space<vmem>>, vector<256x512xbf16>
    %490 = arith.truncf %488 : vector<8x256xf32> to vector<8x256xbf16>
    %cst_110 = arith.constant dense<0.000000e+00> : vector<8x512xf32>
    %491 = tpu.matmul %490, %489, %cst_110 {dimension_numbers = #tpu.dot_dimension_numbers<[1], [0], [0], [1], [0, 0, 1, 1], [], []>} : vector<8x256xbf16>, vector<256x512xbf16>, vector<8x512xf32> -> vector<8x512xf32>
    %492 = vector.broadcast %16 : vector<1x512xf32> to vector<8x512xf32>
    %493 = arith.addf %491, %492 : vector<8x512xf32>
    %494 = vector.extract_strided_slice %493 {offsets = [0, 0], sizes = [8, 256], strides = [1, 1]} : vector<8x512xf32> to vector<8x256xf32>
    %495 = arith.negf %494 : vector<8x256xf32>
    %496 = math.exp %495 : vector<8x256xf32>
    %cst_111 = arith.constant 1.000000e+00 : f32
    %497 = vector.broadcast %cst_111 : f32 to vector<8x256xf32>
    %498 = arith.addf %497, %496 : vector<8x256xf32>
    %499 = arith.divf %497, %498 : vector<8x256xf32>
    %500 = vector.extract_strided_slice %499 {offsets = [0, 0], sizes = [8, 128], strides = [1, 1]} : vector<8x256xf32> to vector<8x128xf32>
    %501 = vector.extract_strided_slice %499 {offsets = [0, 128], sizes = [8, 128], strides = [1, 1]} : vector<8x256xf32> to vector<8x128xf32>
    %502 = vector.extract_strided_slice %493 {offsets = [0, 256], sizes = [8, 128], strides = [1, 1]} : vector<8x512xf32> to vector<8x128xf32>
    %503 = vector.extract_strided_slice %493 {offsets = [0, 384], sizes = [8, 128], strides = [1, 1]} : vector<8x512xf32> to vector<8x128xf32>
    %504 = arith.mulf %500, %503 : vector<8x128xf32>
    %505 = arith.addf %502, %504 : vector<8x128xf32>
    %506 = math.tanh %505 : vector<8x128xf32>
    %cst_112 = arith.constant 1.000000e+00 : f32
    %507 = vector.broadcast %cst_112 : f32 to vector<8x128xf32>
    %508 = arith.subf %507, %501 : vector<8x128xf32>
    %509 = arith.mulf %508, %506 : vector<8x128xf32>
    %510 = arith.mulf %501, %438 : vector<8x128xf32>
    %511 = arith.addf %509, %510 : vector<8x128xf32>
    %c6_i32 = arith.constant 6 : i32
    %512 = vector.broadcast %c6_i32 : i32 to vector<8x1xi32>
    %513 = arith.cmpi sgt, %0, %512 : vector<8x1xi32>
    %cst_113 = arith.constant 0.000000e+00 : f32
    %514 = vector.shape_cast %513 : vector<8x1xi1> to vector<8x1xi1>
    %515 = vector.broadcast %514 : vector<8x1xi1> to vector<8x128xi1>
    %516 = vector.broadcast %cst_113 : f32 to vector<8x128xf32>
    %517 = arith.select %515, %511, %516 : vector<8x128xi1>, vector<8x128xf32>
    %518 = arith.mulf %517, %13 : vector<8x128xf32>
    %cst_114 = arith.constant dense<0.000000e+00> : vector<8xf32>
    %519 = vector.multi_reduction <add>, %518, %cst_114 [1] : vector<8x128xf32> to vector<8xf32>
    %520 = vector.shape_cast %519 : vector<8xf32> to vector<8x1xf32>
    %521 = arith.maximumf %448, %520 : vector<8x1xf32>
    %522 = arith.subf %448, %521 : vector<8x1xf32>
    %523 = math.exp %522 : vector<8x1xf32>
    %524 = arith.subf %520, %521 : vector<8x1xf32>
    %525 = math.exp %524 : vector<8x1xf32>
    %526 = arith.mulf %523, %454 : vector<8x1xf32>
    %527 = arith.addf %526, %525 : vector<8x1xf32>
    %528 = vector.broadcast %523 : vector<8x1xf32> to vector<8x128xf32>
    %529 = arith.mulf %528, %459 : vector<8x128xf32>
    %530 = vector.broadcast %525 : vector<8x1xf32> to vector<8x128xf32>
    %531 = arith.mulf %530, %517 : vector<8x128xf32>
    %532 = arith.addf %529, %531 : vector<8x128xf32>
    %c56 = arith.constant 56 : index
    %c0_115 = arith.constant 0 : index
    %533 = vector.load %arg12[%c56, %c0_115] : memref<64x384xf32, #tpu.memory_space<vmem>>, vector<8x384xf32>
    %534 = arith.addf %533, %11 : vector<8x384xf32>
    %535 = vector.extract_strided_slice %487 {offsets = [0, 0], sizes = [8, 32], strides = [1, 1]} : vector<8x128xf32> to vector<8x32xf32>
    %c0_116 = arith.constant 0 : index
    %c0_117 = arith.constant 0 : index
    %536 = vector.load %arg7[%c0_116, %c0_117] : memref<32x384xbf16, #tpu.memory_space<vmem>>, vector<32x384xbf16>
    %537 = arith.truncf %535 : vector<8x32xf32> to vector<8x32xbf16>
    %cst_118 = arith.constant dense<0.000000e+00> : vector<8x384xf32>
    %538 = tpu.matmul %537, %536, %cst_118 {dimension_numbers = #tpu.dot_dimension_numbers<[1], [0], [0], [1], [0, 0, 1, 1], [], []>} : vector<8x32xbf16>, vector<32x384xbf16>, vector<8x384xf32> -> vector<8x384xf32>
    %539 = vector.extract_strided_slice %534 {offsets = [0, 0], sizes = [8, 256], strides = [1, 1]} : vector<8x384xf32> to vector<8x256xf32>
    %540 = vector.extract_strided_slice %538 {offsets = [0, 0], sizes = [8, 256], strides = [1, 1]} : vector<8x384xf32> to vector<8x256xf32>
    %541 = arith.addf %539, %540 : vector<8x256xf32>
    %542 = arith.negf %541 : vector<8x256xf32>
    %543 = math.exp %542 : vector<8x256xf32>
    %cst_119 = arith.constant 1.000000e+00 : f32
    %544 = vector.broadcast %cst_119 : f32 to vector<8x256xf32>
    %545 = arith.addf %544, %543 : vector<8x256xf32>
    %546 = arith.divf %544, %545 : vector<8x256xf32>
    %547 = vector.extract_strided_slice %546 {offsets = [0, 0], sizes = [8, 128], strides = [1, 1]} : vector<8x256xf32> to vector<8x128xf32>
    %548 = vector.extract_strided_slice %546 {offsets = [0, 128], sizes = [8, 128], strides = [1, 1]} : vector<8x256xf32> to vector<8x128xf32>
    %549 = vector.extract_strided_slice %534 {offsets = [0, 256], sizes = [8, 128], strides = [1, 1]} : vector<8x384xf32> to vector<8x128xf32>
    %550 = vector.extract_strided_slice %538 {offsets = [0, 256], sizes = [8, 128], strides = [1, 1]} : vector<8x384xf32> to vector<8x128xf32>
    %551 = vector.broadcast %15 : vector<1x128xf32> to vector<8x128xf32>
    %552 = arith.addf %550, %551 : vector<8x128xf32>
    %553 = arith.mulf %547, %552 : vector<8x128xf32>
    %554 = arith.addf %549, %553 : vector<8x128xf32>
    %555 = math.tanh %554 : vector<8x128xf32>
    %cst_120 = arith.constant 1.000000e+00 : f32
    %556 = vector.broadcast %cst_120 : f32 to vector<8x128xf32>
    %557 = arith.subf %556, %548 : vector<8x128xf32>
    %558 = arith.mulf %557, %555 : vector<8x128xf32>
    %559 = arith.mulf %548, %487 : vector<8x128xf32>
    %560 = arith.addf %558, %559 : vector<8x128xf32>
    %561 = tpu.concatenate %560, %511 in 1 : vector<8x128xf32>, vector<8x128xf32> -> vector<8x256xf32>
    %c0_121 = arith.constant 0 : index
    %c0_122 = arith.constant 0 : index
    %562 = vector.load %arg8[%c0_121, %c0_122] : memref<256x512xbf16, #tpu.memory_space<vmem>>, vector<256x512xbf16>
    %563 = arith.truncf %561 : vector<8x256xf32> to vector<8x256xbf16>
    %cst_123 = arith.constant dense<0.000000e+00> : vector<8x512xf32>
    %564 = tpu.matmul %563, %562, %cst_123 {dimension_numbers = #tpu.dot_dimension_numbers<[1], [0], [0], [1], [0, 0, 1, 1], [], []>} : vector<8x256xbf16>, vector<256x512xbf16>, vector<8x512xf32> -> vector<8x512xf32>
    %565 = vector.broadcast %16 : vector<1x512xf32> to vector<8x512xf32>
    %566 = arith.addf %564, %565 : vector<8x512xf32>
    %567 = vector.extract_strided_slice %566 {offsets = [0, 0], sizes = [8, 256], strides = [1, 1]} : vector<8x512xf32> to vector<8x256xf32>
    %568 = arith.negf %567 : vector<8x256xf32>
    %569 = math.exp %568 : vector<8x256xf32>
    %cst_124 = arith.constant 1.000000e+00 : f32
    %570 = vector.broadcast %cst_124 : f32 to vector<8x256xf32>
    %571 = arith.addf %570, %569 : vector<8x256xf32>
    %572 = arith.divf %570, %571 : vector<8x256xf32>
    %573 = vector.extract_strided_slice %572 {offsets = [0, 0], sizes = [8, 128], strides = [1, 1]} : vector<8x256xf32> to vector<8x128xf32>
    %574 = vector.extract_strided_slice %572 {offsets = [0, 128], sizes = [8, 128], strides = [1, 1]} : vector<8x256xf32> to vector<8x128xf32>
    %575 = vector.extract_strided_slice %566 {offsets = [0, 256], sizes = [8, 128], strides = [1, 1]} : vector<8x512xf32> to vector<8x128xf32>
    %576 = vector.extract_strided_slice %566 {offsets = [0, 384], sizes = [8, 128], strides = [1, 1]} : vector<8x512xf32> to vector<8x128xf32>
    %577 = arith.mulf %573, %576 : vector<8x128xf32>
    %578 = arith.addf %575, %577 : vector<8x128xf32>
    %579 = math.tanh %578 : vector<8x128xf32>
    %cst_125 = arith.constant 1.000000e+00 : f32
    %580 = vector.broadcast %cst_125 : f32 to vector<8x128xf32>
    %581 = arith.subf %580, %574 : vector<8x128xf32>
    %582 = arith.mulf %581, %579 : vector<8x128xf32>
    %583 = arith.mulf %574, %511 : vector<8x128xf32>
    %584 = arith.addf %582, %583 : vector<8x128xf32>
    %c7_i32 = arith.constant 7 : i32
    %585 = vector.broadcast %c7_i32 : i32 to vector<8x1xi32>
    %586 = arith.cmpi sgt, %0, %585 : vector<8x1xi32>
    %cst_126 = arith.constant 0.000000e+00 : f32
    %587 = vector.shape_cast %586 : vector<8x1xi1> to vector<8x1xi1>
    %588 = vector.broadcast %587 : vector<8x1xi1> to vector<8x128xi1>
    %589 = vector.broadcast %cst_126 : f32 to vector<8x128xf32>
    %590 = arith.select %588, %584, %589 : vector<8x128xi1>, vector<8x128xf32>
    %591 = arith.mulf %590, %13 : vector<8x128xf32>
    %cst_127 = arith.constant dense<0.000000e+00> : vector<8xf32>
    %592 = vector.multi_reduction <add>, %591, %cst_127 [1] : vector<8x128xf32> to vector<8xf32>
    %593 = vector.shape_cast %592 : vector<8xf32> to vector<8x1xf32>
    %594 = arith.maximumf %521, %593 : vector<8x1xf32>
    %595 = arith.subf %521, %594 : vector<8x1xf32>
    %596 = math.exp %595 : vector<8x1xf32>
    %597 = arith.subf %593, %594 : vector<8x1xf32>
    %598 = math.exp %597 : vector<8x1xf32>
    %599 = arith.mulf %596, %527 : vector<8x1xf32>
    %600 = arith.addf %599, %598 : vector<8x1xf32>
    %601 = vector.broadcast %596 : vector<8x1xf32> to vector<8x128xf32>
    %602 = arith.mulf %601, %532 : vector<8x128xf32>
    %603 = vector.broadcast %598 : vector<8x1xf32> to vector<8x128xf32>
    %604 = arith.mulf %603, %590 : vector<8x128xf32>
    %605 = arith.addf %602, %604 : vector<8x128xf32>
    %606 = vector.broadcast %600 : vector<8x1xf32> to vector<8x128xf32>
    %607 = arith.divf %605, %606 : vector<8x128xf32>
    %c0_128 = arith.constant 0 : index
    %c0_129 = arith.constant 0 : index
    %608 = vector.load %arg10[%c0_128, %c0_129] : memref<128x1xbf16, #tpu.memory_space<vmem>>, vector<128x1xbf16>
    %609 = arith.truncf %607 : vector<8x128xf32> to vector<8x128xbf16>
    %cst_130 = arith.constant dense<0.000000e+00> : vector<8x1xf32>
    %610 = tpu.matmul %609, %608, %cst_130 {dimension_numbers = #tpu.dot_dimension_numbers<[1], [0], [0], [1], [0, 0, 1, 1], [], []>} : vector<8x128xbf16>, vector<128x1xbf16>, vector<8x1xf32> -> vector<8x1xf32>
    %611 = arith.addf %610, %14 : vector<8x1xf32>
    %c0_131 = arith.constant 0 : index
    %c0_132 = arith.constant 0 : index
    %612 = vector.load %arg11[%c0_131, %c0_132] : memref<8x1xf32, #tpu.memory_space<vmem>>, vector<8x1xf32>
    tpu.vector_store %arg11[%c0_131, %c0_132], %611 {strides = array<i32>} : memref<8x1xf32, #tpu.memory_space<vmem>>, vector<8x1xf32>,
    return
  }
}

</mosaic_0001>

<bundles_post_ra>
// kernel: tpu_custom_call.1
= control target key start
LH: loop header
LB: loop body
LE: loop exit
PB: predicated region body
PF: predicated region fallthrough
CT: control target
= control target key end

     0   :  { %16 = vsyncpa [#allocation4], 0  ;;  %s3708_s17 = smov [#allocation3]   ;;  %s5068_s0 = inlined_call_operand.vmem [shape: bf16[8,8], index: 0, kind: input, shape index: {}]   ;;  %s5069_s1 = inlined_call_operand.vmem [shape: bf16[64,8], index: 1, kind: input, shape index: {}]   ;;  %s5070_s2 = inlined_call_operand.vmem [shape: s32[8,1], index: 2, kind: input, shape index: {}]   ;;  %s5071_s3 = inlined_call_operand.vmem [shape: bf16[8,384], index: 3, kind: input, shape index: {}]   ;;  %s5072_s4 = inlined_call_operand.vmem [shape: bf16[8,640], index: 4, kind: input, shape index: {}]   ;;  %s5073_s5 = inlined_call_operand.vmem [shape: f32[1,640], index: 5, kind: input, shape index: {}]   ;;  %s5074_s6 = inlined_call_operand.vmem [shape: f32[1,128], index: 6, kind: input, shape index: {}]   ;;  %s5075_s7 = inlined_call_operand.vmem [shape: bf16[32,384], index: 7, kind: input, shape index: {}]   ;;  %s5076_s8 = inlined_call_operand.hbm [shape: bf16[256,512], index: 8, kind: input, shape index: {}]   ;;  %s5077_s9 = inlined_call_operand.vmem [shape: f32[1,512], index: 9, kind: input, shape index: {}]   ;;  %s5078_s10 = inlined_call_operand.vmem [shape: bf16[128,1], index: 10, kind: input, shape index: {}]   ;;  %s5079_s11 = inlined_call_operand.vmem [shape: f32[8,1], index: 11, kind: output, shape index: {}]  }
   0x1   :  { %s38_s18 = sshll.u32 %s3708_s17, 4  ;;  %s39_s18 = int_to_ptr.vmem [resolvable:$true] %s38_s18 }
   0x2   :  { %s3694_s19 = scalar_lea.vmem %s39_s18, 8192  ;;  %p3699_p1 = scmp.lt.s32.totalorder %s39_s18, %s39_s18 }
   0x3   :  { %p3695_p0 = scmp.ne.s32.totalorder %s39_s18, %s3694_s19  ;;  %p3700_p2 = scmp.lt.s32.totalorder %s3694_s19, %s3694_s19 }
   0x5   :  { %p3701_p3 = por %p3700_p2, %p3699_p1 }
   0x7   :  { %p3702_p4 = pnand %p3701_p3, %p3695_p0 }
   0x9   :  { %3705 = shalt.err (!%p3702_p4)
}
   0xa   :  { %s3709_s20 = smov 256   ;;  %s3710_s21 = smov 16  }
   0xb   :  { %44 = dma.hbm_to_vmem [thread:$0]  %s5076_s8, 8192, %s39_s18, [#allocation4], %s3709_s20, %s3709_s20, %s3710_s21  }
   0xc   :  { %3706 = dma.done.wait [#allocation4], 8192  }
   0xd   :  { %3707 = vsyncadd [#allocation4], 4294959104  ;;  %v5081_v0 = vmov 0   ;;  %v63_v1 = vld [vmem:[%s5071_s3] sm:$0xff]  ;;  %vm106_vm0 = vcmask 1043456   ;;  %v279_v9 = vld [vmem:[%s5072_s4 + $0x8] sm:$0xff]  ;;  %v283_v29 = vlaneseq }
   0xe   :  { %148 = vmatprep.mubr.bf16.mxu0 %v5081_v0  ;;  %371 = vmatprep.mubr.bf16.mxu1 %v5081_v0  ;;  %v278_v2 = vld [vmem:[%s5072_s4] sm:$0xff]  ;;  %v2929_v3 = vcombine.high %v63_v1, %v63_v1  ;;  %v2928_v5 = vcombine.low %v63_v1, %v63_v1  ;;  %v3230_v8 = vld [vmem:[%s5071_s3 + $0x8] ss:$0 sps:$4 sm:$0xff]   ;;  %v2943_v12 = vcombine.high %v279_v9, %v279_v9  ;;  %vm93_vm1 = vcmask 64512   ;;  %v3240_v23 = vld [vmem:[%s5069_s1 + $0x10] sm:$0xff]  }
   0xf   :  { %3223 = vset.pattern.permute.xlu0 %v5081_v0  ;;  %3224 = vset.pattern.permute.xlu1 %v5081_v0  ;;  %v2941_v4 = vcombine.high %v278_v2, %v278_v2  ;;  %v2940_v6 = vcombine.low %v278_v2, %v278_v2  ;;  %v3229_v7 = vld [vmem:[%s5069_s1] sm:$0xff]   ;;  %v2942_v13 = vcombine.low %v279_v9, %v279_v9  ;;  %v114_v15 = vsel %vm106_vm0, %v3230_v8, 0  ;;  %v3811_v17 = vld [vmem:[%s5075_s7 + $0x1c] ss:$12 sps:$4 sm:$0xff]   ;;  %v3242_v25 = vld [vmem:[%s5072_s4 + $0x10] ss:$0 sps:$4 sm:$0xff]  }
  0x10   :  { %2931 = vmatprep.subr.msk.bf16.mxu0 %vm106_vm0, %v2929_v3  ;;  %v108_v10 = vsel %vm106_vm0, %v2928_v5, 0  ;;  %v54_v14 = vld [vmem:[%s5068_s0] sm:$0xf]  ;;  %5238 = vst [vmem:[#allocation6_spill] sm:$0xff] %v3811_v17  ;;  %v3233_v18 = vld [vmem:[%s5069_s1 + $0x8] sm:$0xff]   ;;  %v5083_v20 = vmov 0.0  }
  0x11   :  { %2945 = vmatprep.subr.msk.bf16.mxu1 %vm106_vm0, %v2941_v4  ;;  %v325_v11 = vsel %vm106_vm0, %v2940_v6, 0  ;;  %131 = vmatpush1.bf16.msra.mxu0 %v108_v10  ;;  %v331_v16 = vsel %vm106_vm0, %v2942_v13, 0  ;;  %v3824_v19 = vld [vmem:[%s5075_s7 + $0x18] ss:$12 sps:$4 sm:$0xff]   ;;  %v3835_v22 = vld [vmem:[%s5075_s7] ss:$12 sps:$4 sm:$0xff]  }
  0x12   :  { %354 = vmatpush1.bf16.msra.mxu1 %v325_v11  ;;  %3215 = vmatprep.subr.msk.bf16.mxu0 %vm106_vm0, %v3230_v8  ;;  %v3830_v21 = vld [vmem:[%s5075_s7 + $0x4] ss:$12 sps:$4 sm:$0xff]   ;;  %v3241_v24 = vld [vmem:[%s5069_s1 + $0x18] sm:$0xff]   ;;  %v337_v26 = vsel %vm106_vm0, %v3242_v25, 0  ;;  %vm3713_vm2 = vmmov 0   ;;  %v3882_v30 = vshrl.u32 %v283_v29, 7 }
  0x13   :  { %2947 = vmatprep.subr.msk.bf16.mxu1 %vm106_vm0, %v2943_v12  ;;  %v3868_v27 = vld [vmem:[%s5075_s7 + $0x20] ss:$12 sps:$4 sm:$0xff]   ;;  %v3875_v28 = vld [vmem:[%s5075_s7 + $0x8] ss:$12 sps:$4 sm:$0xff]   ;;  %vm510_vm4 = vcmask 261120  }
  0x14   :  { %2932 = vmatmul.mubr.msk.bf16.vlgmr.msra.gmra.mxu0 %vm93_vm1, %v3229_v7  ;;  %v5080_v31 = vsub.s32 3, %v3882_v30  ;;  %v3888_v32 = vld [vmem:[%s5073_s5] sm:$0x1f]  ;;  %v3897_v35 = vld [vmem:[#allocation3 + $0xec] ss:$16 sps:$4 sm:$0xff]   ;;  %v301_v1 = vsub.s32 4, %v3882_v30 }
  0x15   :  { %2946 = vmatmul.mubr.msk.bf16.vlgmr.msra.gmra.mxu1 %vm93_vm1, %v54_v14  ;;  %3116 = vmatpush3.bf16.msra.mxu0 %v114_v15  ;;  %v3895_v34 = vld [vmem:[#allocation3 + $0xe4] ss:$16 sps:$4 sm:$0xff]   ;;  %v3899_v36 = vld [vmem:[#allocation3 + $0xe0] ss:$16 sps:$4 sm:$0xff]   ;;  %v3901_v37 = vld [vmem:[#allocation3 + $0xe8] ss:$16 sps:$4 sm:$0xff]  }
  0x16   :  { %395 = vmatpush1.bf16.msra.mxu1 %v331_v16  ;;  %158 = vmatprep.mubr.bf16.mxu0 %v5081_v0  ;;  %v3893_v33 = vrot.slane %v3888_v32, %v5080_v31  ;;  %v3907_v38 = vld [vmem:[#allocation3 + $0xc4] ss:$16 sps:$4 sm:$0xff]   ;;  %v3909_v39 = vld [vmem:[#allocation3 + $0xcc] ss:$16 sps:$4 sm:$0xff]   ;;  %v3911_v40 = vld [vmem:[#allocation3 + $0xc0] ss:$16 sps:$4 sm:$0xff]   ;;  %v3991_v4 = vrot.slane %v3888_v32, %v301_v1 }
  0x17   :  { %412 = vmatprep.mubr.bf16.mxu1 %v5081_v0  ;;  %526 = vmatprep.subr.bf16.mxu1 %v3811_v17  ;;  %v3913_v41 = vld [vmem:[#allocation3 + $0xc8] ss:$16 sps:$4 sm:$0xff]   ;;  %v3919_v42 = vld [vmem:[#allocation3 + $0xa4] ss:$16 sps:$4 sm:$0xff]   ;;  %v3921_v43 = vld [vmem:[#allocation3 + $0xac] ss:$16 sps:$4 sm:$0xff]  }
  0x18   :  { %3125 = vmatprep.subr.bf16.mxu0 %v5083_v20  ;;  %v3923_v44 = vld [vmem:[#allocation3 + $0xa0] ss:$16 sps:$4 sm:$0xff]   ;;  %v3925_v45 = vld [vmem:[#allocation3 + $0xa8] ss:$16 sps:$4 sm:$0xff]   ;;  %v3931_v46 = vld [vmem:[#allocation3 + $0x84] ss:$16 sps:$4 sm:$0xff]  }
  0x19   :  { %v3933_v47 = vld [vmem:[#allocation3 + $0x8c] ss:$16 sps:$4 sm:$0xff]   ;;  %v3935_v48 = vld [vmem:[#allocation3 + $0x80] ss:$16 sps:$4 sm:$0xff]   ;;  %v3937_v49 = vld [vmem:[#allocation3 + $0x88] ss:$16 sps:$4 sm:$0xff]  }
  0x1a   :  { %v3943_v50 = vld [vmem:[#allocation3 + $0x64] ss:$16 sps:$4 sm:$0xff]   ;;  %v3945_v51 = vld [vmem:[#allocation3 + $0x6c] ss:$16 sps:$4 sm:$0xff]   ;;  %v3947_v52 = vld [vmem:[#allocation3 + $0x60] ss:$16 sps:$4 sm:$0xff]  }
  0x1b   :  { %v3949_v53 = vld [vmem:[#allocation3 + $0x68] ss:$16 sps:$4 sm:$0xff]   ;;  %v3955_v54 = vld [vmem:[#allocation3 + $0x44] ss:$16 sps:$4 sm:$0xff]   ;;  %v3957_v55 = vld [vmem:[#allocation3 + $0x4c] ss:$16 sps:$4 sm:$0xff]  }
  0x1c   :  { %2933 = vmatmul.mubr.msk.bf16.gmra.mxu0 %vm93_vm1, %v3233_v18  ;;  %v3959_v56 = vld [vmem:[#allocation3 + $0x40] ss:$16 sps:$4 sm:$0xff]   ;;  %v3961_v57 = vld [vmem:[#allocation3 + $0x48] ss:$16 sps:$4 sm:$0xff]   ;;  %v3967_v58 = vld [vmem:[#allocation3 + $0x24] ss:$16 sps:$4 sm:$0xff]  }
  0x1d   :  { %2948 = vmatmul.mubr.msk.bf16.vlgmr.msra.gmra.mxu1 %vm93_vm1, %v54_v14  ;;  %168 = vmatprep.mubr.bf16.mxu0 %v5081_v0  ;;  %v3969_v59 = vld [vmem:[#allocation3 + $0x2c] ss:$16 sps:$4 sm:$0xff]   ;;  %v3971_v60 = vld [vmem:[#allocation3 + $0x20] ss:$16 sps:$4 sm:$0xff]   ;;  %v3973_v61 = vld [vmem:[#allocation3 + $0x28] ss:$16 sps:$4 sm:$0xff]  }
  0x1e   :  { %527 = vmatpush1.bf16.msra.mxu1 %v3824_v19  ;;  %546 = vmatprep.mubr.bf16.mxu1 %v5081_v0  ;;  %v3979_v62 = vld [vmem:[#allocation3 + $0x4] ss:$16 sps:$4 sm:$0xff]   ;;  %v3981_v63 = vld [vmem:[#allocation3 + $0xc] ss:$16 sps:$4 sm:$0xff]   ;;  %v3984_v2 = vld [vmem:[#allocation3] ss:$16 sps:$4 sm:$0xff]  }
  0x1f   :  { %528 = vmatprep.subr.bf16.mxu1 %v3830_v21  ;;  %v3986_v3 = vld [vmem:[#allocation3 + $0x8] ss:$16 sps:$4 sm:$0xff]   ;;  %v3995_v5 = vld [vmem:[#allocation3 + $0x1e4] ss:$16 sps:$4 sm:$0xff]   ;;  %v3997_v6 = vld [vmem:[#allocation3 + $0x1ec] ss:$16 sps:$4 sm:$0xff]  }
  0x20   :  { %5239 = vst [vmem:[#allocation7_spill] sm:$0xff] %v3995_v5  ;;  %5240 = vst [vmem:[#allocation8_spill] sm:$0xff] %v3997_v6  ;;  %v4001_v8 = vld [vmem:[#allocation3 + $0x1e8] ss:$16 sps:$4 sm:$0xff]   ;;  %v4007_v9 = vld [vmem:[#allocation3 + $0x1c4] ss:$16 sps:$4 sm:$0xff]  }
  0x21   :  { %5242 = vst [vmem:[#allocation10_spill] sm:$0xff] %v4001_v8  ;;  %5243 = vst [vmem:[#allocation11_spill] sm:$0xff] %v4007_v9  ;;  %v4009_v10 = vld [vmem:[#allocation3 + $0x1cc] ss:$16 sps:$4 sm:$0xff]   ;;  %v4011_v11 = vld [vmem:[#allocation3 + $0x1c0] ss:$16 sps:$4 sm:$0xff]  }
  0x22   :  { %529 = vmatpush1.bf16.msra.mxu1 %v3835_v22  ;;  %5244 = vst [vmem:[#allocation12_spill] sm:$0xff] %v4009_v10  ;;  %5245 = vst [vmem:[#allocation13_spill] sm:$0xff] %v4011_v11  ;;  %v4013_v12 = vld [vmem:[#allocation3 + $0x1c8] ss:$16 sps:$4 sm:$0xff]   ;;  %v4019_v13 = vld [vmem:[#allocation3 + $0x1a4] ss:$16 sps:$4 sm:$0xff]  }
  0x23   :  { %1030 = vmatprep.subr.bf16.mxu1 %v3895_v34  ;;  %5246 = vst [vmem:[#allocation14_spill] sm:$0xff] %v4013_v12  ;;  %5247 = vst [vmem:[#allocation15_spill] sm:$0xff] %v4019_v13  ;;  %v4023_v15 = vld [vmem:[#allocation3 + $0x1a0] ss:$16 sps:$4 sm:$0xff]   ;;  %v4025_v16 = vld [vmem:[#allocation3 + $0x1a8] ss:$16 sps:$4 sm:$0xff]  }
  0x24   :  { %2934 = vmatmul.mubr.msk.bf16.gmra.mxu0 %vm93_vm1, %v3240_v23  ;;  %5249 = vst [vmem:[#allocation17_spill] sm:$0xff] %v4023_v15  ;;  %5250 = vst [vmem:[#allocation18_spill] sm:$0xff] %v4025_v16  ;;  %v4037_v25 = vld [vmem:[#allocation3 + $0x188] ss:$16 sps:$4 sm:$0xff]   ;;  %v4043_v29 = vld [vmem:[#allocation3 + $0x16c] ss:$16 sps:$4 sm:$0xff]  }
  0x25   :  { %547 = vmatmul.mubr.bf16.vlgmr.msra.gmra.mxu1 %v5081_v0  ;;  %178 = vmatprep.mubr.bf16.mxu0 %v5081_v0  ;;  %5254 = vst [vmem:[#allocation22_spill] sm:$0xff] %v4037_v25  ;;  %5256 = vst [vmem:[#allocation24_spill] sm:$0xff] %v4043_v29  ;;  %v4047_v1 = vld [vmem:[#allocation3 + $0x160] ss:$16 sps:$4 sm:$0xff]   ;;  %v4049_v31 = vld [vmem:[#allocation3 + $0x168] ss:$16 sps:$4 sm:$0xff]  }
  0x26   :  { %1031 = vmatpush1.bf16.msra.mxu1 %v3899_v36  ;;  %5257 = vst [vmem:[#allocation25_spill] sm:$0xff] %v4047_v1  ;;  %5258 = vst [vmem:[#allocation26_spill] sm:$0xff] %v4049_v31 }
  0x27   :  { %1032 = vmatprep.subr.bf16.mxu1 %v3907_v38 }
  0x2a   :  { %1033 = vmatpush1.bf16.msra.mxu1 %v3911_v40 }
  0x2b   :  { %1034 = vmatprep.subr.bf16.mxu1 %v3919_v42 }
  0x2c   :  { %2935 = vmatmul.mubr.msk.bf16.gmra.mxu0 %vm93_vm1, %v3241_v24 }
  0x2d   :  { %3117 = vmatprep.mubr.msk.bf16.mxu0 %vm93_vm1, %v3229_v7  ;;  %v3999_v7 = vld [vmem:[#allocation3 + $0x1e0] ss:$16 sps:$4 sm:$0xff]  }
  0x2e   :  { %1035 = vmatpush1.bf16.msra.mxu1 %v3923_v44  ;;  %5241 = vst [vmem:[#allocation9_spill] sm:$0xff] %v3999_v7 }
  0x2f   :  { %1036 = vmatprep.subr.bf16.mxu1 %v3931_v46 }
  0x32   :  { %1037 = vmatpush1.bf16.msra.mxu1 %v3935_v48 }
  0x33   :  { %1038 = vmatprep.subr.bf16.mxu1 %v3943_v50 }
  0x34   :  { %3118 = vmatmul.mubr.msk.bf16.vlgmr.msra.gmra.mxu0 %vm93_vm1, %v3233_v18  ;;  %v4031_v18 = vld [vmem:[#allocation3 + $0x184] ss:$16 sps:$4 sm:$0xff]  }
  0x35   :  { %3126 = vmatpush3.bf16.msra.mxu0 %v337_v26  ;;  %3121 = vmatprep.mubr.msk.bf16.mxu0 %vm93_vm1, %v3240_v23  ;;  %5251 = vst [vmem:[#allocation19_spill] sm:$0xff] %v4031_v18  ;;  %v4033_v23 = vld [vmem:[#allocation3 + $0x18c] ss:$16 sps:$4 sm:$0xff]   ;;  %v4041_v26 = vld [vmem:[#allocation3 + $0x164] ss:$16 sps:$4 sm:$0xff]  }
  0x36   :  { %3131 = vmatprep.subr.bf16.mxu0 %v5083_v20  ;;  %1039 = vmatpush1.bf16.msra.mxu1 %v3947_v52  ;;  %5252 = vst [vmem:[#allocation20_spill] sm:$0xff] %v4033_v23  ;;  %5255 = vst [vmem:[#allocation23_spill] sm:$0xff] %v4041_v26 }
  0x37   :  { %1040 = vmatprep.subr.bf16.mxu1 %v3955_v54 }
  0x3a   :  { %1041 = vmatpush1.bf16.msra.mxu1 %v3959_v56 }
  0x3b   :  { %1042 = vmatprep.subr.bf16.mxu1 %v3967_v58 }
  0x3c   :  { %3122 = vmatmul.mubr.msk.bf16.gmra.mxu0 %vm93_vm1, %v3241_v24  ;;  %v4035_v24 = vld [vmem:[#allocation3 + $0x180] ss:$16 sps:$4 sm:$0xff]  }
  0x3d   :  { %3127 = vmatprep.mubr.msk.bf16.mxu0 %vm3713_vm2, %v5083_v20  ;;  %5253 = vst [vmem:[#allocation21_spill] sm:$0xff] %v4035_v24 }
  0x3e   :  { %1043 = vmatpush1.bf16.msra.mxu1 %v3971_v60 }
  0x3f   :  { %1044 = vmatprep.subr.bf16.mxu1 %v3979_v62 }
  0x42   :  { %1045 = vmatpush1.bf16.msra.mxu1 %v3984_v2 }
  0x43   :  { %1046 = vmatprep.subr.bf16.mxu1 %v3995_v5 }
  0x44   :  { %3128 = vmatmul.mubr.msk.bf16.vlgmr.msra.gmra.mxu0 %vm93_vm1, %v54_v14  ;;  %v4021_v14 = vld [vmem:[#allocation3 + $0x1ac] ss:$16 sps:$4 sm:$0xff]  }
  0x45   :  { %3132 = vmatpush3.bf16.msra.mxu0 %v3868_v27  ;;  %3135 = vmatprep.mubr.msk.bf16.mxu0 %vm3713_vm2, %v5083_v20  ;;  %5248 = vst [vmem:[#allocation16_spill] sm:$0xff] %v4021_v14 }
  0x46   :  { %3133 = vmatprep.subr.bf16.mxu0 %v5083_v20  ;;  %1047 = vmatpush2.bf16.msra.mxu1 %v3999_v7  ;;  %v4055_v20 = vld [vmem:[#allocation3 + $0x14c] ss:$16 sps:$4 sm:$0xff]  }
  0x47   :  { %1048 = vmatprep.subr.bf16.mxu1 %v4007_v9  ;;  %5260 = vst [vmem:[#allocation28_spill] sm:$0xff] %v4055_v20 }
  0x49   :  { %3134 = vmatpush3.bf16.msra.mxu0 %v3875_v28 }
  0x4a   :  { %1071 = vmatprep.subr.bf16.mxu0 %v3897_v35  ;;  %1049 = vmatpush2.bf16.msra.mxu1 %v4011_v11 }
  0x4b   :  { %1050 = vmatprep.subr.bf16.mxu1 %v4019_v13 }
  0x4c   :  { %3136 = vmatmul.mubr.bf16.vlgmr.msra.gmra.mxu0 %v5081_v0  ;;  %v4053_v0 = vld [vmem:[#allocation3 + $0x144] ss:$16 sps:$4 sm:$0xff]  }
  0x4d   :  { %1072 = vmatpush1.bf16.msra.mxu0 %v3901_v37  ;;  %5259 = vst [vmem:[#allocation27_spill] sm:$0xff] %v4053_v0 }
  0x4e   :  { %1073 = vmatprep.subr.bf16.mxu0 %v3909_v39  ;;  %1051 = vmatpush2.bf16.msra.mxu1 %v4023_v15 }
  0x4f   :  { %1052 = vmatprep.subr.bf16.mxu1 %v4031_v18 }
  0x51   :  { %1074 = vmatpush1.bf16.msra.mxu0 %v3913_v41 }
  0x52   :  { %1075 = vmatprep.subr.bf16.mxu0 %v3921_v43  ;;  %1053 = vmatpush2.bf16.msra.mxu1 %v4035_v24  ;;  %v4061_v24 = vld [vmem:[#allocation3 + $0x148] ss:$16 sps:$4 sm:$0xff]  }
  0x53   :  { %1054 = vmatprep.subr.bf16.mxu1 %v4041_v26  ;;  %5262 = vst [vmem:[#allocation30_spill] sm:$0xff] %v4061_v24  ;;  %v4067_v26 = vld [vmem:[#allocation3 + $0x12c] ss:$16 sps:$4 sm:$0xff]  }
  0x54   :  { %5264 = vst [vmem:[#allocation32_spill] sm:$0xff] %v4067_v26 }
  0x55   :  { %1076 = vmatpush1.bf16.msra.mxu0 %v3925_v45 }
  0x56   :  { %1077 = vmatprep.subr.bf16.mxu0 %v3933_v47  ;;  %1055 = vmatpush2.bf16.msra.mxu1 %v4047_v1  ;;  %v4073_v1 = vld [vmem:[#allocation3 + $0x128] ss:$16 sps:$4 sm:$0xff]  }
  0x57   :  { %1056 = vmatprep.subr.bf16.mxu1 %v4053_v0  ;;  %5266 = vst [vmem:[#allocation34_spill] sm:$0xff] %v4073_v1  ;;  %v4079_v0 = vld [vmem:[#allocation3 + $0x10c] ss:$16 sps:$4 sm:$0xff]  }
  0x58   :  { %5268 = vst [vmem:[#allocation36_spill] sm:$0xff] %v4079_v0 }
  0x59   :  { %1078 = vmatpush1.bf16.msra.mxu0 %v3937_v49 }
  0x5a   :  { %1079 = vmatprep.subr.bf16.mxu0 %v3945_v51 }
  0x5d   :  { %1080 = vmatpush1.bf16.msra.mxu0 %v3949_v53 }
  0x5e   :  { %1081 = vmatprep.subr.bf16.mxu0 %v3957_v55 }
  0x61   :  { %1082 = vmatpush1.bf16.msra.mxu0 %v3961_v57 }
  0x62   :  { %1083 = vmatprep.subr.bf16.mxu0 %v3969_v59 }
  0x65   :  { %1084 = vmatpush1.bf16.msra.mxu0 %v3973_v61 }
  0x66   :  { %1085 = vmatprep.subr.bf16.mxu0 %v3981_v63 }
  0x69   :  { %1086 = vmatpush1.bf16.msra.mxu0 %v3986_v3 }
  0x6a   :  { %1087 = vmatprep.subr.bf16.mxu0 %v3997_v6 }
  0x6d   :  { %1088 = vmatpush2.bf16.msra.mxu0 %v4001_v8 }
  0x6e   :  { %1089 = vmatprep.subr.bf16.mxu0 %v4009_v10 }
  0x71   :  { %1090 = vmatpush2.bf16.msra.mxu0 %v4013_v12 }
  0x72   :  { %1091 = vmatprep.subr.bf16.mxu0 %v4021_v14 }
  0x75   :  { %1092 = vmatpush2.bf16.msra.mxu0 %v4025_v16 }
  0x76   :  { %1093 = vmatprep.subr.bf16.mxu0 %v4033_v23  ;;  %v4059_v23 = vld [vmem:[#allocation3 + $0x140] ss:$16 sps:$4 sm:$0xff]  }
  0x77   :  { %5261 = vst [vmem:[#allocation29_spill] sm:$0xff] %v4059_v23  ;;  %1057 = vmatpush2.bf16.msra.mxu1 %v4059_v23  ;;  %v4085_v23 = vld [vmem:[#allocation3 + $0x108] ss:$16 sps:$4 sm:$0xff]  }
  0x78   :  { %5270 = vst [vmem:[#allocation38_spill] sm:$0xff] %v4085_v23 }
  0x79   :  { %1094 = vmatpush2.bf16.msra.mxu0 %v4037_v25  ;;  %v4065_v25 = vld [vmem:[#allocation3 + $0x124] ss:$16 sps:$4 sm:$0xff]  }
  0x7a   :  { %1095 = vmatprep.subr.bf16.mxu0 %v4043_v29  ;;  %5263 = vst [vmem:[#allocation31_spill] sm:$0xff] %v4065_v25  ;;  %v3714_v29 = vmov 0.0|0.0   ;;  %1058 = vmatprep.subr.bf16.mxu1 %v4065_v25 }
  0x7b   :  { %1062 = vmatprep.mubr.bf16.mxu1 %v3714_v29  ;;  %1103 = vmatprep.mubr.bf16.mxu0 %v3714_v29  ;;  %v4083_v29 = vld [vmem:[#allocation3 + $0x100] ss:$16 sps:$4 sm:$0xff]  }
  0x7c   :  { %5269 = vst [vmem:[#allocation37_spill] sm:$0xff] %v4083_v29 }
  0x7d   :  { %1096 = vmatpush2.bf16.msra.mxu0 %v4049_v31  ;;  %v4071_v31 = vld [vmem:[#allocation3 + $0x120] ss:$16 sps:$4 sm:$0xff]  }
  0x7e   :  { %1097 = vmatprep.subr.bf16.mxu0 %v4055_v20  ;;  %5265 = vst [vmem:[#allocation33_spill] sm:$0xff] %v4071_v31  ;;  %v4077_v20 = vld [vmem:[#allocation3 + $0x104] ss:$16 sps:$4 sm:$0xff]   ;;  %1059 = vmatpush2.bf16.msra.mxu1 %v4071_v31  ;;  %v5273_v31 = vmov 0  }
  0x7f   :  { %5267 = vst [vmem:[#allocation35_spill] sm:$0xff] %v4077_v20  ;;  %1060 = vmatprep.subr.bf16.mxu1 %v4077_v20 }
  0x81   :  { %1098 = vmatpush2.bf16.msra.mxu0 %v4061_v24 }
  0x82   :  { %1099 = vmatprep.subr.bf16.mxu0 %v4067_v26  ;;  %1061 = vmatpush2.bf16.msra.mxu1 %v4083_v29  ;;  %v5271_v26 = vmov 0.0   ;;  %v5153_v29 = vsub.s32 1, %v3882_v30 }
  0x83   :  { %1172 = vmatprep.subr.bf16.mxu1 %v3811_v17 }
  0x84   :  { %v290_v24 = vrot.slane %v3888_v32, %v5153_v29 }
  0x85   :  { %1100 = vmatpush2.bf16.msra.mxu0 %v4073_v1  ;;  %v4096_v1 = vld [vmem:[%s5070_s2] sm:$0xff] }
  0x86   :  { %1101 = vmatprep.subr.bf16.mxu0 %v4079_v0  ;;  %5272 = vst [vmem:[#allocation39_spill] sm:$0xff] %v4096_v1  ;;  %vm1131_vm3 = vcmp.gt.s32.totalorder %v4096_v1, 0  ;;  %v5144_v0 = vsub.s32 0, %v3882_v30 }
  0x87   :  { %v1132_v25 = vsel %vm1131_vm3, 1, %v5273_v31 }
  0x88   :  { %1134 = vperm.xlu0 %3223, %v1132_v25   ;;  %v286_v17 = vrot.slane %v3888_v32, %v5144_v0 }
  0x89   :  { %1102 = vmatpush2.bf16.msra.mxu0 %v4085_v23 }
  0x8a   :  { %3139 = vmatprep.subr.bf16.mxu0 %v5271_v26 }
  0xd4   :  { %v150_v23 = vpop.f32.mrf.mxu0 }
  0xd5   :  { %v373_v20 = vpop.f32.mrf.mxu1 }
  0xd6   :  { %v152_v18 = vpop.f32.mrf.mxu0  ;;  %v374_v1 = vadd.f32 %v373_v20, %v286_v17 }
  0xd7   :  { %v375_v16 = vpop.f32.mrf.mxu1 }
  0xd8   :  { %v154_v15 = vpop.f32.mrf.mxu0  ;;  %v376_v25 = vadd.f32 %v375_v16, %v290_v24 }
  0xd9   :  { %v377_v14 = vpop.f32.mrf.mxu1  ;;  %v4108_v13 = vadd.f32 %v374_v1, %v154_v15 }
  0xda   :  { %v156_v12 = vpop.f32.mrf.mxu0 }
  0xdb   :  { %5274 = vst [vmem:[#allocation40_spill] sm:$0xff] %v4108_v13  ;;  %v378_v11 = vpop.f32.mrf.mxu1  ;;  %v4110_v10 = vadd.f32 %v376_v25, %v156_v12  ;;  %v467_v12 = vadd.f32 %v374_v1, %v150_v23 }
  0xdc   :  { %v160_v9 = vpop.f32.mrf.mxu0 }
  0xdd   :  { %5275 = vst [vmem:[#allocation41_spill] sm:$0xff] %v4110_v10  ;;  %v414_v0 = vpop.f32.mrf.mxu1  ;;  %v4112_v8 = vadd.f32 %v374_v1, %v160_v9 }
  0xde   :  { %v162_v7 = vpop.f32.mrf.mxu0 }
  0xdf   :  { %5276 = vst [vmem:[#allocation42_spill] sm:$0xff] %v4112_v8  ;;  %v416_v6 = vpop.f32.mrf.mxu1  ;;  %v4114_v5 = vadd.f32 %v376_v25, %v162_v7 }
  0xe0   :  { %v4117_v29 = vadd.f32 %v416_v6, %v3893_v33  ;;  %v164_v17 = vpop.f32.mrf.mxu0 }
  0xe1   :  { %5277 = vst [vmem:[#allocation43_spill] sm:$0xff] %v4114_v5  ;;  %v418_v20 = vpop.f32.mrf.mxu1  ;;  %v4119_v14 = vadd.f32 %v374_v1, %v164_v17 }
  0xe2   :  { %5278 = vst [vmem:[#allocation44_spill] sm:$0xff] %v4117_v29  ;;  %v166_v15 = vpop.f32.mrf.mxu0 }
  0xe3   :  { %5279 = vst [vmem:[#allocation45_spill] sm:$0xff] %v4119_v14  ;;  %v419_v16 = vpop.f32.mrf.mxu1  ;;  %v4121_v11 = vadd.f32 %v376_v25, %v166_v15  ;;  %v5154_v15 = vsub.s32 2, %v3882_v30 }
  0xe4   :  { %v170_v24 = vpop.f32.mrf.mxu0 }
  0xe5   :  { %5280 = vst [vmem:[#allocation46_spill] sm:$0xff] %v4121_v11  ;;  %v548_v10 = vpop.f32.mrf.mxu1  ;;  %v4123_v9 = vadd.f32 %v374_v1, %v170_v24 }
  0xe6   :  { %v595_v8 = vadd.f32 %v548_v10, %v467_v12  ;;  %v172_v13 = vpop.f32.mrf.mxu0 }
  0xe7   :  { %5281 = vst [vmem:[#allocation47_spill] sm:$0xff] %v4123_v9  ;;  %v550_v7 = vpop.f32.mrf.mxu1  ;;  %v4125_v5 = vadd.f32 %v376_v25, %v172_v13  ;;  %v294_v13 = vrot.slane %v3888_v32, %v5154_v15 }
  0xe8   :  { %v174_v33 = vpop.f32.mrf.mxu0  ;;  %v2956_v29 = vmul.f32 -1.442695, %v595_v8 }
  0xe9   :  { %5282 = vst [vmem:[#allocation48_spill] sm:$0xff] %v4125_v5  ;;  %v552_v6 = vpop.f32.mrf.mxu1  ;;  %v4127_v20 = vadd.f32 %v374_v1, %v174_v33  ;;  %v468_v33 = vadd.f32 %v376_v25, %v152_v18 }
  0xea   :  { %v176_v17 = vpop.f32.mrf.mxu0  ;;  %3349 = vpow2.f32 %v2956_v29 }
  0xeb   :  { %5283 = vst [vmem:[#allocation49_spill] sm:$0xff] %v4127_v20  ;;  %v553_v14 = vpop.f32.mrf.mxu1  ;;  %v4130_v16 = vadd.f32 %v376_v25, %v176_v17  ;;  %v415_v20 = vadd.f32 %v414_v0, %v294_v13  ;;  %v596_v5 = vadd.f32 %v550_v7, %v468_v33 }
  0xec   :  { %v180_v23 = vpop.f32.mrf.mxu0 }
  0xed   :  { %5284 = vst [vmem:[#allocation50_spill] sm:$0xff] %v4130_v16  ;;  %v4132_v24 = vadd.f32 %v374_v1, %v180_v23 }
  0xee   :  { %v182_v10 = vpop.f32.mrf.mxu0 }
  0xef   :  { %5285 = vst [vmem:[#allocation51_spill] sm:$0xff] %v4132_v24  ;;  %v4137_v12 = vadd.f32 %v376_v25, %v182_v10  ;;  %v2957_v24 = vmul.f32 -1.442695, %v596_v5 }
  0xf0   :  { %v184_v8 = vpop.f32.mrf.mxu0 }
  0xf1   :  { %5286 = vst [vmem:[#allocation52_spill] sm:$0xff] %v4137_v12  ;;  %v4139_v6 = vadd.f32 %v374_v1, %v184_v8  ;;  %3351 = vpow2.f32 %v2957_v24 }
  0xf2   :  { %v186_v14 = vpop.f32.mrf.mxu0 }
  0xf3   :  { %5287 = vst [vmem:[#allocation53_spill] sm:$0xff] %v4139_v6  ;;  %v4141_v17 = vadd.f32 %v376_v25, %v186_v14 }
  0xf4   :  { %v3119_v16 = vpop.f32.mrf.mxu0 }
  0xf5   :  { %5288 = vst [vmem:[#allocation54_spill] sm:$0xff] %v4141_v17  ;;  %v4143_v29 = vadd.f32 %v3119_v16, %v415_v20 }
  0xf6   :  { %v223_v23 = vpop.f32.mrf.mxu0 }
  0xf7   :  { %5289 = vst [vmem:[#allocation55_spill] sm:$0xff] %v4143_v29  ;;  %v3350_v32 = vpop.eup %3349  ;;  %v469_v17 = vadd.f32 %v415_v20, %v223_v23  ;;  %v5303_v23 = vld [vmem:[#allocation14_spill] sm:$0xff] }
  0xf8   :  { %v3120_v9 = vpop.f32.mrf.mxu0  ;;  %v603_v1 = vadd.f32 1.0, %v3350_v32  ;;  %v5319_v29 = vld [vmem:[#allocation30_spill] sm:$0xff] }
  0xf9   :  { %v4145_v11 = vadd.f32 %v3120_v9, %v415_v20 }
  0xfa   :  { %v226_v10 = vpop.f32.mrf.mxu0  ;;  %3353 = vrcp.f32 %v603_v1 }
  0xfb   :  { %5290 = vst [vmem:[#allocation56_spill] sm:$0xff] %v4145_v11  ;;  %v4147_v15 = vadd.f32 %v415_v20, %v226_v10  ;;  %v5318_v11 = vld [vmem:[#allocation29_spill] sm:$0xff] }
  0xfc   :  { %v3123_v18 = vpop.f32.mrf.mxu0 }
  0xfd   :  { %v4149_v8 = vadd.f32 %v3123_v18, %v415_v20  ;;  %v4163_v18 = vld [vmem:[%s5074_s6] ss:$0 sm:$0xff] }
  0xfe   :  { %v239_v0 = vpop.f32.mrf.mxu0  ;;  %v3352_v14 = vpop.eup %3351 }
  0xff   :  { %5291 = vst [vmem:[#allocation57_spill] sm:$0xff] %v4149_v8  ;;  %v4151_v25 = vadd.f32 %v415_v20, %v239_v0  ;;  %v604_v0 = vadd.f32 1.0, %v3352_v14 }
 0x100   :  { %v3124_v7 = vpop.f32.mrf.mxu0 }
 0x101   :  { %5292 = vst [vmem:[#allocation58_spill] sm:$0xff] %v4151_v25  ;;  %v4153_v16 = vadd.f32 %v3124_v7, %v415_v20  ;;  %3355 = vrcp.f32 %v604_v0  ;;  %v5307_v0 = vld [vmem:[#allocation18_spill] sm:$0xff]  ;;  %v5317_v25 = vld [vmem:[#allocation28_spill] sm:$0xff] }
 0x102   :  { %v242_v5 = vpop.f32.mrf.mxu0 }
 0x103   :  { %5293 = vst [vmem:[#allocation59_spill] sm:$0xff] %v4153_v16  ;;  %v4155_v13 = vadd.f32 %v415_v20, %v242_v5  ;;  %v5299_v20 = vld [vmem:[#allocation10_spill] sm:$0xff] }
 0x104   :  { %v455_v9 = vpop.f32.mrf.mxu0 }
 0x105   :  { %5294 = vst [vmem:[#allocation60_spill] sm:$0xff] %v4155_v13  ;;  %v4158_v33 = vadd.f32 %v455_v9, %v3991_v4 }
 0x106   :  { %v3129_v24 = vpop.f32.mrf.mxu0 }
 0x107   :  { %5295 = vst [vmem:[#allocation61_spill] sm:$0xff] %v4158_v33  ;;  %v3354_v16 = vpop.eup %3353 }
 0x108   :  { %v458_v10 = vpop.f32.mrf.mxu0 }
 0x10a   :  { %v3130_v32 = vpop.f32.mrf.mxu0 }
 0x10c   :  { %v589_v1 = vpop.f32.mrf.mxu0 }
 0x10d   :  { %v615_v7 = vadd.f32 %v4163_v18, %v589_v1  ;;  %v5308_v1 = vld [vmem:[#allocation19_spill] sm:$0xff] }
 0x10e   :  { %v3137_v5 = vpop.f32.mrf.mxu0  ;;  %v3356_v10 = vpop.eup %3355 }
 0x10f   :  { %v616_v6 = vmul.f32 %v3354_v16, %v615_v7  ;;  %v619_v32 = vsub.f32 1.0, %v3356_v10  ;;  %v621_v12 = vmul.f32 0.0, %v3356_v10  ;;  %v5305_v16 = vld [vmem:[#allocation16_spill] sm:$0xff]  ;;  %v5310_v5 = vld [vmem:[#allocation21_spill] sm:$0xff] }
 0x110   :  { %v592_v4 = vpop.f32.mrf.mxu0  ;;  %v5309_v7 = vld [vmem:[#allocation20_spill] sm:$0xff]  ;;  %v5314_v10 = vld [vmem:[#allocation25_spill] sm:$0xff] }
 0x111   :  { %v617_v9 = vadd.f32 %v616_v6, %v469_v17  ;;  %v5301_v6 = vld [vmem:[#allocation12_spill] sm:$0xff]  ;;  %v5302_v17 = vld [vmem:[#allocation13_spill] sm:$0xff]  ;;  %v5311_v4 = vld [vmem:[#allocation22_spill] sm:$0xff] }
 0x112   :  { %v3138_v24 = vpop.f32.mrf.mxu0 }
 0x113   :  { %3357 = vtanh.f32 %v617_v9  ;;  %v5312_v9 = vld [vmem:[#allocation23_spill] sm:$0xff]  ;;  %v5313_v24 = vld [vmem:[#allocation24_spill] sm:$0xff] }
 0x120   :  { %v3358_v33 = vpop.eup %3357 }
 0x121   :  { %v620_v8 = vmul.f32 %v3358_v33, %v619_v32  ;;  %v5306_v33 = vld [vmem:[#allocation17_spill] sm:$0xff]  ;;  %v5315_v32 = vld [vmem:[#allocation26_spill] sm:$0xff] }
 0x123   :  { %v4166_v13 = vadd.f32 %v621_v12, %v620_v8  ;;  %v5300_v12 = vld [vmem:[#allocation11_spill] sm:$0xff] }
 0x124   :  { %v5304_v8 = vld [vmem:[#allocation15_spill] sm:$0xff] }
 0x125   :  { %v687_v14 = vpack.c.bf16 %v4166_v13, %v4166_v13 }
 0x127   :  { %1063 = vmatmul.mubr.bf16.vlgmr.msra.gmra.mxu1 %v687_v14  ;;  %1104 = vmatmul.mubr.bf16.vlgmr.msra.gmra.mxu0 %v687_v14 }
 0x128   :  { %1173 = vmatpush1.bf16.msra.mxu1 %v3824_v19  ;;  %3140 = vmatpush3.bf16.msra.mxu0 %v3868_v27  ;;  %v5296_v19 = vld [vmem:[#allocation7_spill] sm:$0xff] }
 0x129   :  { %1174 = vmatprep.subr.bf16.mxu1 %v3830_v21  ;;  %3141 = vmatprep.subr.bf16.mxu0 %v5271_v26  ;;  %v5297_v21 = vld [vmem:[#allocation8_spill] sm:$0xff] }
 0x12a   :  { %1192 = vmatprep.mubr.bf16.mxu1 %v5273_v31  ;;  %3143 = vmatprep.mubr.msk.bf16.mxu0 %vm3713_vm2, %v5271_v26 }
 0x12c   :  { %1175 = vmatpush1.bf16.msra.mxu1 %v3835_v22  ;;  %3142 = vmatpush3.bf16.msra.mxu0 %v3875_v28  ;;  %v5298_v22 = vld [vmem:[#allocation9_spill] sm:$0xff] }
 0x12d   :  { %1265 = vmatprep.subr.bf16.mxu1 %v3895_v34  ;;  %1306 = vmatprep.subr.bf16.mxu0 %v3897_v35 }
 0x12f   :  { %3025 = vmatmul.mubr.msk.bf16.vlgmr.msra.gmra.mxu1 %vm510_vm4, %v687_v14  ;;  %3144 = vmatmul.mubr.msk.bf16.vlgmr.msra.gmra.mxu0 %vm510_vm4, %v687_v14  ;;  %v5316_v14 = vld [vmem:[#allocation27_spill] sm:$0xff] }
 0x130   :  { %1266 = vmatpush1.bf16.msra.mxu1 %v3899_v36  ;;  %1307 = vmatpush1.bf16.msra.mxu0 %v3901_v37 }
 0x131   :  { %1267 = vmatprep.subr.bf16.mxu1 %v3907_v38  ;;  %1308 = vmatprep.subr.bf16.mxu0 %v3909_v39 }
 0x134   :  { %1268 = vmatpush1.bf16.msra.mxu1 %v3911_v40  ;;  %1309 = vmatpush1.bf16.msra.mxu0 %v3913_v41 }
 0x135   :  { %1269 = vmatprep.subr.bf16.mxu1 %v3919_v42  ;;  %1310 = vmatprep.subr.bf16.mxu0 %v3921_v43 }
 0x138   :  { %1270 = vmatpush1.bf16.msra.mxu1 %v3923_v44  ;;  %1311 = vmatpush1.bf16.msra.mxu0 %v3925_v45 }
 0x139   :  { %1271 = vmatprep.subr.bf16.mxu1 %v3931_v46  ;;  %1312 = vmatprep.subr.bf16.mxu0 %v3933_v47 }
 0x13c   :  { %1272 = vmatpush1.bf16.msra.mxu1 %v3935_v48  ;;  %1313 = vmatpush1.bf16.msra.mxu0 %v3937_v49 }
 0x13d   :  { %1273 = vmatprep.subr.bf16.mxu1 %v3943_v50  ;;  %1314 = vmatprep.subr.bf16.mxu0 %v3945_v51 }
 0x140   :  { %1274 = vmatpush1.bf16.msra.mxu1 %v3947_v52  ;;  %1315 = vmatpush1.bf16.msra.mxu0 %v3949_v53 }
 0x141   :  { %1275 = vmatprep.subr.bf16.mxu1 %v3955_v54  ;;  %1316 = vmatprep.subr.bf16.mxu0 %v3957_v55 }
 0x144   :  { %1276 = vmatpush1.bf16.msra.mxu1 %v3959_v56  ;;  %1317 = vmatpush1.bf16.msra.mxu0 %v3961_v57 }
 0x145   :  { %1277 = vmatprep.subr.bf16.mxu1 %v3967_v58  ;;  %1318 = vmatprep.subr.bf16.mxu0 %v3969_v59 }
 0x148   :  { %1278 = vmatpush1.bf16.msra.mxu1 %v3971_v60  ;;  %1319 = vmatpush1.bf16.msra.mxu0 %v3973_v61 }
 0x149   :  { %1279 = vmatprep.subr.bf16.mxu1 %v3979_v62  ;;  %1320 = vmatprep.subr.bf16.mxu0 %v3981_v63 }
 0x14c   :  { %1280 = vmatpush1.bf16.msra.mxu1 %v3984_v2  ;;  %1321 = vmatpush1.bf16.msra.mxu0 %v3986_v3 }
 0x14d   :  { %1281 = vmatprep.subr.bf16.mxu1 %v5296_v19  ;;  %1322 = vmatprep.subr.bf16.mxu0 %v5297_v21 }
 0x150   :  { %1282 = vmatpush2.bf16.msra.mxu1 %v5298_v22  ;;  %1323 = vmatpush2.bf16.msra.mxu0 %v5299_v20 }
 0x151   :  { %1283 = vmatprep.subr.bf16.mxu1 %v5300_v12  ;;  %1324 = vmatprep.subr.bf16.mxu0 %v5301_v6 }
 0x154   :  { %1284 = vmatpush2.bf16.msra.mxu1 %v5302_v17  ;;  %1325 = vmatpush2.bf16.msra.mxu0 %v5303_v23  ;;  %v5334_v17 = vld [vmem:[#allocation40_spill] sm:$0xff] }
 0x155   :  { %1285 = vmatprep.subr.bf16.mxu1 %v5304_v8  ;;  %1326 = vmatprep.subr.bf16.mxu0 %v5305_v16 }
 0x158   :  { %1286 = vmatpush2.bf16.msra.mxu1 %v5306_v33  ;;  %1327 = vmatpush2.bf16.msra.mxu0 %v5307_v0 }
 0x159   :  { %1287 = vmatprep.subr.bf16.mxu1 %v5308_v1  ;;  %1328 = vmatprep.subr.bf16.mxu0 %v5309_v7  ;;  %v5320_v7 = vld [vmem:[#allocation31_spill] sm:$0xff] }
 0x15c   :  { %1288 = vmatpush2.bf16.msra.mxu1 %v5310_v5  ;;  %1329 = vmatpush2.bf16.msra.mxu0 %v5311_v4  ;;  %v5321_v5 = vld [vmem:[#allocation32_spill] sm:$0xff]  ;;  %v5322_v4 = vld [vmem:[#allocation33_spill] sm:$0xff] }
 0x15d   :  { %1289 = vmatprep.subr.bf16.mxu1 %v5312_v9  ;;  %1330 = vmatprep.subr.bf16.mxu0 %v5313_v24  ;;  %v5323_v9 = vld [vmem:[#allocation34_spill] sm:$0xff]  ;;  %v5324_v24 = vld [vmem:[#allocation35_spill] sm:$0xff] }
 0x160   :  { %1290 = vmatpush2.bf16.msra.mxu1 %v5314_v10  ;;  %1331 = vmatpush2.bf16.msra.mxu0 %v5315_v32  ;;  %v5325_v10 = vld [vmem:[#allocation36_spill] sm:$0xff]  ;;  %v5326_v32 = vld [vmem:[#allocation37_spill] sm:$0xff] }
 0x161   :  { %1291 = vmatprep.subr.bf16.mxu1 %v5316_v14  ;;  %1332 = vmatprep.subr.bf16.mxu0 %v5317_v25  ;;  %v5327_v14 = vld [vmem:[#allocation38_spill] sm:$0xff] }
 0x162   :  { %v5328_v25 = vld [vmem:[#allocation6_spill] sm:$0xff] }
 0x164   :  { %1292 = vmatpush2.bf16.msra.mxu1 %v5318_v11  ;;  %1333 = vmatpush2.bf16.msra.mxu0 %v5319_v29  ;;  %v5329_v29 = vld [vmem:[#allocation39_spill] sm:$0xff] }
 0x165   :  { %1293 = vmatprep.subr.bf16.mxu1 %v5320_v7  ;;  %1334 = vmatprep.subr.bf16.mxu0 %v5321_v5  ;;  %vm1366_vm5 = vcmp.gt.s32.totalorder %v5329_v29, 1  ;;  %vm2077_vm6 = vcmp.gt.s32.totalorder %v5329_v29, 4  ;;  %vm2551_vm7 = vcmp.gt.s32.totalorder %v5329_v29, 6 }
 0x166   :  { %v1367_v5 = vsel %vm1366_vm5, 1, %v5273_v31 }
 0x167   :  { %1369 = vperm.xlu0 %3223, %v1367_v5  }
 0x168   :  { %1294 = vmatpush2.bf16.msra.mxu1 %v5322_v4  ;;  %1335 = vmatpush2.bf16.msra.mxu0 %v5323_v9  ;;  %v2078_v9 = vsel %vm2077_vm6, 1, %v5273_v31 }
 0x169   :  { %1295 = vmatprep.subr.bf16.mxu1 %v5324_v24  ;;  %1336 = vmatprep.subr.bf16.mxu0 %v5325_v10 }
 0x16b   :  { %2080 = vperm.xlu0 %3223, %v2078_v9   ;;  %v5332_v9 = vsub.s32 1, %v3882_v30 }
 0x16c   :  { %1296 = vmatpush2.bf16.msra.mxu1 %v5326_v32  ;;  %1337 = vmatpush2.bf16.msra.mxu0 %v5327_v14  ;;  %v2552_v32 = vsel %vm2551_vm7, 1, %v5273_v31  ;;  %v5330_v14 = vsub.s32 0, %v3882_v30 }
 0x16d   :  { %1409 = vmatprep.subr.bf16.mxu1 %v5328_v25  ;;  %3147 = vmatprep.subr.bf16.mxu0 %v5271_v26  ;;  %v463_v25 = vld [vmem:[%s5077_s9] sm:$0xf] }
 0x16e   :  { %v4258_v10 = vrot.slane %v463_v25, %v5330_v14  ;;  %v4263_v29 = vrot.slane %v463_v25, %v5332_v9 }
 0x16f   :  { %2554 = vperm.xlu0 %3223, %v2552_v32  }
 0x170   :  { %5331 = vst [vmem:[#allocation7_spill] sm:$0xff] %v4258_v10  ;;  %5333 = vst [vmem:[#allocation6_spill] sm:$0xff] %v4263_v29 }
 0x1e7   :  { %v1064_v24 = vpop.f32.mrf.mxu1  ;;  %v1105_v5 = vpop.f32.mrf.mxu0 }
 0x1e8   :  { %v1065_v4 = vadd.f32 %v1064_v24, %v4258_v10 }
 0x1e9   :  { %v1066_v7 = vpop.f32.mrf.mxu1  ;;  %v1107_v11 = vpop.f32.mrf.mxu0 }
 0x1ea   :  { %v3023_v1 = vmul.f32 -1.442695, %v1065_v4  ;;  %v1067_v8 = vadd.f32 %v1066_v7, %v4263_v29 }
 0x1eb   :  { %v1068_v32 = vpop.f32.mrf.mxu1  ;;  %v1109_v0 = vpop.f32.mrf.mxu0 }
 0x1ec   :  { %3359 = vpow2.f32 %v3023_v1  ;;  %v3024_v10 = vmul.f32 -1.442695, %v1067_v8  ;;  %v5335_v0 = vld [vmem:[#allocation41_spill] sm:$0xff] }
 0x1ed   :  { %v1069_v33 = vpop.f32.mrf.mxu1  ;;  %v1110_v16 = vpop.f32.mrf.mxu0 }
 0x1ef   :  { %v1194_v14 = vpop.f32.mrf.mxu1  ;;  %v1235_v23 = vpop.f32.mrf.mxu0 }
 0x1f0   :  { %v1241_v6 = vadd.f32 %v1194_v14, %v5334_v17  ;;  %v5336_v14 = vsub.s32 3, %v3882_v30 }
 0x1f1   :  { %v1196_v12 = vpop.f32.mrf.mxu1  ;;  %v3145_v24 = vpop.f32.mrf.mxu0 }
 0x1f2   :  { %v3027_v20 = vmul.f32 -1.442695, %v1241_v6  ;;  %v1242_v1 = vadd.f32 %v1196_v12, %v5335_v0  ;;  %v4270_v8 = vrot.slane %v463_v25, %v5336_v14 }
 0x1f3   :  { %v1198_v22 = vpop.f32.mrf.mxu1  ;;  %v1238_v21 = vpop.f32.mrf.mxu0 }
 0x1f4   :  { %3361 = vpow2.f32 %v3027_v20  ;;  %v3028_v32 = vmul.f32 -1.442695, %v1242_v1  ;;  %v5337_v21 = vsub.s32 2, %v3882_v30  ;;  %v1108_v12 = vadd.f32 %v1107_v11, %v4270_v8  ;;  %v5338_v30 = vld [vmem:[#allocation44_spill] sm:$0xff] }
 0x1f5   :  { %v1199_v9 = vpop.f32.mrf.mxu1  ;;  %v3146_v4 = vpop.f32.mrf.mxu0  ;;  %3363 = vpow2.f32 %v3024_v10  ;;  %v1255_v1 = vadd.f32 %v4163_v18, %v1235_v23 }
 0x1f6   :  { %v4274_v22 = vrot.slane %v463_v25, %v5337_v21 }
 0x1f8   :  { %v1106_v10 = vadd.f32 %v1105_v5, %v4274_v22 }
 0x1f9   :  { %v3360_v33 = vpop.eup %3359 }
 0x1fa   :  { %v1118_v16 = vadd.f32 1.0, %v3360_v33 }
 0x1fc   :  { %3365 = vrcp.f32 %v1118_v16 }
 0x1fd   :  { %3367 = vpow2.f32 %v3028_v32  ;;  %v1135_v32 = vpop.permute.xlu0 %1134 }
 0x1fe   :  { %vm1136_vm8 = vcmp.eq.s32.totalorder %v1135_v32, 1 }
 0x201   :  { %v3362_v7 = vpop.eup %3361 }
 0x202   :  { %v1249_v29 = vadd.f32 1.0, %v3362_v7  ;;  %v3364_v17 = vpop.eup %3363 }
 0x203   :  { %v1119_v20 = vadd.f32 1.0, %v3364_v17 }
 0x204   :  { %3369 = vrcp.f32 %v1249_v29 }
 0x205   :  { %3371 = vrcp.f32 %v1119_v20 }
 0x209   :  { %v3366_v6 = vpop.eup %3365 }
 0x20a   :  { %v1124_v24 = vmul.f32 %v3366_v6, %v1108_v12  ;;  %v3368_v9 = vpop.eup %3367 }
 0x20b   :  { %v1250_v0 = vadd.f32 1.0, %v3368_v9 }
 0x20c   :  { %v1125_v4 = vadd.f32 %v1124_v24, %v1106_v10 }
 0x20e   :  { %3373 = vtanh.f32 %v1125_v4 }
 0x20f   :  { %3375 = vrcp.f32 %v1250_v0 }
 0x210   :  { %3377 = vtanh.f32 %v5338_v30 }
 0x211   :  { %v3370_v33 = vpop.eup %3369 }
 0x212   :  { %v1256_v29 = vmul.f32 %v3370_v33, %v1255_v1  ;;  %v3372_v11 = vpop.eup %3371  ;;  %v4300_v1 = vld [vmem:[%s5075_s7 + $0x18] ss:$12 sps:$4 sm:$0xff]   ;;  %v4317_v33 = vld [vmem:[%s5075_s7] ss:$12 sps:$4 sm:$0xff]  }
 0x213   :  { %v1127_v16 = vsub.f32 1.0, %v3372_v11  ;;  %v1129_v17 = vmul.f32 0.0, %v3372_v11 }
 0x214   :  { %v1257_v25 = vadd.f32 %v1256_v29, %v4147_v15 }
 0x216   :  { %3379 = vtanh.f32 %v1257_v25 }
 0x21b   :  { %v3374_v5 = vpop.eup %3373 }
 0x21c   :  { %v1128_v7 = vmul.f32 %v3374_v5, %v1127_v16  ;;  %v3376_v21 = vpop.eup %3375  ;;  %v5373_v16 = vld [vmem:[#allocation7_spill] sm:$0xff] }
 0x21d   :  { %v4283_v20 = vpop.eup %3377  ;;  %v1259_v6 = vsub.f32 1.0, %v3376_v21  ;;  %v1261_v9 = vmul.f32 %v3376_v21, %v4166_v13  ;;  %v4307_v13 = vld [vmem:[%s5075_s7 + $0x4] ss:$12 sps:$4 sm:$0xff]  }
 0x21e   :  { %v4281_v14 = vadd.f32 %v1129_v17, %v1128_v7 }
 0x220   :  { %v4286_v23 = vsel %vm1136_vm8, %v4281_v14, 0.0  ;;  %v1264_v12 = vpack.c.bf16 %v4281_v14, %v4281_v14 }
 0x221   :  { %5339 = vst [vmem:[#allocation40_spill] sm:$0xff] %v4286_v23  ;;  %v1138_v15 = vmul.f32 %v4283_v20, %v4286_v23  ;;  %v4587_v23 = vld [vmem:[#allocation3 + $0x188] ss:$16 sps:$4 sm:$0xff]  }
 0x222   :  { %1297 = vmatprep.mubr.bf16.mxu1 %v1264_v12  ;;  %1338 = vmatprep.mubr.bf16.mxu0 %v1264_v12 }
 0x223   :  { %v3380_v10 = vpop.eup %3379  ;;  %1139 = vadd.xlane.f32.xlu0 %v1138_v15 }
 0x224   :  { %v1260_v24 = vmul.f32 %v3380_v10, %v1259_v6  ;;  %v5374_v10 = vld [vmem:[#allocation6_spill] sm:$0xff] }
 0x226   :  { %v4293_v4 = vadd.f32 %v1261_v9, %v1260_v24 }
 0x228   :  { %v1263_v0 = vpack.c.bf16 %v4293_v4, %v4293_v4 }
 0x22a   :  { %1298 = vmatmul.mubr.bf16.vlgmr.msra.gmra.mxu1 %v1263_v0  ;;  %1339 = vmatmul.mubr.bf16.vlgmr.msra.gmra.mxu0 %v1263_v0 }
 0x22b   :  { %1410 = vmatpush1.bf16.msra.mxu1 %v4300_v1  ;;  %3148 = vmatpush3.bf16.msra.mxu0 %v3868_v27  ;;  %v5340_v27 = vld [vmem:[#allocation8_spill] sm:$0xff] }
 0x22c   :  { %1411 = vmatprep.subr.bf16.mxu1 %v4307_v13  ;;  %3149 = vmatprep.subr.bf16.mxu0 %v5271_v26 }
 0x22d   :  { %1429 = vmatprep.mubr.bf16.mxu1 %v5273_v31  ;;  %3151 = vmatprep.mubr.msk.bf16.mxu0 %vm3713_vm2, %v5271_v26 }
 0x22f   :  { %1412 = vmatpush1.bf16.msra.mxu1 %v4317_v33  ;;  %3150 = vmatpush3.bf16.msra.mxu0 %v3875_v28  ;;  %v5341_v28 = vld [vmem:[#allocation9_spill] sm:$0xff] }
 0x230   :  { %1502 = vmatprep.subr.bf16.mxu1 %v3895_v34  ;;  %1543 = vmatprep.subr.bf16.mxu0 %v3897_v35  ;;  %v5342_v34 = vld [vmem:[#allocation10_spill] sm:$0xff]  ;;  %v5343_v35 = vld [vmem:[#allocation11_spill] sm:$0xff] }
 0x232   :  { %3031 = vmatmul.mubr.msk.bf16.vlgmr.msra.gmra.mxu1 %vm510_vm4, %v1263_v0  ;;  %3152 = vmatmul.mubr.msk.bf16.vlgmr.msra.gmra.mxu0 %vm510_vm4, %v1263_v0 }
 0x233   :  { %1503 = vmatpush1.bf16.msra.mxu1 %v3899_v36  ;;  %1544 = vmatpush1.bf16.msra.mxu0 %v3901_v37  ;;  %v5344_v36 = vld [vmem:[#allocation12_spill] sm:$0xff]  ;;  %v5345_v37 = vld [vmem:[#allocation13_spill] sm:$0xff] }
 0x234   :  { %1504 = vmatprep.subr.bf16.mxu1 %v3907_v38  ;;  %1545 = vmatprep.subr.bf16.mxu0 %v3909_v39  ;;  %v5346_v38 = vld [vmem:[#allocation14_spill] sm:$0xff]  ;;  %v5347_v39 = vld [vmem:[#allocation15_spill] sm:$0xff] }
 0x237   :  { %1505 = vmatpush1.bf16.msra.mxu1 %v3911_v40  ;;  %1546 = vmatpush1.bf16.msra.mxu0 %v3913_v41  ;;  %v5348_v40 = vld [vmem:[#allocation16_spill] sm:$0xff]  ;;  %v5349_v41 = vld [vmem:[#allocation17_spill] sm:$0xff] }
 0x238   :  { %1506 = vmatprep.subr.bf16.mxu1 %v3919_v42  ;;  %1547 = vmatprep.subr.bf16.mxu0 %v3921_v43  ;;  %v5350_v42 = vld [vmem:[#allocation18_spill] sm:$0xff]  ;;  %v5351_v43 = vld [vmem:[#allocation19_spill] sm:$0xff] }
 0x23b   :  { %1507 = vmatpush1.bf16.msra.mxu1 %v3923_v44  ;;  %1548 = vmatpush1.bf16.msra.mxu0 %v3925_v45  ;;  %v5352_v44 = vld [vmem:[#allocation20_spill] sm:$0xff]  ;;  %v5353_v45 = vld [vmem:[#allocation21_spill] sm:$0xff] }
 0x23c   :  { %1508 = vmatprep.subr.bf16.mxu1 %v3931_v46  ;;  %1549 = vmatprep.subr.bf16.mxu0 %v3933_v47  ;;  %v5354_v46 = vld [vmem:[#allocation22_spill] sm:$0xff]  ;;  %v5355_v47 = vld [vmem:[#allocation23_spill] sm:$0xff] }
 0x23f   :  { %1509 = vmatpush1.bf16.msra.mxu1 %v3935_v48  ;;  %1550 = vmatpush1.bf16.msra.mxu0 %v3937_v49  ;;  %v5356_v48 = vld [vmem:[#allocation24_spill] sm:$0xff]  ;;  %v5357_v49 = vld [vmem:[#allocation25_spill] sm:$0xff] }
 0x240   :  { %1510 = vmatprep.subr.bf16.mxu1 %v3943_v50  ;;  %1551 = vmatprep.subr.bf16.mxu0 %v3945_v51  ;;  %v5358_v50 = vld [vmem:[#allocation26_spill] sm:$0xff]  ;;  %v5359_v51 = vld [vmem:[#allocation27_spill] sm:$0xff] }
 0x241   :  { %5397 = vst [vmem:[#allocation26_spill] sm:$0xff] %v4587_v23 }
 0x243   :  { %1511 = vmatpush1.bf16.msra.mxu1 %v3947_v52  ;;  %1552 = vmatpush1.bf16.msra.mxu0 %v3949_v53  ;;  %v5360_v52 = vld [vmem:[#allocation28_spill] sm:$0xff]  ;;  %v5361_v53 = vld [vmem:[#allocation29_spill] sm:$0xff] }
 0x244   :  { %1512 = vmatprep.subr.bf16.mxu1 %v3955_v54  ;;  %1553 = vmatprep.subr.bf16.mxu0 %v3957_v55  ;;  %v5362_v54 = vld [vmem:[#allocation30_spill] sm:$0xff]  ;;  %v5363_v55 = vld [vmem:[#allocation31_spill] sm:$0xff] }
 0x247   :  { %1513 = vmatpush1.bf16.msra.mxu1 %v3959_v56  ;;  %1554 = vmatpush1.bf16.msra.mxu0 %v3961_v57  ;;  %v5364_v56 = vld [vmem:[#allocation32_spill] sm:$0xff]  ;;  %v5365_v57 = vld [vmem:[#allocation33_spill] sm:$0xff] }
 0x248   :  { %1514 = vmatprep.subr.bf16.mxu1 %v3967_v58  ;;  %1555 = vmatprep.subr.bf16.mxu0 %v3969_v59  ;;  %v5366_v58 = vld [vmem:[#allocation34_spill] sm:$0xff]  ;;  %v5367_v59 = vld [vmem:[#allocation35_spill] sm:$0xff] }
 0x24b   :  { %1515 = vmatpush1.bf16.msra.mxu1 %v3971_v60  ;;  %1556 = vmatpush1.bf16.msra.mxu0 %v3973_v61  ;;  %v5368_v60 = vld [vmem:[#allocation36_spill] sm:$0xff]  ;;  %v5369_v61 = vld [vmem:[#allocation37_spill] sm:$0xff] }
 0x24c   :  { %1516 = vmatprep.subr.bf16.mxu1 %v3979_v62  ;;  %1557 = vmatprep.subr.bf16.mxu0 %v3981_v63  ;;  %v5370_v62 = vld [vmem:[#allocation38_spill] sm:$0xff]  ;;  %v4390_v63 = vld [vmem:[%s5075_s7 + $0x1c] ss:$12 sps:$4 sm:$0xff]  }
 0x24d   :  { %5371 = vst [vmem:[#allocation41_spill] sm:$0xff] %v4390_v63 }
 0x24f   :  { %1517 = vmatpush1.bf16.msra.mxu1 %v3984_v2  ;;  %1558 = vmatpush1.bf16.msra.mxu0 %v3986_v3  ;;  %v5372_v2 = vld [vmem:[#allocation39_spill] sm:$0xff] }
 0x250   :  { %1518 = vmatprep.subr.bf16.mxu1 %v5296_v19  ;;  %1559 = vmatprep.subr.bf16.mxu0 %v5340_v27  ;;  %vm1603_vm9 = vcmp.gt.s32.totalorder %v5372_v2, 2  ;;  %vm1840_vm10 = vcmp.gt.s32.totalorder %v5372_v2, 3  ;;  %vm2314_vm11 = vcmp.gt.s32.totalorder %v5372_v2, 5  ;;  %vm2788_vm12 = vcmp.gt.s32.totalorder %v5372_v2, 7  ;;  %v5375_v27 = vld [vmem:[#allocation42_spill] sm:$0xff] }
 0x251   :  { %v1604_v3 = vsel %vm1603_vm9, 1, %v5273_v31  ;;  %v1841_v19 = vsel %vm1840_vm10, 1, %v5273_v31  ;;  %v2315_v29 = vsel %vm2314_vm11, 1, %v5273_v31  ;;  %v2789_v30 = vsel %vm2788_vm12, 1, %v5273_v31 }
 0x252   :  { %1606 = vperm.xlu1 %3224, %v1604_v3  }
 0x253   :  { %1519 = vmatpush2.bf16.msra.mxu1 %v5341_v28  ;;  %1560 = vmatpush2.bf16.msra.mxu0 %v5342_v34 }
 0x254   :  { %1520 = vmatprep.subr.bf16.mxu1 %v5343_v35  ;;  %1561 = vmatprep.subr.bf16.mxu0 %v5344_v36 }
 0x256   :  { %1843 = vperm.xlu1 %3224, %v1841_v19  }
 0x257   :  { %1521 = vmatpush2.bf16.msra.mxu1 %v5345_v37  ;;  %1562 = vmatpush2.bf16.msra.mxu0 %v5346_v38 }
 0x258   :  { %1522 = vmatprep.subr.bf16.mxu1 %v5347_v39  ;;  %1563 = vmatprep.subr.bf16.mxu0 %v5348_v40 }
 0x25a   :  { %2317 = vperm.xlu1 %3224, %v2315_v29   ;;  %v1370_v29 = vpop.permute.xlu0 %1369 }
 0x25b   :  { %1523 = vmatpush2.bf16.msra.mxu1 %v5349_v41  ;;  %1564 = vmatpush2.bf16.msra.mxu0 %v5350_v42  ;;  %v5376_v42 = vld [vmem:[#allocation43_spill] sm:$0xff]  ;;  %vm1371_vm13 = vcmp.eq.s32.totalorder %v1370_v29, 1 }
 0x25c   :  { %1524 = vmatprep.subr.bf16.mxu1 %v5351_v43  ;;  %1565 = vmatprep.subr.bf16.mxu0 %v5352_v44  ;;  %v4551_v29 = vld [vmem:[#allocation3 + $0x1e8] ss:$16 sps:$4 sm:$0xff]  }
 0x25d   :  { %5385 = vst [vmem:[#allocation14_spill] sm:$0xff] %v4551_v29 }
 0x25e   :  { %2791 = vperm.xlu1 %3224, %v2789_v30  }
 0x25f   :  { %1525 = vmatpush2.bf16.msra.mxu1 %v5353_v45  ;;  %1566 = vmatpush2.bf16.msra.mxu0 %v5354_v46 }
 0x260   :  { %1526 = vmatprep.subr.bf16.mxu1 %v5355_v47  ;;  %1567 = vmatprep.subr.bf16.mxu0 %v5356_v48 }
 0x263   :  { %1527 = vmatpush2.bf16.msra.mxu1 %v5357_v49  ;;  %1568 = vmatpush2.bf16.msra.mxu0 %v5358_v50 }
 0x264   :  { %1528 = vmatprep.subr.bf16.mxu1 %v5359_v51  ;;  %1569 = vmatprep.subr.bf16.mxu0 %v5360_v52 }
 0x267   :  { %1529 = vmatpush2.bf16.msra.mxu1 %v5361_v53  ;;  %1570 = vmatpush2.bf16.msra.mxu0 %v5362_v54 }
 0x268   :  { %1530 = vmatprep.subr.bf16.mxu1 %v5363_v55  ;;  %1571 = vmatprep.subr.bf16.mxu0 %v5364_v56 }
 0x26b   :  { %1531 = vmatpush2.bf16.msra.mxu1 %v5365_v57  ;;  %1572 = vmatpush2.bf16.msra.mxu0 %v5366_v58 }
 0x26c   :  { %1532 = vmatprep.subr.bf16.mxu1 %v5367_v59  ;;  %1573 = vmatprep.subr.bf16.mxu0 %v5368_v60 }
 0x26f   :  { %1533 = vmatpush2.bf16.msra.mxu1 %v5369_v61  ;;  %1574 = vmatpush2.bf16.msra.mxu0 %v5370_v62  ;;  %v5377_v61 = vld [vmem:[#allocation55_spill] sm:$0xff] }
 0x270   :  { %1646 = vmatprep.subr.bf16.mxu1 %v4390_v63  ;;  %3155 = vmatprep.subr.bf16.mxu0 %v5271_v26 }
 0x2ea   :  { %v1299_v25 = vpop.f32.mrf.mxu1  ;;  %v1340_v11 = vpop.f32.mrf.mxu0 }
 0x2eb   :  { %v1300_v32 = vadd.f32 %v1299_v25, %v5373_v16  ;;  %v1341_v53 = vadd.f32 %v1340_v11, %v4274_v22 }
 0x2ec   :  { %v1301_v5 = vpop.f32.mrf.mxu1  ;;  %v1342_v7 = vpop.f32.mrf.mxu0 }
 0x2ed   :  { %v3029_v17 = vmul.f32 -1.442695, %v1300_v32  ;;  %v1302_v24 = vadd.f32 %v1301_v5, %v5374_v10  ;;  %v1343_v51 = vadd.f32 %v1342_v7, %v4270_v8 }
 0x2ee   :  { %v1303_v21 = vpop.f32.mrf.mxu1  ;;  %v1344_v12 = vpop.f32.mrf.mxu0 }
 0x2ef   :  { %3381 = vpow2.f32 %v3029_v17  ;;  %v3030_v36 = vmul.f32 -1.442695, %v1302_v24 }
 0x2f0   :  { %v1304_v15 = vpop.f32.mrf.mxu1  ;;  %v1345_v6 = vpop.f32.mrf.mxu0 }
 0x2f2   :  { %v1431_v9 = vpop.f32.mrf.mxu1  ;;  %v1472_v0 = vpop.f32.mrf.mxu0 }
 0x2f3   :  { %v1478_v28 = vadd.f32 %v1431_v9, %v5375_v27  ;;  %v1492_v58 = vadd.f32 %v4163_v18, %v1472_v0  ;;  %v4429_v9 = vld [vmem:[%s5075_s7 + $0x20] ss:$12 sps:$4 sm:$0xff]   ;;  %v4444_v0 = vld [vmem:[#allocation3 + $0xe4] ss:$16 sps:$4 sm:$0xff]  }
 0x2f4   :  { %v1433_v34 = vpop.f32.mrf.mxu1  ;;  %v3153_v35 = vpop.f32.mrf.mxu0  ;;  %v4447_v27 = vld [vmem:[#allocation3 + $0xec] ss:$16 sps:$4 sm:$0xff]  }
 0x2f5   :  { %v3033_v37 = vmul.f32 -1.442695, %v1478_v28  ;;  %v1479_v43 = vadd.f32 %v1433_v34, %v5376_v42  ;;  %v4452_v28 = vld [vmem:[#allocation3 + $0xe0] ss:$16 sps:$4 sm:$0xff]   ;;  %v4455_v34 = vld [vmem:[#allocation3 + $0xe8] ss:$16 sps:$4 sm:$0xff]  }
 0x2f6   :  { %v1435_v38 = vpop.f32.mrf.mxu1  ;;  %v1475_v39 = vpop.f32.mrf.mxu0  ;;  %v4458_v35 = vld [vmem:[#allocation3 + $0xc4] ss:$16 sps:$4 sm:$0xff]   ;;  %v4479_v42 = vld [vmem:[#allocation3 + $0xa8] ss:$16 sps:$4 sm:$0xff]  }
 0x2f7   :  { %3383 = vpow2.f32 %v3033_v37  ;;  %v3034_v46 = vmul.f32 -1.442695, %v1479_v43  ;;  %v4464_v37 = vld [vmem:[#allocation3 + $0xc0] ss:$16 sps:$4 sm:$0xff]   ;;  %v4467_v38 = vld [vmem:[#allocation3 + $0xc8] ss:$16 sps:$4 sm:$0xff]  }
 0x2f8   :  { %v1436_v40 = vpop.f32.mrf.mxu1  ;;  %v3154_v41 = vpop.f32.mrf.mxu0  ;;  %3385 = vpow2.f32 %v3030_v36  ;;  %v4461_v36 = vld [vmem:[#allocation3 + $0xcc] ss:$16 sps:$4 sm:$0xff]   ;;  %v4470_v39 = vld [vmem:[#allocation3 + $0xa4] ss:$16 sps:$4 sm:$0xff]  }
 0x2f9   :  { %v4473_v40 = vld [vmem:[#allocation3 + $0xac] ss:$16 sps:$4 sm:$0xff]   ;;  %v4476_v41 = vld [vmem:[#allocation3 + $0xa0] ss:$16 sps:$4 sm:$0xff]   ;;  %v4482_v43 = vld [vmem:[#allocation3 + $0x84] ss:$16 sps:$4 sm:$0xff]  }
 0x2fc   :  { %v3382_v44 = vpop.eup %3381 }
 0x2fd   :  { %v1353_v45 = vadd.f32 1.0, %v3382_v44  ;;  %v4485_v44 = vld [vmem:[#allocation3 + $0x8c] ss:$16 sps:$4 sm:$0xff]  }
 0x2ff   :  { %3387 = vrcp.f32 %v1353_v45  ;;  %v4488_v45 = vld [vmem:[#allocation3 + $0x80] ss:$16 sps:$4 sm:$0xff]  }
 0x300   :  { %3389 = vpow2.f32 %v3034_v46  ;;  %v4491_v46 = vld [vmem:[#allocation3 + $0x88] ss:$16 sps:$4 sm:$0xff]  }
 0x304   :  { %v3384_v47 = vpop.eup %3383 }
 0x305   :  { %v1486_v48 = vadd.f32 1.0, %v3384_v47  ;;  %v3386_v49 = vpop.eup %3385  ;;  %v4494_v47 = vld [vmem:[#allocation3 + $0x64] ss:$16 sps:$4 sm:$0xff]  }
 0x306   :  { %v1354_v50 = vadd.f32 1.0, %v3386_v49  ;;  %v4500_v49 = vld [vmem:[#allocation3 + $0x60] ss:$16 sps:$4 sm:$0xff]  }
 0x307   :  { %3391 = vrcp.f32 %v1486_v48  ;;  %v4497_v48 = vld [vmem:[#allocation3 + $0x6c] ss:$16 sps:$4 sm:$0xff]  }
 0x308   :  { %3393 = vrcp.f32 %v1354_v50  ;;  %v4503_v50 = vld [vmem:[#allocation3 + $0x68] ss:$16 sps:$4 sm:$0xff]  }
 0x30c   :  { %v3388_v52 = vpop.eup %3387 }
 0x30d   :  { %v1359_v54 = vmul.f32 %v3388_v52, %v1343_v51  ;;  %v3390_v55 = vpop.eup %3389  ;;  %v4506_v51 = vld [vmem:[#allocation3 + $0x44] ss:$16 sps:$4 sm:$0xff]   ;;  %v4509_v52 = vld [vmem:[#allocation3 + $0x4c] ss:$16 sps:$4 sm:$0xff]  }
 0x30e   :  { %v1487_v57 = vadd.f32 1.0, %v3390_v55  ;;  %v4518_v55 = vld [vmem:[#allocation3 + $0x24] ss:$16 sps:$4 sm:$0xff]  }
 0x30f   :  { %v1360_v56 = vadd.f32 %v1359_v54, %v1341_v53  ;;  %v4512_v53 = vld [vmem:[#allocation3 + $0x40] ss:$16 sps:$4 sm:$0xff]   ;;  %v4515_v54 = vld [vmem:[#allocation3 + $0x48] ss:$16 sps:$4 sm:$0xff]  }
 0x311   :  { %3395 = vtanh.f32 %v1360_v56  ;;  %v4521_v56 = vld [vmem:[#allocation3 + $0x2c] ss:$16 sps:$4 sm:$0xff]  }
 0x312   :  { %3397 = vrcp.f32 %v1487_v57  ;;  %v4524_v57 = vld [vmem:[#allocation3 + $0x20] ss:$16 sps:$4 sm:$0xff]  }
 0x314   :  { %v3392_v59 = vpop.eup %3391 }
 0x315   :  { %v1493_v60 = vmul.f32 %v3392_v59, %v1492_v58  ;;  %v3394_v2 = vpop.eup %3393  ;;  %v4527_v58 = vld [vmem:[#allocation3 + $0x28] ss:$16 sps:$4 sm:$0xff]   ;;  %v4530_v59 = vld [vmem:[#allocation3 + $0x4] ss:$16 sps:$4 sm:$0xff]  }
 0x316   :  { %v1362_v3 = vsub.f32 1.0, %v3394_v2  ;;  %v1364_v25 = vmul.f32 %v3394_v2, %v4281_v14  ;;  %v4542_v2 = vld [vmem:[#allocation3 + $0x1e4] ss:$16 sps:$4 sm:$0xff]  }
 0x317   :  { %v1494_v62 = vadd.f32 %v1493_v60, %v5377_v61  ;;  %v4533_v60 = vld [vmem:[#allocation3 + $0xc] ss:$16 sps:$4 sm:$0xff]   ;;  %v4536_v61 = vld [vmem:[#allocation3] ss:$16 sps:$4 sm:$0xff]   ;;  %5382 = vst [vmem:[#allocation11_spill] sm:$0xff] %v4542_v2 }
 0x318   :  { %5379 = vst [vmem:[#allocation8_spill] sm:$0xff] %v4533_v60  ;;  %5380 = vst [vmem:[#allocation9_spill] sm:$0xff] %v4536_v61 }
 0x319   :  { %3399 = vtanh.f32 %v1494_v62  ;;  %v4539_v62 = vld [vmem:[#allocation3 + $0x8] ss:$16 sps:$4 sm:$0xff]  }
 0x31a   :  { %5381 = vst [vmem:[#allocation10_spill] sm:$0xff] %v4539_v62 }
 0x31e   :  { %v3396_v19 = vpop.eup %3395 }
 0x31f   :  { %v1363_v30 = vmul.f32 %v3396_v19, %v1362_v3  ;;  %v3398_v32 = vpop.eup %3397  ;;  %v4545_v3 = vld [vmem:[#allocation3 + $0x1ec] ss:$16 sps:$4 sm:$0xff]   ;;  %v4548_v19 = vld [vmem:[#allocation3 + $0x1e0] ss:$16 sps:$4 sm:$0xff]  }
 0x320   :  { %v1496_v21 = vsub.f32 1.0, %v3398_v32  ;;  %v1498_v14 = vmul.f32 %v3398_v32, %v4293_v4  ;;  %v4441_v4 = vld [vmem:[%s5075_s7 + $0x8] ss:$12 sps:$4 sm:$0xff]   ;;  %5383 = vst [vmem:[#allocation12_spill] sm:$0xff] %v4545_v3  ;;  %5384 = vst [vmem:[#allocation13_spill] sm:$0xff] %v4548_v19 }
 0x321   :  { %v4411_v11 = vadd.f32 %v1364_v25, %v1363_v30  ;;  %v4554_v30 = vld [vmem:[#allocation3 + $0x1c4] ss:$16 sps:$4 sm:$0xff]   ;;  %v4557_v25 = vld [vmem:[#allocation3 + $0x1cc] ss:$16 sps:$4 sm:$0xff]   ;;  %v4560_v32 = vld [vmem:[#allocation3 + $0x1c0] ss:$16 sps:$4 sm:$0xff]  }
 0x322   :  { %5386 = vst [vmem:[#allocation15_spill] sm:$0xff] %v4554_v30  ;;  %5387 = vst [vmem:[#allocation16_spill] sm:$0xff] %v4557_v25 }
 0x323   :  { %v1501_v5 = vpack.c.bf16 %v4411_v11, %v4411_v11  ;;  %v4416_v7 = vsel %vm1371_vm13, %v4411_v11, 0.0  ;;  %5388 = vst [vmem:[#allocation17_spill] sm:$0xff] %v4560_v32 }
 0x324   :  { %5378 = vst [vmem:[#allocation44_spill] sm:$0xff] %v4416_v7  ;;  %v1373_v17 = vmul.f32 %v4283_v20, %v4416_v7  ;;  %v4584_v7 = vld [vmem:[#allocation3 + $0x180] ss:$16 sps:$4 sm:$0xff]  }
 0x325   :  { %1534 = vmatprep.mubr.bf16.mxu1 %v1501_v5  ;;  %1575 = vmatprep.mubr.bf16.mxu0 %v1501_v5  ;;  %v4563_v5 = vld [vmem:[#allocation3 + $0x1c8] ss:$16 sps:$4 sm:$0xff]   ;;  %5396 = vst [vmem:[#allocation25_spill] sm:$0xff] %v4584_v7 }
 0x326   :  { %v3400_v12 = vpop.eup %3399  ;;  %1374 = vadd.xlane.f32.xlu1 %v1373_v17  ;;  %5389 = vst [vmem:[#allocation18_spill] sm:$0xff] %v4563_v5  ;;  %v4566_v17 = vld [vmem:[#allocation3 + $0x1a4] ss:$16 sps:$4 sm:$0xff]  }
 0x327   :  { %v1497_v15 = vmul.f32 %v3400_v12, %v1496_v21  ;;  %5390 = vst [vmem:[#allocation19_spill] sm:$0xff] %v4566_v17  ;;  %v4569_v21 = vld [vmem:[#allocation3 + $0x1ac] ss:$16 sps:$4 sm:$0xff]   ;;  %v4572_v12 = vld [vmem:[#allocation3 + $0x1a0] ss:$16 sps:$4 sm:$0xff]  }
 0x328   :  { %5391 = vst [vmem:[#allocation20_spill] sm:$0xff] %v4569_v21  ;;  %5392 = vst [vmem:[#allocation21_spill] sm:$0xff] %v4572_v12 }
 0x329   :  { %v4421_v6 = vadd.f32 %v1498_v14, %v1497_v15  ;;  %v4575_v15 = vld [vmem:[#allocation3 + $0x1a8] ss:$16 sps:$4 sm:$0xff]   ;;  %v4578_v14 = vld [vmem:[#allocation3 + $0x184] ss:$16 sps:$4 sm:$0xff]  }
 0x32a   :  { %5393 = vst [vmem:[#allocation22_spill] sm:$0xff] %v4575_v15  ;;  %5394 = vst [vmem:[#allocation23_spill] sm:$0xff] %v4578_v14 }
 0x32b   :  { %v1500_v24 = vpack.c.bf16 %v4421_v6, %v4421_v6 }
 0x32d   :  { %1535 = vmatmul.mubr.bf16.vlgmr.msra.gmra.mxu1 %v1500_v24  ;;  %1576 = vmatmul.mubr.bf16.vlgmr.msra.gmra.mxu0 %v1500_v24 }
 0x32e   :  { %1647 = vmatpush1.bf16.msra.mxu1 %v4300_v1  ;;  %3156 = vmatpush3.bf16.msra.mxu0 %v4429_v9 }
 0x32f   :  { %1648 = vmatprep.subr.bf16.mxu1 %v4307_v13  ;;  %3157 = vmatprep.subr.bf16.mxu0 %v5271_v26 }
 0x330   :  { %1666 = vmatprep.mubr.bf16.mxu1 %v5273_v31  ;;  %3159 = vmatprep.mubr.msk.bf16.mxu0 %vm3713_vm2, %v5271_v26 }
 0x332   :  { %1649 = vmatpush1.bf16.msra.mxu1 %v4317_v33  ;;  %3158 = vmatpush3.bf16.msra.mxu0 %v4441_v4 }
 0x333   :  { %1739 = vmatprep.subr.bf16.mxu1 %v4444_v0  ;;  %1780 = vmatprep.subr.bf16.mxu0 %v4447_v27 }
 0x335   :  { %3037 = vmatmul.mubr.msk.bf16.vlgmr.msra.gmra.mxu1 %vm510_vm4, %v1500_v24  ;;  %3160 = vmatmul.mubr.msk.bf16.vlgmr.msra.gmra.mxu0 %vm510_vm4, %v1500_v24  ;;  %v4581_v24 = vld [vmem:[#allocation3 + $0x18c] ss:$16 sps:$4 sm:$0xff]  }
 0x336   :  { %1740 = vmatpush1.bf16.msra.mxu1 %v4452_v28  ;;  %1781 = vmatpush1.bf16.msra.mxu0 %v4455_v34  ;;  %5395 = vst [vmem:[#allocation24_spill] sm:$0xff] %v4581_v24 }
 0x337   :  { %1741 = vmatprep.subr.bf16.mxu1 %v4458_v35  ;;  %1782 = vmatprep.subr.bf16.mxu0 %v4461_v36 }
 0x33a   :  { %1742 = vmatpush1.bf16.msra.mxu1 %v4464_v37  ;;  %1783 = vmatpush1.bf16.msra.mxu0 %v4467_v38 }
 0x33b   :  { %1743 = vmatprep.subr.bf16.mxu1 %v4470_v39  ;;  %1784 = vmatprep.subr.bf16.mxu0 %v4473_v40 }
 0x33e   :  { %1744 = vmatpush1.bf16.msra.mxu1 %v4476_v41  ;;  %1785 = vmatpush1.bf16.msra.mxu0 %v4479_v42 }
 0x33f   :  { %1745 = vmatprep.subr.bf16.mxu1 %v4482_v43  ;;  %1786 = vmatprep.subr.bf16.mxu0 %v4485_v44 }
 0x342   :  { %1746 = vmatpush1.bf16.msra.mxu1 %v4488_v45  ;;  %1787 = vmatpush1.bf16.msra.mxu0 %v4491_v46 }
 0x343   :  { %1747 = vmatprep.subr.bf16.mxu1 %v4494_v47  ;;  %1788 = vmatprep.subr.bf16.mxu0 %v4497_v48 }
 0x346   :  { %1748 = vmatpush1.bf16.msra.mxu1 %v4500_v49  ;;  %1789 = vmatpush1.bf16.msra.mxu0 %v4503_v50 }
 0x347   :  { %1749 = vmatprep.subr.bf16.mxu1 %v4506_v51  ;;  %1790 = vmatprep.subr.bf16.mxu0 %v4509_v52 }
 0x34a   :  { %1750 = vmatpush1.bf16.msra.mxu1 %v4512_v53  ;;  %1791 = vmatpush1.bf16.msra.mxu0 %v4515_v54 }
 0x34b   :  { %1751 = vmatprep.subr.bf16.mxu1 %v4518_v55  ;;  %1792 = vmatprep.subr.bf16.mxu0 %v4521_v56 }
 0x34e   :  { %1752 = vmatpush1.bf16.msra.mxu1 %v4524_v57  ;;  %1793 = vmatpush1.bf16.msra.mxu0 %v4527_v58 }
 0x34f   :  { %1753 = vmatprep.subr.bf16.mxu1 %v4530_v59  ;;  %1794 = vmatprep.subr.bf16.mxu0 %v4533_v60 }
 0x352   :  { %1754 = vmatpush1.bf16.msra.mxu1 %v4536_v61  ;;  %1795 = vmatpush1.bf16.msra.mxu0 %v4539_v62 }
 0x353   :  { %1755 = vmatprep.subr.bf16.mxu1 %v4542_v2  ;;  %1796 = vmatprep.subr.bf16.mxu0 %v4545_v3 }
 0x356   :  { %1756 = vmatpush2.bf16.msra.mxu1 %v4548_v19  ;;  %1797 = vmatpush2.bf16.msra.mxu0 %v4551_v29  ;;  %v5414_v19 = vld [vmem:[#allocation45_spill] sm:$0xff] }
 0x357   :  { %1757 = vmatprep.subr.bf16.mxu1 %v4554_v30  ;;  %1798 = vmatprep.subr.bf16.mxu0 %v4557_v25 }
 0x35a   :  { %1758 = vmatpush2.bf16.msra.mxu1 %v4560_v32  ;;  %1799 = vmatpush2.bf16.msra.mxu0 %v4563_v5 }
 0x35b   :  { %1759 = vmatprep.subr.bf16.mxu1 %v4566_v17  ;;  %1800 = vmatprep.subr.bf16.mxu0 %v4569_v21 }
 0x35e   :  { %1760 = vmatpush2.bf16.msra.mxu1 %v4572_v12  ;;  %1801 = vmatpush2.bf16.msra.mxu0 %v4575_v15  ;;  %v4590_v12 = vld [vmem:[#allocation3 + $0x164] ss:$16 sps:$4 sm:$0xff]   ;;  %v4593_v15 = vld [vmem:[#allocation3 + $0x16c] ss:$16 sps:$4 sm:$0xff]  }
 0x35f   :  { %1761 = vmatprep.subr.bf16.mxu1 %v4578_v14  ;;  %1802 = vmatprep.subr.bf16.mxu0 %v4581_v24  ;;  %5398 = vst [vmem:[#allocation27_spill] sm:$0xff] %v4590_v12  ;;  %5399 = vst [vmem:[#allocation28_spill] sm:$0xff] %v4593_v15  ;;  %v4596_v14 = vld [vmem:[#allocation3 + $0x160] ss:$16 sps:$4 sm:$0xff]   ;;  %v4599_v24 = vld [vmem:[#allocation3 + $0x168] ss:$16 sps:$4 sm:$0xff]  }
 0x360   :  { %5400 = vst [vmem:[#allocation29_spill] sm:$0xff] %v4596_v14  ;;  %5401 = vst [vmem:[#allocation30_spill] sm:$0xff] %v4599_v24 }
 0x362   :  { %1762 = vmatpush2.bf16.msra.mxu1 %v4584_v7  ;;  %1803 = vmatpush2.bf16.msra.mxu0 %v4587_v23  ;;  %v4602_v7 = vld [vmem:[#allocation3 + $0x144] ss:$16 sps:$4 sm:$0xff]   ;;  %v4605_v23 = vld [vmem:[#allocation3 + $0x14c] ss:$16 sps:$4 sm:$0xff]  }
 0x363   :  { %1763 = vmatprep.subr.bf16.mxu1 %v4590_v12  ;;  %1804 = vmatprep.subr.bf16.mxu0 %v4593_v15  ;;  %5402 = vst [vmem:[#allocation31_spill] sm:$0xff] %v4602_v7  ;;  %5403 = vst [vmem:[#allocation32_spill] sm:$0xff] %v4605_v23  ;;  %v4608_v12 = vld [vmem:[#allocation3 + $0x140] ss:$16 sps:$4 sm:$0xff]   ;;  %v4611_v15 = vld [vmem:[#allocation3 + $0x148] ss:$16 sps:$4 sm:$0xff]  }
 0x364   :  { %5404 = vst [vmem:[#allocation33_spill] sm:$0xff] %v4608_v12  ;;  %5405 = vst [vmem:[#allocation34_spill] sm:$0xff] %v4611_v15 }
 0x366   :  { %1764 = vmatpush2.bf16.msra.mxu1 %v4596_v14  ;;  %1805 = vmatpush2.bf16.msra.mxu0 %v4599_v24  ;;  %v4614_v14 = vld [vmem:[#allocation3 + $0x124] ss:$16 sps:$4 sm:$0xff]   ;;  %v4617_v24 = vld [vmem:[#allocation3 + $0x12c] ss:$16 sps:$4 sm:$0xff]  }
 0x367   :  { %1765 = vmatprep.subr.bf16.mxu1 %v4602_v7  ;;  %1806 = vmatprep.subr.bf16.mxu0 %v4605_v23  ;;  %5406 = vst [vmem:[#allocation35_spill] sm:$0xff] %v4614_v14  ;;  %5407 = vst [vmem:[#allocation36_spill] sm:$0xff] %v4617_v24  ;;  %v4620_v7 = vld [vmem:[#allocation3 + $0x120] ss:$16 sps:$4 sm:$0xff]   ;;  %v4623_v23 = vld [vmem:[#allocation3 + $0x128] ss:$16 sps:$4 sm:$0xff]  }
 0x368   :  { %5408 = vst [vmem:[#allocation37_spill] sm:$0xff] %v4620_v7  ;;  %5409 = vst [vmem:[#allocation38_spill] sm:$0xff] %v4623_v23 }
 0x36a   :  { %1766 = vmatpush2.bf16.msra.mxu1 %v4608_v12  ;;  %1807 = vmatpush2.bf16.msra.mxu0 %v4611_v15  ;;  %v4626_v12 = vld [vmem:[#allocation3 + $0x104] ss:$16 sps:$4 sm:$0xff]   ;;  %v4629_v15 = vld [vmem:[#allocation3 + $0x10c] ss:$16 sps:$4 sm:$0xff]  }
 0x36b   :  { %1767 = vmatprep.subr.bf16.mxu1 %v4614_v14  ;;  %1808 = vmatprep.subr.bf16.mxu0 %v4617_v24  ;;  %5410 = vst [vmem:[#allocation39_spill] sm:$0xff] %v4626_v12  ;;  %5411 = vst [vmem:[#allocation42_spill] sm:$0xff] %v4629_v15  ;;  %v4632_v14 = vld [vmem:[#allocation3 + $0x100] ss:$16 sps:$4 sm:$0xff]   ;;  %v4635_v24 = vld [vmem:[#allocation3 + $0x108] ss:$16 sps:$4 sm:$0xff]  }
 0x36c   :  { %5412 = vst [vmem:[#allocation43_spill] sm:$0xff] %v4632_v14  ;;  %5413 = vst [vmem:[#allocation55_spill] sm:$0xff] %v4635_v24 }
 0x36e   :  { %1768 = vmatpush2.bf16.msra.mxu1 %v4620_v7  ;;  %1809 = vmatpush2.bf16.msra.mxu0 %v4623_v23 }
 0x36f   :  { %1769 = vmatprep.subr.bf16.mxu1 %v4626_v12  ;;  %1810 = vmatprep.subr.bf16.mxu0 %v4629_v15 }
 0x372   :  { %1770 = vmatpush2.bf16.msra.mxu1 %v4632_v14  ;;  %1811 = vmatpush2.bf16.msra.mxu0 %v4635_v24 }
 0x373   :  { %1883 = vmatprep.subr.bf16.mxu1 %v4390_v63  ;;  %3163 = vmatprep.subr.bf16.mxu0 %v5271_v26 }
 0x3ed   :  { %v1536_v23 = vpop.f32.mrf.mxu1  ;;  %v1577_v7 = vpop.f32.mrf.mxu0 }
 0x3ee   :  { %v1537_v12 = vadd.f32 %v1536_v23, %v5373_v16 }
 0x3ef   :  { %v1538_v21 = vpop.f32.mrf.mxu1  ;;  %v1579_v17 = vpop.f32.mrf.mxu0 }
 0x3f0   :  { %v3035_v5 = vmul.f32 -1.442695, %v1537_v12  ;;  %v1539_v30 = vadd.f32 %v1538_v21, %v5374_v10 }
 0x3f1   :  { %v1540_v15 = vpop.f32.mrf.mxu1  ;;  %v1581_v32 = vpop.f32.mrf.mxu0 }
 0x3f2   :  { %3401 = vpow2.f32 %v3035_v5  ;;  %v3036_v62 = vmul.f32 -1.442695, %v1539_v30  ;;  %v5415_v32 = vld [vmem:[#allocation46_spill] sm:$0xff] }
 0x3f3   :  { %v1541_v25 = vpop.f32.mrf.mxu1  ;;  %v1582_v14 = vpop.f32.mrf.mxu0 }
 0x3f5   :  { %v1668_v29 = vpop.f32.mrf.mxu1  ;;  %v1709_v24 = vpop.f32.mrf.mxu0 }
 0x3f6   :  { %v1715_v63 = vadd.f32 %v1668_v29, %v5414_v19  ;;  %v1729_v30 = vadd.f32 %v4163_v18, %v1709_v24 }
 0x3f7   :  { %v1670_v3 = vpop.f32.mrf.mxu1  ;;  %v3161_v2 = vpop.f32.mrf.mxu0 }
 0x3f8   :  { %v3039_v61 = vmul.f32 -1.442695, %v1715_v63  ;;  %v1716_v5 = vadd.f32 %v1670_v3, %v5415_v32  ;;  %v1580_v63 = vadd.f32 %v1579_v17, %v4270_v8  ;;  %v5416_v32 = vld [vmem:[#allocation56_spill] sm:$0xff] }
 0x3f9   :  { %v1672_v60 = vpop.f32.mrf.mxu1  ;;  %v1712_v23 = vpop.f32.mrf.mxu0 }
 0x3fa   :  { %3403 = vpow2.f32 %v3039_v61  ;;  %v3040_v14 = vmul.f32 -1.442695, %v1716_v5  ;;  %v1578_v61 = vadd.f32 %v1577_v7, %v4274_v22 }
 0x3fb   :  { %v1673_v16 = vpop.f32.mrf.mxu1  ;;  %v3162_v12 = vpop.f32.mrf.mxu0  ;;  %3405 = vpow2.f32 %v3036_v62 }
 0x3ff   :  { %v3402_v25 = vpop.eup %3401 }
 0x400   :  { %v1590_v15 = vadd.f32 1.0, %v3402_v25 }
 0x402   :  { %3407 = vrcp.f32 %v1590_v15  ;;  %v1607_v15 = vpop.permute.xlu1 %1606 }
 0x403   :  { %3409 = vpow2.f32 %v3040_v14  ;;  %vm1608_vm14 = vcmp.eq.s32.totalorder %v1607_v15, 1  ;;  %v5429_v15 = vld [vmem:[#allocation19_spill] sm:$0xff] }
 0x407   :  { %v3404_v21 = vpop.eup %3403 }
 0x408   :  { %v1723_v10 = vadd.f32 1.0, %v3404_v21  ;;  %v3406_v19 = vpop.eup %3405 }
 0x409   :  { %v1591_v2 = vadd.f32 1.0, %v3406_v19 }
 0x40a   :  { %3411 = vrcp.f32 %v1723_v10 }
 0x40b   :  { %3413 = vrcp.f32 %v1591_v2 }
 0x40f   :  { %v3408_v60 = vpop.eup %3407 }
 0x410   :  { %v1596_v16 = vmul.f32 %v3408_v60, %v1580_v63  ;;  %v3410_v62 = vpop.eup %3409 }
 0x411   :  { %v1724_v3 = vadd.f32 1.0, %v3410_v62 }
 0x412   :  { %v1597_v29 = vadd.f32 %v1596_v16, %v1578_v61 }
 0x414   :  { %3415 = vtanh.f32 %v1597_v29  ;;  %v5419_v29 = vld [vmem:[#allocation9_spill] sm:$0xff] }
 0x415   :  { %3417 = vrcp.f32 %v1724_v3  ;;  %v5420_v3 = vld [vmem:[#allocation10_spill] sm:$0xff] }
 0x417   :  { %v3412_v23 = vpop.eup %3411 }
 0x418   :  { %v1730_v12 = vmul.f32 %v3412_v23, %v1729_v30  ;;  %v3414_v10 = vpop.eup %3413  ;;  %v5421_v30 = vld [vmem:[#allocation11_spill] sm:$0xff]  ;;  %v5422_v23 = vld [vmem:[#allocation12_spill] sm:$0xff] }
 0x419   :  { %v1599_v25 = vsub.f32 1.0, %v3414_v10  ;;  %v1601_v7 = vmul.f32 %v3414_v10, %v4411_v11  ;;  %v5426_v10 = vld [vmem:[#allocation16_spill] sm:$0xff] }
 0x41a   :  { %v1731_v5 = vadd.f32 %v1730_v12, %v5416_v32  ;;  %v5423_v12 = vld [vmem:[#allocation13_spill] sm:$0xff]  ;;  %v5424_v32 = vld [vmem:[#allocation14_spill] sm:$0xff] }
 0x41c   :  { %3419 = vtanh.f32 %v1731_v5  ;;  %v5425_v5 = vld [vmem:[#allocation15_spill] sm:$0xff] }
 0x421   :  { %v3416_v17 = vpop.eup %3415 }
 0x422   :  { %v1600_v14 = vmul.f32 %v3416_v17, %v1599_v25  ;;  %v3418_v19 = vpop.eup %3417  ;;  %v5427_v25 = vld [vmem:[#allocation17_spill] sm:$0xff]  ;;  %v5428_v17 = vld [vmem:[#allocation18_spill] sm:$0xff] }
 0x423   :  { %v1733_v63 = vsub.f32 1.0, %v3418_v19  ;;  %v1735_v11 = vmul.f32 %v3418_v19, %v4421_v6  ;;  %v5418_v6 = vld [vmem:[#allocation8_spill] sm:$0xff]  ;;  %v5432_v19 = vld [vmem:[#allocation22_spill] sm:$0xff] }
 0x424   :  { %v4649_v21 = vadd.f32 %v1601_v7, %v1600_v14  ;;  %v5430_v14 = vld [vmem:[#allocation20_spill] sm:$0xff]  ;;  %v5431_v7 = vld [vmem:[#allocation21_spill] sm:$0xff] }
 0x426   :  { %v1738_v18 = vpack.c.bf16 %v4649_v21, %v4649_v21  ;;  %v4654_v24 = vsel %vm1608_vm14, %v4649_v21, 0.0 }
 0x427   :  { %5417 = vst [vmem:[#allocation45_spill] sm:$0xff] %v4654_v24  ;;  %v1610_v2 = vmul.f32 %v4283_v20, %v4654_v24  ;;  %v5440_v24 = vld [vmem:[#allocation30_spill] sm:$0xff] }
 0x428   :  { %1771 = vmatprep.mubr.bf16.mxu1 %v1738_v18  ;;  %1812 = vmatprep.mubr.bf16.mxu0 %v1738_v18  ;;  %v5433_v18 = vld [vmem:[#allocation23_spill] sm:$0xff] }
 0x429   :  { %v3420_v60 = vpop.eup %3419  ;;  %1611 = vadd.xlane.f32.xlu0 %v1610_v2  ;;  %v5434_v2 = vld [vmem:[#allocation24_spill] sm:$0xff] }
 0x42a   :  { %v1734_v61 = vmul.f32 %v3420_v60, %v1733_v63  ;;  %v5435_v63 = vld [vmem:[#allocation25_spill] sm:$0xff]  ;;  %v5436_v60 = vld [vmem:[#allocation26_spill] sm:$0xff] }
 0x42c   :  { %v4659_v16 = vadd.f32 %v1735_v11, %v1734_v61  ;;  %v5437_v61 = vld [vmem:[#allocation27_spill] sm:$0xff]  ;;  %v5438_v11 = vld [vmem:[#allocation28_spill] sm:$0xff] }
 0x42e   :  { %v1737_v62 = vpack.c.bf16 %v4659_v16, %v4659_v16 }
 0x430   :  { %1772 = vmatmul.mubr.bf16.vlgmr.msra.gmra.mxu1 %v1737_v62  ;;  %1813 = vmatmul.mubr.bf16.vlgmr.msra.gmra.mxu0 %v1737_v62 }
 0x431   :  { %1884 = vmatpush1.bf16.msra.mxu1 %v4300_v1  ;;  %3164 = vmatpush3.bf16.msra.mxu0 %v4429_v9 }
 0x432   :  { %1885 = vmatprep.subr.bf16.mxu1 %v4307_v13  ;;  %3165 = vmatprep.subr.bf16.mxu0 %v5271_v26 }
 0x433   :  { %1903 = vmatprep.mubr.bf16.mxu1 %v5273_v31  ;;  %3167 = vmatprep.mubr.msk.bf16.mxu0 %vm3713_vm2, %v5271_v26 }
 0x435   :  { %1886 = vmatpush1.bf16.msra.mxu1 %v4317_v33  ;;  %3166 = vmatpush3.bf16.msra.mxu0 %v4441_v4 }
 0x436   :  { %1976 = vmatprep.subr.bf16.mxu1 %v4444_v0  ;;  %2017 = vmatprep.subr.bf16.mxu0 %v4447_v27 }
 0x438   :  { %3043 = vmatmul.mubr.msk.bf16.vlgmr.msra.gmra.mxu1 %vm510_vm4, %v1737_v62  ;;  %3168 = vmatmul.mubr.msk.bf16.vlgmr.msra.gmra.mxu0 %vm510_vm4, %v1737_v62  ;;  %v5439_v62 = vld [vmem:[#allocation29_spill] sm:$0xff] }
 0x439   :  { %1977 = vmatpush1.bf16.msra.mxu1 %v4452_v28  ;;  %2018 = vmatpush1.bf16.msra.mxu0 %v4455_v34 }
 0x43a   :  { %1978 = vmatprep.subr.bf16.mxu1 %v4458_v35  ;;  %2019 = vmatprep.subr.bf16.mxu0 %v4461_v36 }
 0x43d   :  { %1979 = vmatpush1.bf16.msra.mxu1 %v4464_v37  ;;  %2020 = vmatpush1.bf16.msra.mxu0 %v4467_v38 }
 0x43e   :  { %1980 = vmatprep.subr.bf16.mxu1 %v4470_v39  ;;  %2021 = vmatprep.subr.bf16.mxu0 %v4473_v40 }
 0x441   :  { %1981 = vmatpush1.bf16.msra.mxu1 %v4476_v41  ;;  %2022 = vmatpush1.bf16.msra.mxu0 %v4479_v42 }
 0x442   :  { %1982 = vmatprep.subr.bf16.mxu1 %v4482_v43  ;;  %2023 = vmatprep.subr.bf16.mxu0 %v4485_v44 }
 0x445   :  { %1983 = vmatpush1.bf16.msra.mxu1 %v4488_v45  ;;  %2024 = vmatpush1.bf16.msra.mxu0 %v4491_v46 }
 0x446   :  { %1984 = vmatprep.subr.bf16.mxu1 %v4494_v47  ;;  %2025 = vmatprep.subr.bf16.mxu0 %v4497_v48 }
 0x449   :  { %1985 = vmatpush1.bf16.msra.mxu1 %v4500_v49  ;;  %2026 = vmatpush1.bf16.msra.mxu0 %v4503_v50 }
 0x44a   :  { %1986 = vmatprep.subr.bf16.mxu1 %v4506_v51  ;;  %2027 = vmatprep.subr.bf16.mxu0 %v4509_v52 }
 0x44d   :  { %1987 = vmatpush1.bf16.msra.mxu1 %v4512_v53  ;;  %2028 = vmatpush1.bf16.msra.mxu0 %v4515_v54 }
 0x44e   :  { %1988 = vmatprep.subr.bf16.mxu1 %v4518_v55  ;;  %2029 = vmatprep.subr.bf16.mxu0 %v4521_v56 }
 0x451   :  { %1989 = vmatpush1.bf16.msra.mxu1 %v4524_v57  ;;  %2030 = vmatpush1.bf16.msra.mxu0 %v4527_v58 }
 0x452   :  { %1990 = vmatprep.subr.bf16.mxu1 %v4530_v59  ;;  %2031 = vmatprep.subr.bf16.mxu0 %v5418_v6 }
 0x455   :  { %1991 = vmatpush1.bf16.msra.mxu1 %v5419_v29  ;;  %2032 = vmatpush1.bf16.msra.mxu0 %v5420_v3 }
 0x456   :  { %1992 = vmatprep.subr.bf16.mxu1 %v5421_v30  ;;  %2033 = vmatprep.subr.bf16.mxu0 %v5422_v23 }
 0x459   :  { %1993 = vmatpush2.bf16.msra.mxu1 %v5423_v12  ;;  %2034 = vmatpush2.bf16.msra.mxu0 %v5424_v32  ;;  %v5456_v32 = vld [vmem:[#allocation47_spill] sm:$0xff] }
 0x45a   :  { %1994 = vmatprep.subr.bf16.mxu1 %v5425_v5  ;;  %2035 = vmatprep.subr.bf16.mxu0 %v5426_v10  ;;  %v5455_v10 = vld [vmem:[#allocation6_spill] sm:$0xff] }
 0x45d   :  { %1995 = vmatpush2.bf16.msra.mxu1 %v5427_v25  ;;  %2036 = vmatpush2.bf16.msra.mxu0 %v5428_v17 }
 0x45e   :  { %1996 = vmatprep.subr.bf16.mxu1 %v5429_v15  ;;  %2037 = vmatprep.subr.bf16.mxu0 %v5430_v14  ;;  %v5441_v14 = vld [vmem:[#allocation31_spill] sm:$0xff] }
 0x461   :  { %1997 = vmatpush2.bf16.msra.mxu1 %v5431_v7  ;;  %2038 = vmatpush2.bf16.msra.mxu0 %v5432_v19  ;;  %v5442_v7 = vld [vmem:[#allocation32_spill] sm:$0xff]  ;;  %v5443_v19 = vld [vmem:[#allocation33_spill] sm:$0xff] }
 0x462   :  { %1998 = vmatprep.subr.bf16.mxu1 %v5433_v18  ;;  %2039 = vmatprep.subr.bf16.mxu0 %v5434_v2  ;;  %v5444_v18 = vld [vmem:[#allocation34_spill] sm:$0xff]  ;;  %v5445_v2 = vld [vmem:[#allocation35_spill] sm:$0xff] }
 0x465   :  { %1999 = vmatpush2.bf16.msra.mxu1 %v5435_v63  ;;  %2040 = vmatpush2.bf16.msra.mxu0 %v5436_v60  ;;  %v5446_v63 = vld [vmem:[#allocation36_spill] sm:$0xff]  ;;  %v5447_v60 = vld [vmem:[#allocation37_spill] sm:$0xff] }
 0x466   :  { %2000 = vmatprep.subr.bf16.mxu1 %v5437_v61  ;;  %2041 = vmatprep.subr.bf16.mxu0 %v5438_v11  ;;  %v5448_v61 = vld [vmem:[#allocation38_spill] sm:$0xff]  ;;  %v5449_v11 = vld [vmem:[#allocation39_spill] sm:$0xff] }
 0x469   :  { %2001 = vmatpush2.bf16.msra.mxu1 %v5439_v62  ;;  %2042 = vmatpush2.bf16.msra.mxu0 %v5440_v24  ;;  %v5450_v62 = vld [vmem:[#allocation42_spill] sm:$0xff]  ;;  %v5451_v24 = vld [vmem:[#allocation43_spill] sm:$0xff] }
 0x46a   :  { %2002 = vmatprep.subr.bf16.mxu1 %v5441_v14  ;;  %2043 = vmatprep.subr.bf16.mxu0 %v5442_v7  ;;  %v5452_v14 = vld [vmem:[#allocation55_spill] sm:$0xff]  ;;  %v5453_v7 = vld [vmem:[#allocation41_spill] sm:$0xff] }
 0x46d   :  { %2003 = vmatpush2.bf16.msra.mxu1 %v5443_v19  ;;  %2044 = vmatpush2.bf16.msra.mxu0 %v5444_v18  ;;  %v5454_v19 = vld [vmem:[#allocation7_spill] sm:$0xff] }
 0x46e   :  { %2004 = vmatprep.subr.bf16.mxu1 %v5445_v2  ;;  %2045 = vmatprep.subr.bf16.mxu0 %v5446_v63 }
 0x471   :  { %2005 = vmatpush2.bf16.msra.mxu1 %v5447_v60  ;;  %2046 = vmatpush2.bf16.msra.mxu0 %v5448_v61 }
 0x472   :  { %2006 = vmatprep.subr.bf16.mxu1 %v5449_v11  ;;  %2047 = vmatprep.subr.bf16.mxu0 %v5450_v62 }
 0x475   :  { %2007 = vmatpush2.bf16.msra.mxu1 %v5451_v24  ;;  %2048 = vmatpush2.bf16.msra.mxu0 %v5452_v14 }
 0x476   :  { %2120 = vmatprep.subr.bf16.mxu1 %v5453_v7  ;;  %3171 = vmatprep.subr.bf16.mxu0 %v5271_v26 }
 0x4f0   :  { %v1773_v18 = vpop.f32.mrf.mxu1  ;;  %v1814_v2 = vpop.f32.mrf.mxu0 }
 0x4f1   :  { %v1774_v63 = vadd.f32 %v1773_v18, %v5454_v19 }
 0x4f2   :  { %v1775_v15 = vpop.f32.mrf.mxu1  ;;  %v1816_v60 = vpop.f32.mrf.mxu0 }
 0x4f3   :  { %v3041_v17 = vmul.f32 -1.442695, %v1774_v63  ;;  %v1776_v24 = vadd.f32 %v1775_v15, %v5455_v10 }
 0x4f4   :  { %v1777_v61 = vpop.f32.mrf.mxu1  ;;  %v1818_v25 = vpop.f32.mrf.mxu0 }
 0x4f5   :  { %3421 = vpow2.f32 %v3041_v17  ;;  %v3042_v30 = vmul.f32 -1.442695, %v1776_v24  ;;  %v5457_v25 = vld [vmem:[#allocation48_spill] sm:$0xff]  ;;  %v1817_v24 = vadd.f32 %v1816_v60, %v4270_v8  ;;  %v5458_v60 = vld [vmem:[#allocation58_spill] sm:$0xff] }
 0x4f6   :  { %v1778_v11 = vpop.f32.mrf.mxu1  ;;  %v1819_v62 = vpop.f32.mrf.mxu0 }
 0x4f8   :  { %v1905_v5 = vpop.f32.mrf.mxu1  ;;  %v1946_v14 = vpop.f32.mrf.mxu0 }
 0x4f9   :  { %v1952_v7 = vadd.f32 %v1905_v5, %v5456_v32 }
 0x4fa   :  { %v1907_v12 = vpop.f32.mrf.mxu1  ;;  %v3169_v23 = vpop.f32.mrf.mxu0 }
 0x4fb   :  { %v3045_v3 = vmul.f32 -1.442695, %v1952_v7  ;;  %v1953_v17 = vadd.f32 %v1907_v12, %v5457_v25 }
 0x4fc   :  { %v1909_v29 = vpop.f32.mrf.mxu1  ;;  %v1949_v18 = vpop.f32.mrf.mxu0 }
 0x4fd   :  { %3423 = vpow2.f32 %v3045_v3  ;;  %v3046_v62 = vmul.f32 -1.442695, %v1953_v17  ;;  %v1815_v3 = vadd.f32 %v1814_v2, %v4274_v22 }
 0x4fe   :  { %v1910_v19 = vpop.f32.mrf.mxu1  ;;  %v3170_v63 = vpop.f32.mrf.mxu0  ;;  %3425 = vpow2.f32 %v3042_v30 }
 0x4ff   :  { %v4749_v19 = vld [vmem:[%s5074_s6] ss:$0 sm:$0xff] }
 0x500   :  { %v1966_v18 = vadd.f32 %v4749_v19, %v1946_v14 }
 0x502   :  { %v3422_v61 = vpop.eup %3421 }
 0x503   :  { %v1827_v11 = vadd.f32 1.0, %v3422_v61 }
 0x505   :  { %3427 = vrcp.f32 %v1827_v11  ;;  %v1844_v11 = vpop.permute.xlu1 %1843 }
 0x506   :  { %3429 = vpow2.f32 %v3046_v62  ;;  %vm1845_vm15 = vcmp.eq.s32.totalorder %v1844_v11, 1  ;;  %v5472_v11 = vld [vmem:[#allocation21_spill] sm:$0xff] }
 0x50a   :  { %v3424_v15 = vpop.eup %3423 }
 0x50b   :  { %v1960_v10 = vadd.f32 1.0, %v3424_v15  ;;  %v3426_v32 = vpop.eup %3425 }
 0x50c   :  { %v1828_v23 = vadd.f32 1.0, %v3426_v32 }
 0x50d   :  { %3431 = vrcp.f32 %v1960_v10 }
 0x50e   :  { %3433 = vrcp.f32 %v1828_v23 }
 0x512   :  { %v3428_v29 = vpop.eup %3427 }
 0x513   :  { %v1833_v5 = vmul.f32 %v3428_v29, %v1817_v24  ;;  %v3430_v30 = vpop.eup %3429 }
 0x514   :  { %v1961_v12 = vadd.f32 1.0, %v3430_v30 }
 0x515   :  { %v1834_v7 = vadd.f32 %v1833_v5, %v1815_v3 }
 0x517   :  { %3435 = vtanh.f32 %v1834_v7 }
 0x518   :  { %3437 = vrcp.f32 %v1961_v12 }
 0x51a   :  { %v3432_v10 = vpop.eup %3431 }
 0x51b   :  { %v1967_v63 = vmul.f32 %v3432_v10, %v1966_v18  ;;  %v3434_v2 = vpop.eup %3433  ;;  %v5464_v18 = vld [vmem:[#allocation13_spill] sm:$0xff]  ;;  %v5465_v10 = vld [vmem:[#allocation14_spill] sm:$0xff] }
 0x51c   :  { %v1836_v17 = vsub.f32 1.0, %v3434_v2  ;;  %v1838_v15 = vmul.f32 %v3434_v2, %v4649_v21  ;;  %v5469_v2 = vld [vmem:[#allocation18_spill] sm:$0xff] }
 0x51d   :  { %v1968_v25 = vadd.f32 %v1967_v63, %v5458_v60  ;;  %v5466_v63 = vld [vmem:[#allocation15_spill] sm:$0xff]  ;;  %v5467_v60 = vld [vmem:[#allocation16_spill] sm:$0xff] }
 0x51f   :  { %3439 = vtanh.f32 %v1968_v25  ;;  %v5468_v25 = vld [vmem:[#allocation17_spill] sm:$0xff] }
 0x524   :  { %v3436_v61 = vpop.eup %3435 }
 0x525   :  { %v1837_v62 = vmul.f32 %v3436_v61, %v1836_v17  ;;  %v3438_v23 = vpop.eup %3437  ;;  %v5470_v17 = vld [vmem:[#allocation19_spill] sm:$0xff]  ;;  %v5471_v61 = vld [vmem:[#allocation20_spill] sm:$0xff] }
 0x526   :  { %v1970_v3 = vsub.f32 1.0, %v3438_v23  ;;  %v1972_v21 = vmul.f32 %v3438_v23, %v4659_v16  ;;  %v5463_v16 = vld [vmem:[#allocation12_spill] sm:$0xff] }
 0x527   :  { %v4754_v32 = vadd.f32 %v1838_v15, %v1837_v62  ;;  %v5473_v62 = vld [vmem:[#allocation22_spill] sm:$0xff]  ;;  %v5474_v15 = vld [vmem:[#allocation23_spill] sm:$0xff]  ;;  %v5475_v23 = vld [vmem:[#allocation24_spill] sm:$0xff] }
 0x529   :  { %v1975_v14 = vpack.c.bf16 %v4754_v32, %v4754_v32  ;;  %v4759_v24 = vsel %vm1845_vm15, %v4754_v32, 0.0 }
 0x52a   :  { %5459 = vst [vmem:[#allocation46_spill] sm:$0xff] %v4759_v24  ;;  %v1847_v29 = vmul.f32 %v4283_v20, %v4759_v24  ;;  %v5483_v24 = vld [vmem:[#allocation32_spill] sm:$0xff] }
 0x52b   :  { %2008 = vmatprep.mubr.bf16.mxu1 %v1975_v14  ;;  %2049 = vmatprep.mubr.bf16.mxu0 %v1975_v14  ;;  %v5476_v14 = vld [vmem:[#allocation25_spill] sm:$0xff] }
 0x52c   :  { %v3440_v5 = vpop.eup %3439  ;;  %1848 = vadd.xlane.f32.xlu0 %v1847_v29  ;;  %v5477_v29 = vld [vmem:[#allocation26_spill] sm:$0xff] }
 0x52d   :  { %v1971_v30 = vmul.f32 %v3440_v5, %v1970_v3  ;;  %v5478_v3 = vld [vmem:[#allocation27_spill] sm:$0xff]  ;;  %v5479_v5 = vld [vmem:[#allocation28_spill] sm:$0xff] }
 0x52f   :  { %v4764_v7 = vadd.f32 %v1972_v21, %v1971_v30  ;;  %v5480_v30 = vld [vmem:[#allocation29_spill] sm:$0xff]  ;;  %v5481_v21 = vld [vmem:[#allocation30_spill] sm:$0xff] }
 0x531   :  { %v1974_v12 = vpack.c.bf16 %v4764_v7, %v4764_v7 }
 0x533   :  { %2009 = vmatmul.mubr.bf16.vlgmr.msra.gmra.mxu1 %v1974_v12  ;;  %2050 = vmatmul.mubr.bf16.vlgmr.msra.gmra.mxu0 %v1974_v12 }
 0x534   :  { %2121 = vmatpush1.bf16.msra.mxu1 %v4300_v1  ;;  %3172 = vmatpush3.bf16.msra.mxu0 %v4429_v9  ;;  %v5460_v1 = vld [vmem:[#allocation9_spill] sm:$0xff] }
 0x535   :  { %2122 = vmatprep.subr.bf16.mxu1 %v4307_v13  ;;  %3173 = vmatprep.subr.bf16.mxu0 %v5271_v26  ;;  %v5461_v13 = vld [vmem:[#allocation10_spill] sm:$0xff] }
 0x536   :  { %2140 = vmatprep.mubr.bf16.mxu1 %v5273_v31  ;;  %3175 = vmatprep.mubr.msk.bf16.mxu0 %vm3713_vm2, %v5271_v26 }
 0x538   :  { %2123 = vmatpush1.bf16.msra.mxu1 %v4317_v33  ;;  %3174 = vmatpush3.bf16.msra.mxu0 %v4441_v4  ;;  %v5462_v33 = vld [vmem:[#allocation11_spill] sm:$0xff] }
 0x539   :  { %2213 = vmatprep.subr.bf16.mxu1 %v4444_v0  ;;  %2254 = vmatprep.subr.bf16.mxu0 %v4447_v27 }
 0x53b   :  { %3049 = vmatmul.mubr.msk.bf16.vlgmr.msra.gmra.mxu1 %vm510_vm4, %v1974_v12  ;;  %3176 = vmatmul.mubr.msk.bf16.vlgmr.msra.gmra.mxu0 %vm510_vm4, %v1974_v12  ;;  %v5482_v12 = vld [vmem:[#allocation31_spill] sm:$0xff] }
 0x53c   :  { %2214 = vmatpush1.bf16.msra.mxu1 %v4452_v28  ;;  %2255 = vmatpush1.bf16.msra.mxu0 %v4455_v34 }
 0x53d   :  { %2215 = vmatprep.subr.bf16.mxu1 %v4458_v35  ;;  %2256 = vmatprep.subr.bf16.mxu0 %v4461_v36 }
 0x540   :  { %2216 = vmatpush1.bf16.msra.mxu1 %v4464_v37  ;;  %2257 = vmatpush1.bf16.msra.mxu0 %v4467_v38 }
 0x541   :  { %2217 = vmatprep.subr.bf16.mxu1 %v4470_v39  ;;  %2258 = vmatprep.subr.bf16.mxu0 %v4473_v40 }
 0x544   :  { %2218 = vmatpush1.bf16.msra.mxu1 %v4476_v41  ;;  %2259 = vmatpush1.bf16.msra.mxu0 %v4479_v42 }
 0x545   :  { %2219 = vmatprep.subr.bf16.mxu1 %v4482_v43  ;;  %2260 = vmatprep.subr.bf16.mxu0 %v4485_v44 }
 0x548   :  { %2220 = vmatpush1.bf16.msra.mxu1 %v4488_v45  ;;  %2261 = vmatpush1.bf16.msra.mxu0 %v4491_v46 }
 0x549   :  { %2221 = vmatprep.subr.bf16.mxu1 %v4494_v47  ;;  %2262 = vmatprep.subr.bf16.mxu0 %v4497_v48 }
 0x54c   :  { %2222 = vmatpush1.bf16.msra.mxu1 %v4500_v49  ;;  %2263 = vmatpush1.bf16.msra.mxu0 %v4503_v50 }
 0x54d   :  { %2223 = vmatprep.subr.bf16.mxu1 %v4506_v51  ;;  %2264 = vmatprep.subr.bf16.mxu0 %v4509_v52 }
 0x550   :  { %2224 = vmatpush1.bf16.msra.mxu1 %v4512_v53  ;;  %2265 = vmatpush1.bf16.msra.mxu0 %v4515_v54 }
 0x551   :  { %2225 = vmatprep.subr.bf16.mxu1 %v4518_v55  ;;  %2266 = vmatprep.subr.bf16.mxu0 %v4521_v56 }
 0x554   :  { %2226 = vmatpush1.bf16.msra.mxu1 %v4524_v57  ;;  %2267 = vmatpush1.bf16.msra.mxu0 %v4527_v58 }
 0x555   :  { %2227 = vmatprep.subr.bf16.mxu1 %v4530_v59  ;;  %2268 = vmatprep.subr.bf16.mxu0 %v5418_v6 }
 0x558   :  { %2228 = vmatpush1.bf16.msra.mxu1 %v5460_v1  ;;  %2269 = vmatpush1.bf16.msra.mxu0 %v5461_v13 }
 0x559   :  { %2229 = vmatprep.subr.bf16.mxu1 %v5462_v33  ;;  %2270 = vmatprep.subr.bf16.mxu0 %v5463_v16 }
 0x55c   :  { %2230 = vmatpush2.bf16.msra.mxu1 %v5464_v18  ;;  %2271 = vmatpush2.bf16.msra.mxu0 %v5465_v10 }
 0x55d   :  { %2231 = vmatprep.subr.bf16.mxu1 %v5466_v63  ;;  %2272 = vmatprep.subr.bf16.mxu0 %v5467_v60  ;;  %v5497_v60 = vld [vmem:[#allocation49_spill] sm:$0xff] }
 0x560   :  { %2232 = vmatpush2.bf16.msra.mxu1 %v5468_v25  ;;  %2273 = vmatpush2.bf16.msra.mxu0 %v5469_v2  ;;  %v5496_v2 = vld [vmem:[#allocation6_spill] sm:$0xff] }
 0x561   :  { %2233 = vmatprep.subr.bf16.mxu1 %v5470_v17  ;;  %2274 = vmatprep.subr.bf16.mxu0 %v5471_v61 }
 0x564   :  { %2234 = vmatpush2.bf16.msra.mxu1 %v5472_v11  ;;  %2275 = vmatpush2.bf16.msra.mxu0 %v5473_v62  ;;  %v5484_v62 = vld [vmem:[#allocation33_spill] sm:$0xff] }
 0x565   :  { %2235 = vmatprep.subr.bf16.mxu1 %v5474_v15  ;;  %2276 = vmatprep.subr.bf16.mxu0 %v5475_v23  ;;  %v5485_v15 = vld [vmem:[#allocation34_spill] sm:$0xff]  ;;  %v5486_v23 = vld [vmem:[#allocation35_spill] sm:$0xff] }
 0x568   :  { %2236 = vmatpush2.bf16.msra.mxu1 %v5476_v14  ;;  %2277 = vmatpush2.bf16.msra.mxu0 %v5477_v29  ;;  %v5487_v14 = vld [vmem:[#allocation36_spill] sm:$0xff]  ;;  %v5488_v29 = vld [vmem:[#allocation37_spill] sm:$0xff] }
 0x569   :  { %2237 = vmatprep.subr.bf16.mxu1 %v5478_v3  ;;  %2278 = vmatprep.subr.bf16.mxu0 %v5479_v5  ;;  %v5489_v3 = vld [vmem:[#allocation38_spill] sm:$0xff]  ;;  %v5490_v5 = vld [vmem:[#allocation39_spill] sm:$0xff] }
 0x56c   :  { %2238 = vmatpush2.bf16.msra.mxu1 %v5480_v30  ;;  %2279 = vmatpush2.bf16.msra.mxu0 %v5481_v21  ;;  %v5491_v30 = vld [vmem:[#allocation42_spill] sm:$0xff]  ;;  %v5492_v21 = vld [vmem:[#allocation43_spill] sm:$0xff] }
 0x56d   :  { %2239 = vmatprep.subr.bf16.mxu1 %v5482_v12  ;;  %2280 = vmatprep.subr.bf16.mxu0 %v5483_v24  ;;  %v5493_v12 = vld [vmem:[#allocation55_spill] sm:$0xff]  ;;  %v5494_v24 = vld [vmem:[#allocation41_spill] sm:$0xff] }
 0x570   :  { %2240 = vmatpush2.bf16.msra.mxu1 %v5484_v62  ;;  %2281 = vmatpush2.bf16.msra.mxu0 %v5485_v15  ;;  %v5495_v62 = vld [vmem:[#allocation7_spill] sm:$0xff] }
 0x571   :  { %2241 = vmatprep.subr.bf16.mxu1 %v5486_v23  ;;  %2282 = vmatprep.subr.bf16.mxu0 %v5487_v14 }
 0x574   :  { %2242 = vmatpush2.bf16.msra.mxu1 %v5488_v29  ;;  %2283 = vmatpush2.bf16.msra.mxu0 %v5489_v3 }
 0x575   :  { %2243 = vmatprep.subr.bf16.mxu1 %v5490_v5  ;;  %2284 = vmatprep.subr.bf16.mxu0 %v5491_v30 }
 0x578   :  { %2244 = vmatpush2.bf16.msra.mxu1 %v5492_v21  ;;  %2285 = vmatpush2.bf16.msra.mxu0 %v5493_v12 }
 0x579   :  { %2357 = vmatprep.subr.bf16.mxu1 %v5494_v24  ;;  %3179 = vmatprep.subr.bf16.mxu0 %v5271_v26 }
 0x5f3   :  { %v2010_v15 = vpop.f32.mrf.mxu1  ;;  %v2051_v23 = vpop.f32.mrf.mxu0 }
 0x5f4   :  { %v2011_v14 = vadd.f32 %v2010_v15, %v5495_v62 }
 0x5f5   :  { %v2012_v11 = vpop.f32.mrf.mxu1  ;;  %v2053_v29 = vpop.f32.mrf.mxu0 }
 0x5f6   :  { %v3047_v61 = vmul.f32 -1.442695, %v2011_v14  ;;  %v2013_v21 = vadd.f32 %v2012_v11, %v5496_v2 }
 0x5f7   :  { %v2014_v3 = vpop.f32.mrf.mxu1  ;;  %v2055_v17 = vpop.f32.mrf.mxu0 }
 0x5f8   :  { %3441 = vpow2.f32 %v3047_v61  ;;  %v3048_v18 = vmul.f32 -1.442695, %v2013_v21  ;;  %v5498_v17 = vld [vmem:[#allocation50_spill] sm:$0xff] }
 0x5f9   :  { %v2015_v5 = vpop.f32.mrf.mxu1  ;;  %v2056_v30 = vpop.f32.mrf.mxu0 }
 0x5fb   :  { %v2142_v25 = vpop.f32.mrf.mxu1  ;;  %v2183_v12 = vpop.f32.mrf.mxu0 }
 0x5fc   :  { %v2189_v24 = vadd.f32 %v2142_v25, %v5497_v60  ;;  %v2054_v25 = vadd.f32 %v2053_v29, %v4270_v8 }
 0x5fd   :  { %v2144_v63 = vpop.f32.mrf.mxu1  ;;  %v3177_v10 = vpop.f32.mrf.mxu0 }
 0x5fe   :  { %v3051_v16 = vmul.f32 -1.442695, %v2189_v24  ;;  %v2190_v61 = vadd.f32 %v2144_v63, %v5498_v17  ;;  %v2203_v24 = vadd.f32 %v4749_v19, %v2183_v12  ;;  %v5499_v17 = vld [vmem:[#allocation60_spill] sm:$0xff] }
 0x5ff   :  { %v2146_v33 = vpop.f32.mrf.mxu1  ;;  %v2186_v15 = vpop.f32.mrf.mxu0 }
 0x600   :  { %3443 = vpow2.f32 %v3051_v16  ;;  %v3052_v30 = vmul.f32 -1.442695, %v2190_v61  ;;  %v2052_v16 = vadd.f32 %v2051_v23, %v4274_v22 }
 0x601   :  { %v2147_v62 = vpop.f32.mrf.mxu1  ;;  %v3178_v14 = vpop.f32.mrf.mxu0  ;;  %3445 = vpow2.f32 %v3048_v18 }
 0x605   :  { %v3442_v3 = vpop.eup %3441 }
 0x606   :  { %v2064_v5 = vadd.f32 1.0, %v3442_v3 }
 0x608   :  { %3447 = vrcp.f32 %v2064_v5  ;;  %v2081_v5 = vpop.permute.xlu0 %2080 }
 0x609   :  { %3449 = vpow2.f32 %v3052_v30  ;;  %vm2082_vm0 = vcmp.eq.s32.totalorder %v2081_v5, 1 }
 0x60d   :  { %v3444_v11 = vpop.eup %3443 }
 0x60e   :  { %v2197_v2 = vadd.f32 1.0, %v3444_v11  ;;  %v3446_v60 = vpop.eup %3445 }
 0x60f   :  { %v2065_v10 = vadd.f32 1.0, %v3446_v60 }
 0x610   :  { %3451 = vrcp.f32 %v2197_v2 }
 0x611   :  { %3453 = vrcp.f32 %v2065_v10 }
 0x615   :  { %v3448_v33 = vpop.eup %3447 }
 0x616   :  { %v2070_v62 = vmul.f32 %v3448_v33, %v2054_v25  ;;  %v3450_v18 = vpop.eup %3449 }
 0x617   :  { %v2198_v63 = vadd.f32 1.0, %v3450_v18 }
 0x618   :  { %v2071_v21 = vadd.f32 %v2070_v62, %v2052_v16 }
 0x61a   :  { %3455 = vtanh.f32 %v2071_v21 }
 0x61b   :  { %3457 = vrcp.f32 %v2198_v63  ;;  %v4871_v63 = vld [vmem:[%s5075_s7 + $0x18] ss:$12 sps:$4 sm:$0xff]  }
 0x61d   :  { %v3452_v15 = vpop.eup %3451 }
 0x61e   :  { %v2204_v14 = vmul.f32 %v3452_v15, %v2203_v24  ;;  %v3454_v2 = vpop.eup %3453  ;;  %v4888_v24 = vld [vmem:[%s5075_s7] ss:$12 sps:$4 sm:$0xff]  }
 0x61f   :  { %v2073_v3 = vsub.f32 1.0, %v3454_v2  ;;  %v2075_v23 = vmul.f32 %v3454_v2, %v4754_v32 }
 0x620   :  { %v2205_v61 = vadd.f32 %v2204_v14, %v5499_v17  ;;  %v5532_v14 = vld [vmem:[#allocation7_spill] sm:$0xff] }
 0x622   :  { %3459 = vtanh.f32 %v2205_v61 }
 0x627   :  { %v3456_v29 = vpop.eup %3455 }
 0x628   :  { %v2074_v30 = vmul.f32 %v3456_v29, %v2073_v3  ;;  %v3458_v60 = vpop.eup %3457 }
 0x629   :  { %v2207_v33 = vsub.f32 1.0, %v3458_v60  ;;  %v2209_v32 = vmul.f32 %v3458_v60, %v4764_v7  ;;  %v4878_v7 = vld [vmem:[%s5075_s7 + $0x4] ss:$12 sps:$4 sm:$0xff]  }
 0x62a   :  { %v4854_v11 = vadd.f32 %v2075_v23, %v2074_v30  ;;  %v5533_v60 = vld [vmem:[#allocation6_spill] sm:$0xff] }
 0x62c   :  { %v2212_v12 = vpack.c.bf16 %v4854_v11, %v4854_v11  ;;  %v4859_v10 = vsel %vm2082_vm0, %v4854_v11, 0.0 }
 0x62d   :  { %v2084_v25 = vmul.f32 %v4283_v20, %v4859_v10 }
 0x62e   :  { %2245 = vmatprep.mubr.bf16.mxu1 %v2212_v12  ;;  %2286 = vmatprep.mubr.bf16.mxu0 %v2212_v12 }
 0x62f   :  { %v3460_v16 = vpop.eup %3459  ;;  %2085 = vadd.xlane.f32.xlu1 %v2084_v25 }
 0x630   :  { %v2208_v62 = vmul.f32 %v3460_v16, %v2207_v33  ;;  %v5534_v16 = vld [vmem:[#allocation51_spill] sm:$0xff] }
 0x632   :  { %v4864_v18 = vadd.f32 %v2209_v32, %v2208_v62 }
 0x634   :  { %v2211_v21 = vpack.c.bf16 %v4864_v18, %v4864_v18 }
 0x636   :  { %2246 = vmatmul.mubr.bf16.vlgmr.msra.gmra.mxu1 %v2211_v21  ;;  %2287 = vmatmul.mubr.bf16.vlgmr.msra.gmra.mxu0 %v2211_v21 }
 0x637   :  { %2358 = vmatpush1.bf16.msra.mxu1 %v4871_v63  ;;  %3180 = vmatpush3.bf16.msra.mxu0 %v4429_v9  ;;  %v5500_v9 = vld [vmem:[#allocation11_spill] sm:$0xff] }
 0x638   :  { %2359 = vmatprep.subr.bf16.mxu1 %v4878_v7  ;;  %3181 = vmatprep.subr.bf16.mxu0 %v5271_v26 }
 0x639   :  { %2377 = vmatprep.mubr.bf16.mxu1 %v5273_v31  ;;  %3183 = vmatprep.mubr.msk.bf16.mxu0 %vm3713_vm2, %v5271_v26 }
 0x63b   :  { %2360 = vmatpush1.bf16.msra.mxu1 %v4888_v24  ;;  %3182 = vmatpush3.bf16.msra.mxu0 %v4441_v4  ;;  %v5501_v4 = vld [vmem:[#allocation12_spill] sm:$0xff] }
 0x63c   :  { %2450 = vmatprep.subr.bf16.mxu1 %v4444_v0  ;;  %2491 = vmatprep.subr.bf16.mxu0 %v4447_v27  ;;  %v5502_v0 = vld [vmem:[#allocation13_spill] sm:$0xff]  ;;  %v5503_v27 = vld [vmem:[#allocation14_spill] sm:$0xff] }
 0x63e   :  { %3055 = vmatmul.mubr.msk.bf16.vlgmr.msra.gmra.mxu1 %vm510_vm4, %v2211_v21  ;;  %3184 = vmatmul.mubr.msk.bf16.vlgmr.msra.gmra.mxu0 %vm510_vm4, %v2211_v21 }
 0x63f   :  { %2451 = vmatpush1.bf16.msra.mxu1 %v4452_v28  ;;  %2492 = vmatpush1.bf16.msra.mxu0 %v4455_v34  ;;  %v5504_v28 = vld [vmem:[#allocation15_spill] sm:$0xff]  ;;  %v5505_v34 = vld [vmem:[#allocation16_spill] sm:$0xff] }
 0x640   :  { %2452 = vmatprep.subr.bf16.mxu1 %v4458_v35  ;;  %2493 = vmatprep.subr.bf16.mxu0 %v4461_v36  ;;  %v5506_v35 = vld [vmem:[#allocation17_spill] sm:$0xff]  ;;  %v5507_v36 = vld [vmem:[#allocation18_spill] sm:$0xff] }
 0x643   :  { %2453 = vmatpush1.bf16.msra.mxu1 %v4464_v37  ;;  %2494 = vmatpush1.bf16.msra.mxu0 %v4467_v38  ;;  %v5508_v37 = vld [vmem:[#allocation19_spill] sm:$0xff]  ;;  %v5509_v38 = vld [vmem:[#allocation20_spill] sm:$0xff] }
 0x644   :  { %2454 = vmatprep.subr.bf16.mxu1 %v4470_v39  ;;  %2495 = vmatprep.subr.bf16.mxu0 %v4473_v40  ;;  %v5510_v39 = vld [vmem:[#allocation21_spill] sm:$0xff]  ;;  %v5511_v40 = vld [vmem:[#allocation22_spill] sm:$0xff] }
 0x647   :  { %2455 = vmatpush1.bf16.msra.mxu1 %v4476_v41  ;;  %2496 = vmatpush1.bf16.msra.mxu0 %v4479_v42  ;;  %v5512_v41 = vld [vmem:[#allocation23_spill] sm:$0xff]  ;;  %v5513_v42 = vld [vmem:[#allocation24_spill] sm:$0xff] }
 0x648   :  { %2456 = vmatprep.subr.bf16.mxu1 %v4482_v43  ;;  %2497 = vmatprep.subr.bf16.mxu0 %v4485_v44  ;;  %v5514_v43 = vld [vmem:[#allocation25_spill] sm:$0xff]  ;;  %v5515_v44 = vld [vmem:[#allocation26_spill] sm:$0xff] }
 0x64b   :  { %2457 = vmatpush1.bf16.msra.mxu1 %v4488_v45  ;;  %2498 = vmatpush1.bf16.msra.mxu0 %v4491_v46  ;;  %v5516_v45 = vld [vmem:[#allocation27_spill] sm:$0xff]  ;;  %v5517_v46 = vld [vmem:[#allocation28_spill] sm:$0xff] }
 0x64c   :  { %2458 = vmatprep.subr.bf16.mxu1 %v4494_v47  ;;  %2499 = vmatprep.subr.bf16.mxu0 %v4497_v48  ;;  %v5518_v47 = vld [vmem:[#allocation29_spill] sm:$0xff]  ;;  %v5519_v48 = vld [vmem:[#allocation30_spill] sm:$0xff] }
 0x64f   :  { %2459 = vmatpush1.bf16.msra.mxu1 %v4500_v49  ;;  %2500 = vmatpush1.bf16.msra.mxu0 %v4503_v50  ;;  %v5520_v49 = vld [vmem:[#allocation31_spill] sm:$0xff]  ;;  %v5521_v50 = vld [vmem:[#allocation32_spill] sm:$0xff] }
 0x650   :  { %2460 = vmatprep.subr.bf16.mxu1 %v4506_v51  ;;  %2501 = vmatprep.subr.bf16.mxu0 %v4509_v52  ;;  %v5522_v51 = vld [vmem:[#allocation33_spill] sm:$0xff]  ;;  %v5523_v52 = vld [vmem:[#allocation34_spill] sm:$0xff] }
 0x653   :  { %2461 = vmatpush1.bf16.msra.mxu1 %v4512_v53  ;;  %2502 = vmatpush1.bf16.msra.mxu0 %v4515_v54  ;;  %v5524_v53 = vld [vmem:[#allocation35_spill] sm:$0xff]  ;;  %v5525_v54 = vld [vmem:[#allocation36_spill] sm:$0xff] }
 0x654   :  { %2462 = vmatprep.subr.bf16.mxu1 %v4518_v55  ;;  %2503 = vmatprep.subr.bf16.mxu0 %v4521_v56  ;;  %v5526_v55 = vld [vmem:[#allocation37_spill] sm:$0xff]  ;;  %v5527_v56 = vld [vmem:[#allocation38_spill] sm:$0xff] }
 0x657   :  { %2463 = vmatpush1.bf16.msra.mxu1 %v4524_v57  ;;  %2504 = vmatpush1.bf16.msra.mxu0 %v4527_v58  ;;  %v5528_v57 = vld [vmem:[#allocation39_spill] sm:$0xff]  ;;  %v5529_v58 = vld [vmem:[#allocation42_spill] sm:$0xff] }
 0x658   :  { %2464 = vmatprep.subr.bf16.mxu1 %v4530_v59  ;;  %2505 = vmatprep.subr.bf16.mxu0 %v5418_v6  ;;  %v5530_v59 = vld [vmem:[#allocation43_spill] sm:$0xff] }
 0x659   :  { %v5531_v6 = vld [vmem:[#allocation55_spill] sm:$0xff] }
 0x65b   :  { %2465 = vmatpush1.bf16.msra.mxu1 %v5460_v1  ;;  %2506 = vmatpush1.bf16.msra.mxu0 %v5461_v13  ;;  %v3619_v1 = vld [vmem:[%s5075_s7 + $0x1c] ss:$12 sps:$4 sm:$0xff]  }
 0x65c   :  { %2466 = vmatprep.subr.bf16.mxu1 %v5500_v9  ;;  %2507 = vmatprep.subr.bf16.mxu0 %v5501_v4 }
 0x65f   :  { %2467 = vmatpush2.bf16.msra.mxu1 %v5502_v0  ;;  %2508 = vmatpush2.bf16.msra.mxu0 %v5503_v27 }
 0x660   :  { %2468 = vmatprep.subr.bf16.mxu1 %v5504_v28  ;;  %2509 = vmatprep.subr.bf16.mxu0 %v5505_v34 }
 0x663   :  { %2469 = vmatpush2.bf16.msra.mxu1 %v5506_v35  ;;  %2510 = vmatpush2.bf16.msra.mxu0 %v5507_v36  ;;  %v5535_v35 = vld [vmem:[#allocation52_spill] sm:$0xff] }
 0x664   :  { %2470 = vmatprep.subr.bf16.mxu1 %v5508_v37  ;;  %2511 = vmatprep.subr.bf16.mxu0 %v5509_v38 }
 0x667   :  { %2471 = vmatpush2.bf16.msra.mxu1 %v5510_v39  ;;  %2512 = vmatpush2.bf16.msra.mxu0 %v5511_v40 }
 0x668   :  { %2472 = vmatprep.subr.bf16.mxu1 %v5512_v41  ;;  %2513 = vmatprep.subr.bf16.mxu0 %v5513_v42 }
 0x66b   :  { %2473 = vmatpush2.bf16.msra.mxu1 %v5514_v43  ;;  %2514 = vmatpush2.bf16.msra.mxu0 %v5515_v44 }
 0x66c   :  { %2474 = vmatprep.subr.bf16.mxu1 %v5516_v45  ;;  %2515 = vmatprep.subr.bf16.mxu0 %v5517_v46 }
 0x66f   :  { %2475 = vmatpush2.bf16.msra.mxu1 %v5518_v47  ;;  %2516 = vmatpush2.bf16.msra.mxu0 %v5519_v48 }
 0x670   :  { %2476 = vmatprep.subr.bf16.mxu1 %v5520_v49  ;;  %2517 = vmatprep.subr.bf16.mxu0 %v5521_v50 }
 0x673   :  { %2477 = vmatpush2.bf16.msra.mxu1 %v5522_v51  ;;  %2518 = vmatpush2.bf16.msra.mxu0 %v5523_v52 }
 0x674   :  { %2478 = vmatprep.subr.bf16.mxu1 %v5524_v53  ;;  %2519 = vmatprep.subr.bf16.mxu0 %v5525_v54  ;;  %v5536_v54 = vld [vmem:[#allocation57_spill] sm:$0xff] }
 0x677   :  { %2479 = vmatpush2.bf16.msra.mxu1 %v5526_v55  ;;  %2520 = vmatpush2.bf16.msra.mxu0 %v5527_v56 }
 0x678   :  { %2480 = vmatprep.subr.bf16.mxu1 %v5528_v57  ;;  %2521 = vmatprep.subr.bf16.mxu0 %v5529_v58 }
 0x67b   :  { %2481 = vmatpush2.bf16.msra.mxu1 %v5530_v59  ;;  %2522 = vmatpush2.bf16.msra.mxu0 %v5531_v6  ;;  %v2318_v59 = vpop.permute.xlu1 %2317 }
 0x67c   :  { %2594 = vmatprep.subr.bf16.mxu1 %v3619_v1  ;;  %3187 = vmatprep.subr.bf16.mxu0 %v5271_v26  ;;  %vm2319_vm1 = vcmp.eq.s32.totalorder %v2318_v59, 1  ;;  %v3662_v59 = vld [vmem:[#allocation3 + $0x1a4] ss:$16 sps:$4 sm:$0xff]  }
 0x6f6   :  { %v2247_v13 = vpop.f32.mrf.mxu1  ;;  %v2288_v15 = vpop.f32.mrf.mxu0 }
 0x6f7   :  { %v2248_v17 = vadd.f32 %v2247_v13, %v5532_v14  ;;  %v2289_v46 = vadd.f32 %v2288_v15, %v4274_v22 }
 0x6f8   :  { %v2249_v61 = vpop.f32.mrf.mxu1  ;;  %v2290_v2 = vpop.f32.mrf.mxu0 }
 0x6f9   :  { %v3053_v3 = vmul.f32 -1.442695, %v2248_v17  ;;  %v2250_v12 = vadd.f32 %v2249_v61, %v5533_v60  ;;  %v2291_v44 = vadd.f32 %v2290_v2, %v4270_v8 }
 0x6fa   :  { %v2251_v29 = vpop.f32.mrf.mxu1  ;;  %v2292_v5 = vpop.f32.mrf.mxu0 }
 0x6fb   :  { %3461 = vpow2.f32 %v3053_v3  ;;  %v3054_v9 = vmul.f32 -1.442695, %v2250_v12  ;;  %v3620_v12 = vld [vmem:[%s5075_s7 + $0x20] ss:$12 sps:$4 sm:$0xff]  }
 0x6fc   :  { %v2252_v30 = vpop.f32.mrf.mxu1  ;;  %v2293_v23 = vpop.f32.mrf.mxu0 }
 0x6fe   :  { %v2379_v25 = vpop.f32.mrf.mxu1  ;;  %v2420_v33 = vpop.f32.mrf.mxu0 }
 0x6ff   :  { %v2426_v62 = vadd.f32 %v2379_v25, %v5534_v16  ;;  %v2440_v51 = vadd.f32 %v4749_v19, %v2420_v33  ;;  %v3623_v25 = vld [vmem:[#allocation3 + $0xec] ss:$16 sps:$4 sm:$0xff]   ;;  %v3626_v33 = vld [vmem:[#allocation3 + $0xc4] ss:$16 sps:$4 sm:$0xff]   ;;  %v3628_v16 = vld [vmem:[#allocation3 + $0xc0] ss:$16 sps:$4 sm:$0xff]  }
 0x700   :  { %v2381_v32 = vpop.f32.mrf.mxu1  ;;  %v3185_v21 = vpop.f32.mrf.mxu0 }
 0x701   :  { %v3057_v4 = vmul.f32 -1.442695, %v2426_v62  ;;  %v2427_v36 = vadd.f32 %v2381_v32, %v5535_v35  ;;  %v3629_v62 = vld [vmem:[#allocation3 + $0xc8] ss:$16 sps:$4 sm:$0xff]   ;;  %v3630_v32 = vld [vmem:[#allocation3 + $0xa4] ss:$16 sps:$4 sm:$0xff]  }
 0x702   :  { %v2383_v0 = vpop.f32.mrf.mxu1  ;;  %v2423_v27 = vpop.f32.mrf.mxu0  ;;  %v3631_v21 = vld [vmem:[#allocation3 + $0xac] ss:$16 sps:$4 sm:$0xff]   ;;  %v3638_v35 = vld [vmem:[#allocation3 + $0x64] ss:$16 sps:$4 sm:$0xff]  }
 0x703   :  { %3463 = vpow2.f32 %v3057_v4  ;;  %v3058_v39 = vmul.f32 -1.442695, %v2427_v36  ;;  %v3633_v4 = vld [vmem:[#allocation3 + $0xa8] ss:$16 sps:$4 sm:$0xff]   ;;  %v3634_v0 = vld [vmem:[#allocation3 + $0x84] ss:$16 sps:$4 sm:$0xff]  }
 0x704   :  { %v2384_v28 = vpop.f32.mrf.mxu1  ;;  %v3186_v34 = vpop.f32.mrf.mxu0  ;;  %3465 = vpow2.f32 %v3054_v9  ;;  %v3632_v9 = vld [vmem:[#allocation3 + $0xa0] ss:$16 sps:$4 sm:$0xff]   ;;  %v3635_v27 = vld [vmem:[#allocation3 + $0x8c] ss:$16 sps:$4 sm:$0xff]  }
 0x705   :  { %v3636_v28 = vld [vmem:[#allocation3 + $0x80] ss:$16 sps:$4 sm:$0xff]   ;;  %v3637_v34 = vld [vmem:[#allocation3 + $0x88] ss:$16 sps:$4 sm:$0xff]   ;;  %v3639_v36 = vld [vmem:[#allocation3 + $0x6c] ss:$16 sps:$4 sm:$0xff]  }
 0x708   :  { %v3462_v37 = vpop.eup %3461 }
 0x709   :  { %v2301_v38 = vadd.f32 1.0, %v3462_v37  ;;  %v3640_v37 = vld [vmem:[#allocation3 + $0x60] ss:$16 sps:$4 sm:$0xff]  }
 0x70b   :  { %3467 = vrcp.f32 %v2301_v38  ;;  %v3641_v38 = vld [vmem:[#allocation3 + $0x68] ss:$16 sps:$4 sm:$0xff]  }
 0x70c   :  { %3469 = vpow2.f32 %v3058_v39  ;;  %v3642_v39 = vld [vmem:[#allocation3 + $0x44] ss:$16 sps:$4 sm:$0xff]  }
 0x710   :  { %v3464_v40 = vpop.eup %3463 }
 0x711   :  { %v2434_v41 = vadd.f32 1.0, %v3464_v40  ;;  %v3466_v42 = vpop.eup %3465  ;;  %v3643_v40 = vld [vmem:[#allocation3 + $0x4c] ss:$16 sps:$4 sm:$0xff]  }
 0x712   :  { %v2302_v43 = vadd.f32 1.0, %v3466_v42  ;;  %v3645_v42 = vld [vmem:[#allocation3 + $0x48] ss:$16 sps:$4 sm:$0xff]  }
 0x713   :  { %3471 = vrcp.f32 %v2434_v41  ;;  %v3644_v41 = vld [vmem:[#allocation3 + $0x40] ss:$16 sps:$4 sm:$0xff]  }
 0x714   :  { %3473 = vrcp.f32 %v2302_v43  ;;  %v3646_v43 = vld [vmem:[#allocation3 + $0x24] ss:$16 sps:$4 sm:$0xff]  }
 0x718   :  { %v3468_v45 = vpop.eup %3467 }
 0x719   :  { %v2307_v47 = vmul.f32 %v3468_v45, %v2291_v44  ;;  %v3470_v48 = vpop.eup %3469  ;;  %v3647_v44 = vld [vmem:[#allocation3 + $0x2c] ss:$16 sps:$4 sm:$0xff]   ;;  %v3648_v45 = vld [vmem:[#allocation3 + $0x20] ss:$16 sps:$4 sm:$0xff]  }
 0x71a   :  { %v2435_v50 = vadd.f32 1.0, %v3470_v48  ;;  %v3651_v48 = vld [vmem:[#allocation3 + $0xc] ss:$16 sps:$4 sm:$0xff]  }
 0x71b   :  { %v2308_v49 = vadd.f32 %v2307_v47, %v2289_v46  ;;  %v3649_v46 = vld [vmem:[#allocation3 + $0x28] ss:$16 sps:$4 sm:$0xff]   ;;  %v3650_v47 = vld [vmem:[#allocation3 + $0x4] ss:$16 sps:$4 sm:$0xff]  }
 0x71d   :  { %3475 = vtanh.f32 %v2308_v49  ;;  %v3652_v49 = vld [vmem:[#allocation3] ss:$16 sps:$4 sm:$0xff]  }
 0x71e   :  { %3477 = vrcp.f32 %v2435_v50  ;;  %v3653_v50 = vld [vmem:[#allocation3 + $0x8] ss:$16 sps:$4 sm:$0xff]  }
 0x720   :  { %v3472_v52 = vpop.eup %3471 }
 0x721   :  { %v2441_v53 = vmul.f32 %v3472_v52, %v2440_v51  ;;  %v3474_v56 = vpop.eup %3473  ;;  %v3654_v51 = vld [vmem:[#allocation3 + $0x1e4] ss:$16 sps:$4 sm:$0xff]   ;;  %v3655_v52 = vld [vmem:[#allocation3 + $0x1ec] ss:$16 sps:$4 sm:$0xff]  }
 0x722   :  { %v2310_v57 = vsub.f32 1.0, %v3474_v56  ;;  %v2312_v1 = vmul.f32 %v3474_v56, %v4854_v11  ;;  %v3659_v56 = vld [vmem:[#allocation3 + $0x1cc] ss:$16 sps:$4 sm:$0xff]  }
 0x723   :  { %v2442_v55 = vadd.f32 %v2441_v53, %v5536_v54  ;;  %v3656_v53 = vld [vmem:[#allocation3 + $0x1e0] ss:$16 sps:$4 sm:$0xff]   ;;  %v3657_v54 = vld [vmem:[#allocation3 + $0x1e8] ss:$16 sps:$4 sm:$0xff]  }
 0x725   :  { %3479 = vtanh.f32 %v2442_v55  ;;  %v3658_v55 = vld [vmem:[#allocation3 + $0x1c4] ss:$16 sps:$4 sm:$0xff]  }
 0x72a   :  { %v3476_v58 = vpop.eup %3475 }
 0x72b   :  { %v2311_v6 = vmul.f32 %v3476_v58, %v2310_v57  ;;  %v3478_v15 = vpop.eup %3477  ;;  %v3660_v57 = vld [vmem:[#allocation3 + $0x1c0] ss:$16 sps:$4 sm:$0xff]   ;;  %v3661_v58 = vld [vmem:[#allocation3 + $0x1c8] ss:$16 sps:$4 sm:$0xff]  }
 0x72c   :  { %v2444_v3 = vsub.f32 1.0, %v3478_v15  ;;  %v2446_v11 = vmul.f32 %v3478_v15, %v4864_v18  ;;  %v3621_v18 = vld [vmem:[%s5075_s7 + $0x8] ss:$12 sps:$4 sm:$0xff]  }
 0x72d   :  { %v4971_v13 = vadd.f32 %v2312_v1, %v2311_v6  ;;  %v3663_v6 = vld [vmem:[#allocation3 + $0x1ac] ss:$16 sps:$4 sm:$0xff]   ;;  %v3664_v1 = vld [vmem:[#allocation3 + $0x1a0] ss:$16 sps:$4 sm:$0xff]   ;;  %v3665_v15 = vld [vmem:[#allocation3 + $0x1a8] ss:$16 sps:$4 sm:$0xff]  }
 0x72f   :  { %v2449_v17 = vpack.c.bf16 %v4971_v13, %v4971_v13  ;;  %v4976_v61 = vsel %vm2319_vm1, %v4971_v13, 0.0 }
 0x730   :  { %v2321_v2 = vmul.f32 %v4283_v20, %v4976_v61 }
 0x731   :  { %2482 = vmatprep.mubr.bf16.mxu1 %v2449_v17  ;;  %2523 = vmatprep.mubr.bf16.mxu0 %v2449_v17  ;;  %v3666_v17 = vld [vmem:[#allocation3 + $0x184] ss:$16 sps:$4 sm:$0xff]  }
 0x732   :  { %v3480_v29 = vpop.eup %3479  ;;  %2322 = vadd.xlane.f32.xlu0 %v2321_v2  ;;  %v3667_v2 = vld [vmem:[#allocation3 + $0x18c] ss:$16 sps:$4 sm:$0xff]  }
 0x733   :  { %v2445_v5 = vmul.f32 %v3480_v29, %v2444_v3  ;;  %v3668_v3 = vld [vmem:[#allocation3 + $0x180] ss:$16 sps:$4 sm:$0xff]   ;;  %v3669_v29 = vld [vmem:[#allocation3 + $0x188] ss:$16 sps:$4 sm:$0xff]  }
 0x735   :  { %v4981_v30 = vadd.f32 %v2446_v11, %v2445_v5  ;;  %v3670_v5 = vld [vmem:[#allocation3 + $0x164] ss:$16 sps:$4 sm:$0xff]   ;;  %v3671_v11 = vld [vmem:[#allocation3 + $0x16c] ss:$16 sps:$4 sm:$0xff]  }
 0x737   :  { %v2448_v23 = vpack.c.bf16 %v4981_v30, %v4981_v30 }
 0x739   :  { %2483 = vmatmul.mubr.bf16.vlgmr.msra.gmra.mxu1 %v2448_v23  ;;  %2524 = vmatmul.mubr.bf16.vlgmr.msra.gmra.mxu0 %v2448_v23 }
 0x73a   :  { %2595 = vmatpush1.bf16.msra.mxu1 %v4871_v63  ;;  %3188 = vmatpush3.bf16.msra.mxu0 %v3620_v12  ;;  %v3622_v63 = vld [vmem:[#allocation3 + $0xe4] ss:$16 sps:$4 sm:$0xff]   ;;  %v3673_v12 = vld [vmem:[#allocation3 + $0x168] ss:$16 sps:$4 sm:$0xff]  }
 0x73b   :  { %2596 = vmatprep.subr.bf16.mxu1 %v4878_v7  ;;  %3189 = vmatprep.subr.bf16.mxu0 %v5271_v26  ;;  %v3624_v7 = vld [vmem:[#allocation3 + $0xe0] ss:$16 sps:$4 sm:$0xff]  }
 0x73c   :  { %2614 = vmatprep.mubr.bf16.mxu1 %v5273_v31  ;;  %3191 = vmatprep.mubr.msk.bf16.mxu0 %vm3713_vm2, %v5271_v26  ;;  %v3625_v31 = vld [vmem:[#allocation3 + $0xe8] ss:$16 sps:$4 sm:$0xff]  }
 0x73e   :  { %2597 = vmatpush1.bf16.msra.mxu1 %v4888_v24  ;;  %3190 = vmatpush3.bf16.msra.mxu0 %v3621_v18  ;;  %v3627_v24 = vld [vmem:[#allocation3 + $0xcc] ss:$16 sps:$4 sm:$0xff]   ;;  %v3674_v18 = vld [vmem:[#allocation3 + $0x144] ss:$16 sps:$4 sm:$0xff]  }
 0x73f   :  { %2687 = vmatprep.subr.bf16.mxu1 %v3622_v63  ;;  %2728 = vmatprep.subr.bf16.mxu0 %v3623_v25  ;;  %v3675_v63 = vld [vmem:[#allocation3 + $0x14c] ss:$16 sps:$4 sm:$0xff]   ;;  %v3676_v25 = vld [vmem:[#allocation3 + $0x140] ss:$16 sps:$4 sm:$0xff]  }
 0x741   :  { %3061 = vmatmul.mubr.msk.bf16.vlgmr.msra.gmra.mxu1 %vm510_vm4, %v2448_v23  ;;  %3192 = vmatmul.mubr.msk.bf16.vlgmr.msra.gmra.mxu0 %vm510_vm4, %v2448_v23  ;;  %v3672_v23 = vld [vmem:[#allocation3 + $0x160] ss:$16 sps:$4 sm:$0xff]   ;;  %vm2917_vm4 = vcmask 7168  }
 0x742   :  { %2688 = vmatpush1.bf16.msra.mxu1 %v3624_v7  ;;  %2729 = vmatpush1.bf16.msra.mxu0 %v3625_v31  ;;  %v3677_v7 = vld [vmem:[#allocation3 + $0x148] ss:$16 sps:$4 sm:$0xff]   ;;  %v3678_v31 = vld [vmem:[#allocation3 + $0x124] ss:$16 sps:$4 sm:$0xff]  }
 0x743   :  { %2689 = vmatprep.subr.bf16.mxu1 %v3626_v33  ;;  %2730 = vmatprep.subr.bf16.mxu0 %v3627_v24  ;;  %v3679_v33 = vld [vmem:[#allocation3 + $0x12c] ss:$16 sps:$4 sm:$0xff]   ;;  %v3680_v24 = vld [vmem:[#allocation3 + $0x120] ss:$16 sps:$4 sm:$0xff]  }
 0x746   :  { %2690 = vmatpush1.bf16.msra.mxu1 %v3628_v16  ;;  %2731 = vmatpush1.bf16.msra.mxu0 %v3629_v62  ;;  %v3681_v16 = vld [vmem:[#allocation3 + $0x128] ss:$16 sps:$4 sm:$0xff]   ;;  %v3682_v62 = vld [vmem:[#allocation3 + $0x104] ss:$16 sps:$4 sm:$0xff]  }
 0x747   :  { %2691 = vmatprep.subr.bf16.mxu1 %v3630_v32  ;;  %2732 = vmatprep.subr.bf16.mxu0 %v3631_v21  ;;  %v3683_v32 = vld [vmem:[#allocation3 + $0x10c] ss:$16 sps:$4 sm:$0xff]   ;;  %v3684_v21 = vld [vmem:[#allocation3 + $0x100] ss:$16 sps:$4 sm:$0xff]  }
 0x74a   :  { %2692 = vmatpush1.bf16.msra.mxu1 %v3632_v9  ;;  %2733 = vmatpush1.bf16.msra.mxu0 %v3633_v4  ;;  %v3685_v9 = vld [vmem:[#allocation3 + $0x108] ss:$16 sps:$4 sm:$0xff]  }
 0x74b   :  { %2693 = vmatprep.subr.bf16.mxu1 %v3634_v0  ;;  %2734 = vmatprep.subr.bf16.mxu0 %v3635_v27 }
 0x74e   :  { %2694 = vmatpush1.bf16.msra.mxu1 %v3636_v28  ;;  %2735 = vmatpush1.bf16.msra.mxu0 %v3637_v34 }
 0x74f   :  { %2695 = vmatprep.subr.bf16.mxu1 %v3638_v35  ;;  %2736 = vmatprep.subr.bf16.mxu0 %v3639_v36 }
 0x752   :  { %2696 = vmatpush1.bf16.msra.mxu1 %v3640_v37  ;;  %2737 = vmatpush1.bf16.msra.mxu0 %v3641_v38 }
 0x753   :  { %2697 = vmatprep.subr.bf16.mxu1 %v3642_v39  ;;  %2738 = vmatprep.subr.bf16.mxu0 %v3643_v40 }
 0x756   :  { %2698 = vmatpush1.bf16.msra.mxu1 %v3644_v41  ;;  %2739 = vmatpush1.bf16.msra.mxu0 %v3645_v42 }
 0x757   :  { %2699 = vmatprep.subr.bf16.mxu1 %v3646_v43  ;;  %2740 = vmatprep.subr.bf16.mxu0 %v3647_v44  ;;  %v5537_v43 = vld [vmem:[#allocation53_spill] sm:$0xff] }
 0x75a   :  { %2700 = vmatpush1.bf16.msra.mxu1 %v3648_v45  ;;  %2741 = vmatpush1.bf16.msra.mxu0 %v3649_v46 }
 0x75b   :  { %2701 = vmatprep.subr.bf16.mxu1 %v3650_v47  ;;  %2742 = vmatprep.subr.bf16.mxu0 %v3651_v48 }
 0x75e   :  { %2702 = vmatpush1.bf16.msra.mxu1 %v3652_v49  ;;  %2743 = vmatpush1.bf16.msra.mxu0 %v3653_v50 }
 0x75f   :  { %2703 = vmatprep.subr.bf16.mxu1 %v3654_v51  ;;  %2744 = vmatprep.subr.bf16.mxu0 %v3655_v52 }
 0x762   :  { %2704 = vmatpush2.bf16.msra.mxu1 %v3656_v53  ;;  %2745 = vmatpush2.bf16.msra.mxu0 %v3657_v54  ;;  %v5538_v53 = vld [vmem:[#allocation54_spill] sm:$0xff] }
 0x763   :  { %2705 = vmatprep.subr.bf16.mxu1 %v3658_v55  ;;  %2746 = vmatprep.subr.bf16.mxu0 %v3659_v56 }
 0x766   :  { %2706 = vmatpush2.bf16.msra.mxu1 %v3660_v57  ;;  %2747 = vmatpush2.bf16.msra.mxu0 %v3661_v58 }
 0x767   :  { %2707 = vmatprep.subr.bf16.mxu1 %v3662_v59  ;;  %2748 = vmatprep.subr.bf16.mxu0 %v3663_v6 }
 0x76a   :  { %2708 = vmatpush2.bf16.msra.mxu1 %v3664_v1  ;;  %2749 = vmatpush2.bf16.msra.mxu0 %v3665_v15 }
 0x76b   :  { %2709 = vmatprep.subr.bf16.mxu1 %v3666_v17  ;;  %2750 = vmatprep.subr.bf16.mxu0 %v3667_v2 }
 0x76e   :  { %2710 = vmatpush2.bf16.msra.mxu1 %v3668_v3  ;;  %2751 = vmatpush2.bf16.msra.mxu0 %v3669_v29 }
 0x76f   :  { %2711 = vmatprep.subr.bf16.mxu1 %v3670_v5  ;;  %2752 = vmatprep.subr.bf16.mxu0 %v3671_v11 }
 0x772   :  { %2712 = vmatpush2.bf16.msra.mxu1 %v3672_v23  ;;  %2753 = vmatpush2.bf16.msra.mxu0 %v3673_v12 }
 0x773   :  { %2713 = vmatprep.subr.bf16.mxu1 %v3674_v18  ;;  %2754 = vmatprep.subr.bf16.mxu0 %v3675_v63  ;;  %v5539_v63 = vld [vmem:[#allocation59_spill] sm:$0xff] }
 0x776   :  { %2714 = vmatpush2.bf16.msra.mxu1 %v3676_v25  ;;  %2755 = vmatpush2.bf16.msra.mxu0 %v3677_v7 }
 0x777   :  { %2715 = vmatprep.subr.bf16.mxu1 %v3678_v31  ;;  %2756 = vmatprep.subr.bf16.mxu0 %v3679_v33 }
 0x77a   :  { %2716 = vmatpush2.bf16.msra.mxu1 %v3680_v24  ;;  %2757 = vmatpush2.bf16.msra.mxu0 %v3681_v16  ;;  %v2555_v24 = vpop.permute.xlu0 %2554 }
 0x77b   :  { %2717 = vmatprep.subr.bf16.mxu1 %v3682_v62  ;;  %2758 = vmatprep.subr.bf16.mxu0 %v3683_v32  ;;  %vm2556_vm3 = vcmp.eq.s32.totalorder %v2555_v24, 1 }
 0x77e   :  { %2718 = vmatpush2.bf16.msra.mxu1 %v3684_v21  ;;  %2759 = vmatpush2.bf16.msra.mxu0 %v3685_v9 }
 0x77f   :  { %3195 = vmatprep.subr.bf16.mxu1 %v5271_v26 }
 0x7f9   :  { %v2484_v4 = vpop.f32.mrf.mxu1  ;;  %v2525_v0 = vpop.f32.mrf.mxu0 }
 0x7fa   :  { %v2485_v27 = vadd.f32 %v2484_v4, %v5532_v14  ;;  %v2526_v2 = vadd.f32 %v2525_v0, %v4274_v22 }
 0x7fb   :  { %v2486_v28 = vpop.f32.mrf.mxu1  ;;  %v2527_v34 = vpop.f32.mrf.mxu0 }
 0x7fc   :  { %v3059_v35 = vmul.f32 -1.442695, %v2485_v27  ;;  %v2487_v40 = vadd.f32 %v2486_v28, %v5533_v60  ;;  %v2528_v15 = vadd.f32 %v2527_v34, %v4270_v8 }
 0x7fd   :  { %v2488_v36 = vpop.f32.mrf.mxu1  ;;  %v2529_v37 = vpop.f32.mrf.mxu0 }
 0x7fe   :  { %3481 = vpow2.f32 %v3059_v35  ;;  %v3060_v47 = vmul.f32 -1.442695, %v2487_v40 }
 0x7ff   :  { %v2489_v38 = vpop.f32.mrf.mxu1  ;;  %v2530_v39 = vpop.f32.mrf.mxu0 }
 0x801   :  { %v2616_v41 = vpop.f32.mrf.mxu1  ;;  %v2657_v42 = vpop.f32.mrf.mxu0 }
 0x802   :  { %v2663_v44 = vadd.f32 %v2616_v41, %v5537_v43  ;;  %v2677_v23 = vadd.f32 %v4749_v19, %v2657_v42 }
 0x803   :  { %v2618_v45 = vpop.f32.mrf.mxu1  ;;  %v3193_v46 = vpop.f32.mrf.mxu0 }
 0x804   :  { %v3063_v48 = vmul.f32 -1.442695, %v2663_v44  ;;  %v2664_v54 = vadd.f32 %v2618_v45, %v5538_v53 }
 0x805   :  { %v2620_v49 = vpop.f32.mrf.mxu1  ;;  %v2660_v50 = vpop.f32.mrf.mxu0 }
 0x806   :  { %3483 = vpow2.f32 %v3063_v48  ;;  %v3064_v57 = vmul.f32 -1.442695, %v2664_v54 }
 0x807   :  { %v2621_v51 = vpop.f32.mrf.mxu1  ;;  %v3194_v52 = vpop.f32.mrf.mxu0  ;;  %3485 = vpow2.f32 %v3060_v47 }
 0x80b   :  { %v3482_v55 = vpop.eup %3481 }
 0x80c   :  { %v2538_v56 = vadd.f32 1.0, %v3482_v55 }
 0x80e   :  { %3487 = vrcp.f32 %v2538_v56 }
 0x80f   :  { %3489 = vpow2.f32 %v3064_v57 }
 0x813   :  { %v3484_v58 = vpop.eup %3483 }
 0x814   :  { %v2671_v59 = vadd.f32 1.0, %v3484_v58  ;;  %v3486_v6 = vpop.eup %3485 }
 0x815   :  { %v2539_v1 = vadd.f32 1.0, %v3486_v6 }
 0x816   :  { %3491 = vrcp.f32 %v2671_v59  ;;  %v2792_v59 = vpop.permute.xlu1 %2791 }
 0x817   :  { %3493 = vrcp.f32 %v2539_v1 }
 0x81b   :  { %v3488_v17 = vpop.eup %3487 }
 0x81c   :  { %v2544_v3 = vmul.f32 %v3488_v17, %v2528_v15  ;;  %v3490_v29 = vpop.eup %3489  ;;  %v3342_v15 = vld [vmem:[%s5078_s10 + $0x30] sm:$0xff]   ;;  %v3343_v17 = vld [vmem:[%s5078_s10 + $0x28] sm:$0xff]  }
 0x81d   :  { %v2672_v11 = vadd.f32 1.0, %v3490_v29  ;;  %v3347_v29 = vld [vmem:[%s5078_s10 + $0x8] sm:$0xff]  }
 0x81e   :  { %v2545_v5 = vadd.f32 %v2544_v3, %v2526_v2  ;;  %v3345_v2 = vld [vmem:[%s5078_s10 + $0x18] sm:$0xff]   ;;  %v3346_v3 = vld [vmem:[%s5078_s10 + $0x10] sm:$0xff]  }
 0x820   :  { %3495 = vtanh.f32 %v2545_v5  ;;  %v3348_v5 = vld [vmem:[%s5078_s10] sm:$0xff]  }
 0x821   :  { %3497 = vrcp.f32 %v2672_v11  ;;  %v1140_v11 = vpop.xlane.xlu0 %1139 }
 0x823   :  { %v3492_v12 = vpop.eup %3491 }
 0x824   :  { %v2678_v18 = vmul.f32 %v3492_v12, %v2677_v23  ;;  %v3494_v7 = vpop.eup %3493  ;;  %v1375_v23 = vpop.xlane.xlu1 %1374  ;;  %v1141_v12 = vsub.f32 -inf, %v1140_v11 }
 0x825   :  { %v2547_v31 = vsub.f32 1.0, %v3494_v7  ;;  %v2549_v62 = vmul.f32 %v3494_v7, %v4971_v13  ;;  %v1612_v7 = vpop.xlane.xlu0 %1611 }
 0x826   :  { %v2679_v25 = vadd.f32 %v2678_v18, %v5539_v63  ;;  %v1376_v18 = vmax.f32 %v1140_v11, %v1375_v23  ;;  %v1142_v63 = vmul.f32 1.442695, %v1141_v12 }
 0x828   :  { %3499 = vtanh.f32 %v2679_v25  ;;  %v1144_v25 = vsub.f32 %v1140_v11, %v1140_v11 }
 0x82a   :  { %v1145_v24 = vmul.f32 1.442695, %v1144_v25 }
 0x82d   :  { %v3496_v33 = vpop.eup %3495 }
 0x82e   :  { %v2548_v16 = vmul.f32 %v3496_v33, %v2547_v31  ;;  %v3498_v21 = vpop.eup %3497  ;;  %v1377_v31 = vsub.f32 %v1140_v11, %v1376_v18  ;;  %v1613_v33 = vmax.f32 %v1376_v18, %v1612_v7 }
 0x82f   :  { %v2681_v0 = vsub.f32 1.0, %v3498_v21  ;;  %v2683_v34 = vmul.f32 %v3498_v21, %v4981_v30 }
 0x830   :  { %v2550_v32 = vadd.f32 %v2549_v62, %v2548_v16  ;;  %v1378_v16 = vmul.f32 1.442695, %v1377_v31  ;;  %v1380_v62 = vsub.f32 %v1375_v23, %v1376_v18  ;;  %v1614_v21 = vsub.f32 %v1376_v18, %v1613_v33 }
 0x832   :  { %v2686_v9 = vpack.c.bf16 %v2550_v32, %v2550_v32  ;;  %v5010_v4 = vsel %vm2556_vm3, %v2550_v32, 0.0 }
 0x833   :  { %v2558_v19 = vmul.f32 %v4283_v20, %v5010_v4 }
 0x834   :  { %2719 = vmatprep.mubr.bf16.mxu1 %v2686_v9  ;;  %2760 = vmatprep.mubr.bf16.mxu0 %v2686_v9 }
 0x835   :  { %v3500_v27 = vpop.eup %3499  ;;  %2559 = vadd.xlane.f32.xlu1 %v2558_v19  ;;  %v1615_v19 = vmul.f32 1.442695, %v1614_v21 }
 0x836   :  { %v2682_v28 = vmul.f32 %v3500_v27, %v2681_v0  ;;  %v1617_v0 = vsub.f32 %v1612_v7, %v1613_v33  ;;  %v2086_v27 = vpop.xlane.xlu1 %2085 }
 0x838   :  { %v2684_v35 = vadd.f32 %v2683_v34, %v2682_v28 }
 0x83a   :  { %v2685_v36 = vpack.c.bf16 %v2684_v35, %v2684_v35 }
 0x83c   :  { %2720 = vmatmul.mubr.bf16.vlgmr.msra.gmra.mxu1 %v2685_v36  ;;  %2761 = vmatmul.mubr.bf16.vlgmr.msra.gmra.mxu0 %v2685_v36  ;;  %v1618_v36 = vmul.f32 1.442695, %v1617_v0 }
 0x83d   :  { %3211 = vmatprep.mubr.msk.bf16.mxu1 %vm3713_vm2, %v5271_v26  ;;  %vm2793_vm2 = vcmp.eq.s32.totalorder %v2792_v59, 1 }
 0x8fc   :  { %v2721_v13 = vpop.f32.mrf.mxu1  ;;  %v2762_v37 = vpop.f32.mrf.mxu0 }
 0x8fd   :  { %v2722_v38 = vadd.f32 %v2721_v13, %v5532_v14  ;;  %v2763_v52 = vadd.f32 %v2762_v37, %v4274_v22  ;;  %v3341_v22 = vld [vmem:[%s5078_s10 + $0x38] sm:$0xff]  }
 0x8fe   :  { %v2723_v39 = vpop.f32.mrf.mxu1  ;;  %v2764_v40 = vpop.f32.mrf.mxu0  ;;  %3196 = vmatpush3.bf16.msra.mxu1 %v3341_v22 }
 0x8ff   :  { %v3065_v41 = vmul.f32 -1.442695, %v2722_v38  ;;  %v2724_v30 = vadd.f32 %v2723_v39, %v5533_v60  ;;  %v2765_v51 = vadd.f32 %v2764_v40, %v4270_v8  ;;  %3197 = vmatprep.subr.bf16.mxu1 %v5271_v26 }
 0x900   :  { %v2725_v42 = vpop.f32.mrf.mxu1  ;;  %v2766_v43 = vpop.f32.mrf.mxu0 }
 0x901   :  { %3501 = vpow2.f32 %v3065_v41  ;;  %v3066_v46 = vmul.f32 -1.442695, %v2724_v30 }
 0x902   :  { %v2726_v44 = vpop.f32.mrf.mxu1  ;;  %v2767_v45 = vpop.f32.mrf.mxu0  ;;  %3198 = vmatpush3.bf16.msra.mxu1 %v3342_v15 }
 0x903   :  { %3503 = vpow2.f32 %v3066_v46  ;;  %3199 = vmatprep.subr.bf16.mxu1 %v5271_v26 }
 0x906   :  { %3200 = vmatpush3.bf16.msra.mxu1 %v3343_v17 }
 0x907   :  { %3201 = vmatprep.subr.bf16.mxu1 %v5271_v26 }
 0x90e   :  { %v3502_v47 = vpop.eup %3501 }
 0x90f   :  { %v2775_v48 = vadd.f32 1.0, %v3502_v47  ;;  %v2560_v47 = vpop.xlane.xlu1 %2559 }
 0x910   :  { %v3504_v49 = vpop.eup %3503 }
 0x911   :  { %3505 = vrcp.f32 %v2775_v48  ;;  %v2776_v50 = vadd.f32 1.0, %v3504_v49 }
 0x913   :  { %3507 = vrcp.f32 %v2776_v50 }
 0x91e   :  { %v3506_v14 = vpop.eup %3505 }
 0x91f   :  { %v2781_v53 = vmul.f32 %v3506_v14, %v2765_v51 }
 0x920   :  { %v3508_v55 = vpop.eup %3507 }
 0x921   :  { %v2782_v54 = vadd.f32 %v2781_v53, %v2763_v52  ;;  %v2784_v56 = vsub.f32 1.0, %v3508_v55  ;;  %v2786_v58 = vmul.f32 %v3508_v55, %v2550_v32  ;;  %v1849_v32 = vpop.xlane.xlu0 %1848  ;;  %v5540_v55 = vld [vmem:[#allocation40_spill] sm:$0xff] }
 0x922   :  { %v1850_v9 = vmax.f32 %v1613_v33, %v1849_v32 }
 0x923   :  { %3509 = vtanh.f32 %v2782_v54 }
 0x924   :  { %3511 = vpow2.f32 %v1142_v63  ;;  %v1851_v28 = vsub.f32 %v1613_v33, %v1850_v9  ;;  %v2087_v34 = vmax.f32 %v1850_v9, %v2086_v27  ;;  %v1854_v37 = vsub.f32 %v1849_v32, %v1850_v9  ;;  %v5542_v33 = vld [vmem:[#allocation45_spill] sm:$0xff] }
 0x925   :  { %3513 = vpow2.f32 %v1145_v24  ;;  %v2323_v38 = vpop.xlane.xlu0 %2322 }
 0x926   :  { %3515 = vpow2.f32 %v1378_v16  ;;  %v1852_v13 = vmul.f32 1.442695, %v1851_v28  ;;  %v2088_v40 = vsub.f32 %v1850_v9, %v2087_v34  ;;  %v2324_v42 = vmax.f32 %v2087_v34, %v2323_v38 }
 0x927   :  { %v1855_v44 = vmul.f32 1.442695, %v1854_v37  ;;  %v2091_v46 = vsub.f32 %v2086_v27, %v2087_v34 }
 0x928   :  { %v2089_v30 = vmul.f32 1.442695, %v2088_v40  ;;  %v2325_v49 = vsub.f32 %v2087_v34, %v2324_v42  ;;  %v2561_v51 = vmax.f32 %v2324_v42, %v2560_v47  ;;  %v5543_v34 = vld [vmem:[#allocation46_spill] sm:$0xff] }
 0x929   :  { %v2092_v52 = vmul.f32 1.442695, %v2091_v46 }
 0x92a   :  { %v2326_v54 = vmul.f32 1.442695, %v2325_v49 }
 0x930   :  { %v3510_v57 = vpop.eup %3509 }
 0x931   :  { %v2785_v60 = vmul.f32 %v3510_v57, %v2784_v56  ;;  %v3512_v35 = vpop.eup %3511  ;;  %v2328_v57 = vsub.f32 %v2323_v38, %v2324_v42 }
 0x932   :  { %v1147_v39 = vmul.f32 0.0, %v3512_v35  ;;  %v3514_v41 = vpop.eup %3513 }
 0x933   :  { %v2787_v6 = vadd.f32 %v2786_v58, %v2785_v60  ;;  %v3516_v43 = vpop.eup %3515  ;;  %v1149_v56 = vmul.f32 %v3514_v41, %v5540_v55  ;;  %v2562_v58 = vsub.f32 %v2324_v42, %v2561_v51  ;;  %v2329_v22 = vmul.f32 1.442695, %v2328_v57 }
 0x934   :  { %v1148_v45 = vadd.f32 %v3514_v41, %v1147_v39 }
 0x935   :  { %v5021_v1 = vsel %vm2793_vm2, %v2787_v6, 0.0  ;;  %v2563_v17 = vmul.f32 1.442695, %v2562_v58 }
 0x936   :  { %v2795_v8 = vmul.f32 %v4283_v20, %v5021_v1  ;;  %v3344_v20 = vld [vmem:[%s5078_s10 + $0x20] sm:$0xff]   ;;  %v1383_v48 = vmul.f32 %v3516_v43, %v1148_v45 }
 0x937   :  { %3202 = vmatpush3.bf16.msra.mxu1 %v3344_v20 }
 0x938   :  { %2796 = vadd.xlane.f32.xlu0 %v2795_v8  ;;  %3203 = vmatprep.subr.bf16.mxu1 %v5271_v26  ;;  %v1150_v8 = vadd.f32 %v1149_v56, %v1147_v39 }
 0x93a   :  { %v1385_v20 = vmul.f32 %v3516_v43, %v1150_v8 }
 0x93b   :  { %3204 = vmatpush3.bf16.msra.mxu1 %v3345_v2  ;;  %v5541_v2 = vld [vmem:[#allocation44_spill] sm:$0xff] }
 0x93c   :  { %3205 = vmatprep.subr.bf16.mxu1 %v5271_v26 }
 0x93f   :  { %3206 = vmatpush3.bf16.msra.mxu1 %v3346_v3 }
 0x940   :  { %3207 = vmatprep.subr.bf16.mxu1 %v5271_v26 }
 0x943   :  { %3208 = vmatpush3.bf16.msra.mxu1 %v3347_v29 }
 0x944   :  { %3209 = vmatprep.subr.bf16.mxu1 %v5271_v26  ;;  %v1381_v26 = vmul.f32 1.442695, %v1380_v62 }
 0x946   :  { %3517 = vpow2.f32 %v1381_v26 }
 0x947   :  { %3210 = vmatpush3.bf16.msra.mxu1 %v3348_v5  ;;  %3519 = vpow2.f32 %v1615_v19  ;;  %v2565_v5 = vsub.f32 %v2560_v47, %v2561_v51 }
 0x948   :  { %3521 = vpow2.f32 %v1618_v36 }
 0x949   :  { %3523 = vpow2.f32 %v1852_v13  ;;  %v2566_v25 = vmul.f32 1.442695, %v2565_v5 }
 0x94a   :  { %3525 = vpow2.f32 %v1855_v44 }
 0x94b   :  { %3527 = vpow2.f32 %v2089_v30 }
 0x94c   :  { %3529 = vpow2.f32 %v2092_v52 }
 0x94d   :  { %3531 = vpow2.f32 %v2326_v54 }
 0x94e   :  { %3533 = vpow2.f32 %v2329_v22 }
 0x94f   :  { %3535 = vpow2.f32 %v2563_v17 }
 0x950   :  { %3537 = vpow2.f32 %v2566_v25 }
 0x953   :  { %v3518_v50 = vpop.eup %3517 }
 0x954   :  { %v3520_v14 = vpop.eup %3519  ;;  %v1384_v53 = vadd.f32 %v3518_v50, %v1383_v48  ;;  %v1386_v3 = vmul.f32 %v3518_v50, %v5541_v2 }
 0x955   :  { %v3522_v59 = vpop.eup %3521 }
 0x956   :  { %v1620_v60 = vmul.f32 %v3520_v14, %v1384_v53  ;;  %v3524_v6 = vpop.eup %3523  ;;  %v1387_v12 = vadd.f32 %v1386_v3, %v1385_v20  ;;  %v1623_v24 = vmul.f32 %v3522_v59, %v5542_v33 }
 0x957   :  { %v3526_v11 = vpop.eup %3525 }
 0x958   :  { %v1621_v15 = vadd.f32 %v3522_v59, %v1620_v60  ;;  %v3528_v23 = vpop.eup %3527  ;;  %v1622_v31 = vmul.f32 %v3520_v14, %v1387_v12  ;;  %v1860_v35 = vmul.f32 %v3526_v11, %v5543_v34 }
 0x959   :  { %v3530_v21 = vpop.eup %3529 }
 0x95a   :  { %v1857_v29 = vmul.f32 %v3524_v6, %v1621_v15  ;;  %v3532_v19 = vpop.eup %3531  ;;  %v1624_v0 = vadd.f32 %v1623_v24, %v1622_v31  ;;  %v2097_v41 = vmul.f32 %v3530_v21, %v4859_v10 }
 0x95b   :  { %v3534_v13 = vpop.eup %3533 }
 0x95c   :  { %v1858_v63 = vadd.f32 %v3526_v11, %v1857_v29  ;;  %v1859_v28 = vmul.f32 %v3524_v6, %v1624_v0  ;;  %v3536_v37 = vpop.eup %3535  ;;  %v2334_v46 = vmul.f32 %v3534_v13, %v4976_v61  ;;  %v5544_v61 = vld [vmem:[#allocation61_spill] sm:$0xff] }
 0x95d   :  { %v3538_v43 = vpop.eup %3537 }
 0x95e   :  { %v2094_v16 = vmul.f32 %v3528_v23, %v1858_v63  ;;  %v1861_v38 = vadd.f32 %v1860_v35, %v1859_v28  ;;  %v2571_v14 = vmul.f32 %v3538_v43, %v5010_v4 }
 0x960   :  { %v2095_v27 = vadd.f32 %v3530_v21, %v2094_v16  ;;  %v2096_v40 = vmul.f32 %v3528_v23, %v1861_v38 }
 0x962   :  { %v2331_v36 = vmul.f32 %v3532_v19, %v2095_v27  ;;  %v2098_v44 = vadd.f32 %v2097_v41, %v2096_v40 }
 0x964   :  { %v2332_v39 = vadd.f32 %v3534_v13, %v2331_v36  ;;  %v2333_v48 = vmul.f32 %v3532_v19, %v2098_v44 }
 0x966   :  { %v2568_v42 = vmul.f32 %v3536_v37, %v2332_v39 }
 0x968   :  { %v2569_v45 = vadd.f32 %v3538_v43, %v2568_v42 }
 0x9c1   :  { %v2797_v18 = vpop.xlane.xlu0 %2796 }
 0x9c2   :  { %v2798_v7 = vmax.f32 %v2561_v51, %v2797_v18 }
 0x9c4   :  { %v2799_v62 = vsub.f32 %v2561_v51, %v2798_v7  ;;  %v2802_v32 = vsub.f32 %v2797_v18, %v2798_v7  ;;  %v2335_v51 = vadd.f32 %v2334_v46, %v2333_v48 }
 0x9c6   :  { %v2800_v9 = vmul.f32 1.442695, %v2799_v62  ;;  %v2803_v26 = vmul.f32 1.442695, %v2802_v32  ;;  %v2570_v52 = vmul.f32 %v3536_v37, %v2335_v51 }
 0x9c8   :  { %3539 = vpow2.f32 %v2800_v9  ;;  %v2572_v53 = vadd.f32 %v2571_v14, %v2570_v52 }
 0x9c9   :  { %3541 = vpow2.f32 %v2803_v26 }
 0x9d5   :  { %v3540_v30 = vpop.eup %3539 }
 0x9d6   :  { %v2805_v47 = vmul.f32 %v3540_v30, %v2569_v45  ;;  %v3542_v49 = vpop.eup %3541  ;;  %v2807_v54 = vmul.f32 %v3540_v30, %v2572_v53 }
 0x9d7   :  { %v2808_v10 = vmul.f32 %v3542_v49, %v5021_v1 }
 0x9d8   :  { %v2806_v50 = vadd.f32 %v3542_v49, %v2805_v47 }
 0x9d9   :  { %v2809_v55 = vadd.f32 %v2808_v10, %v2807_v54 }
 0x9da   :  { %3543 = vrcp.f32 %v2806_v50 }
 0x9e7   :  { %v3544_v56 = vpop.eup %3543 }
 0x9e8   :  { %v2811_v57 = vmul.f32 %v3544_v56, %v2809_v55 }
 0x9ea   :  { %v2828_v60 = vpack.c.bf16 %v2811_v57, %v2811_v57 }
 0x9ec   :  { %3212 = vmatmul.mubr.bf16.vlgmr.msra.gmra.mxu1 %v2828_v60 }
 0xaac   :  { %v2911_v58 = vpop.f32.mrf.mxu1 }
 0xaad   :  { %v2912_v59 = vadd.f32 %v2911_v58, %v5544_v61 }
 0xaae   :  { %v3213_v6 = vpop.f32.mrf.mxu1 }
 0xaaf   :  { %2918 = vst.msk [vmem:[%s5079_s11] sm:$0xff] %vm2917_vm4, %v2912_v59 }
 0xab0   :  { %v2914_v4 = vpop.f32.mrf.mxu1 }
 0xab2   :  { %v3214_v8 = vpop.f32.mrf.mxu1 }
 0xab3   :  { %2923 = vsyncpa [#allocation4], 1 }

</bundles_post_ra>
